<compile_context>
chip_gen: v5e
topology: v5e:2x2
jax: 0.10.0
libtpu: 0.0.40
codegen_flags: <defaults>
</compile_context>

<pallas_src>
import jax
import jax.numpy as jnp
from jax.experimental import pallas as pl
from jax.experimental.pallas import tpu as pltpu


def _ffn_kernel(x_ref, w1_ref, b1_ref, w2_ref, b2_ref, g_ref, beta_ref, o_ref):
    """Fused FFN + residual + LayerNorm on one (tm, d_in) row tile."""
    x_nat = x_ref[...]                       # native dtype tile
    x32 = x_nat.astype(jnp.float32)          # residual / LN math in f32

    # ---- w_1 + ReLU  (MXU, f32 accumulation, weights in native dtype) ----
    h = jnp.dot(x_nat.astype(w1_ref.dtype), w1_ref[...],
                preferred_element_type=jnp.float32)
    h = jnp.maximum(h + b1_ref[...].astype(jnp.float32), 0.0)

    # ---- w_2 + residual ----
    y = jnp.dot(h.astype(w2_ref.dtype), w2_ref[...],
                preferred_element_type=jnp.float32)
    y = y + b2_ref[...].astype(jnp.float32) + x32

    # ---- LayerNorm over the feature axis, eps = 1e-6 (matches torch) ----
    mean = jnp.mean(y, axis=-1, keepdims=True)
    cen = y - mean
    var = jnp.mean(cen * cen, axis=-1, keepdims=True)
    y = cen * jax.lax.rsqrt(var + 1e-6)
    y = y * g_ref[...].astype(jnp.float32) + beta_ref[...].astype(jnp.float32)

    o_ref[...] = y.astype(o_ref.dtype)


def _round_up(a, m):
    return (a + m - 1) // m * m


def _const_spec(shape):
    # Grid-invariant operand (weights / biases / LN params): single-buffer it
    # so resident weights are not double-buffered (VMEM budget, esp. v7x).
    return pl.BlockSpec(shape, lambda i: (0, 0), pipeline_mode=pl.Buffered(1))


def positionwise_feed_forward(x, w1, b1, w2, b2, gamma, beta, *, tm=256):
    """x: (..., d_in). w1:(d_in,d_hid), w2:(d_hid,d_in). Returns x's shape/dtype."""
    orig_shape = x.shape
    d_in = orig_shape[-1]
    d_hid = w1.shape[1]

    x2d = x.reshape(-1, d_in)
    n = x2d.shape[0]

    # Row tile: large, multiple of 8 (f32 sublane); shrink only if N is tiny.
    tm_eff = min(tm, _round_up(n, 8))
    n_pad = _round_up(n, tm_eff)
    if n_pad != n:
        x2d = jnp.pad(x2d, ((0, n_pad - n), (0, 0)))
    grid = n_pad // tm_eff

    # keep biases / LN params 2D so they map cleanly onto (sublane, lane)
    b1_2d = b1.reshape(1, d_hid)
    b2_2d = b2.reshape(1, d_in)
    g_2d = gamma.reshape(1, d_in)
    beta_2d = beta.reshape(1, d_in)

    # ---- VMEM budget / cost estimate ----
    x_item = x2d.dtype.itemsize
    w_bytes = w1.dtype.itemsize * d_in * d_hid + w2.dtype.itemsize * d_hid * d_in
    bias_bytes = 4 * (d_hid + 3 * d_in)
    io_bytes = 2 * 2 * tm_eff * d_in * x_item          # x + out, double-buffered
    compute_bytes = 4 * tm_eff * (d_hid + 2 * d_in)    # f32 hidden + temporaries
    est = w_bytes + bias_bytes + io_bytes + compute_bytes
    vmem_limit = int(min(max(2 * est, 32 * 1024 * 1024), 100 * 1024 * 1024))

    cost = pl.CostEstimate(
        flops=4 * n_pad * d_in * d_hid,                 # two matmuls, 2 flop/MAC
        transcendentals=n_pad,                          # one rsqrt per row
        bytes_accessed=w_bytes + bias_bytes + 2 * n_pad * d_in * x_item,
    )

    out = pl.pallas_call(
        _ffn_kernel,
        out_shape=jax.ShapeDtypeStruct((n_pad, d_in), x.dtype),
        grid_spec=pltpu.PrefetchScalarGridSpec(
            num_scalar_prefetch=0,
            grid=(grid,),
            in_specs=[
                pl.BlockSpec((tm_eff, d_in), lambda i: (i, 0)),   # x tile
                _const_spec((d_in, d_hid)),                       # w1 (resident)
                _const_spec((1, d_hid)),                          # b1
                _const_spec((d_hid, d_in)),                       # w2 (resident)
                _const_spec((1, d_in)),                           # b2
                _const_spec((1, d_in)),                           # ln gamma
                _const_spec((1, d_in)),                           # ln beta
            ],
            out_specs=pl.BlockSpec((tm_eff, d_in), lambda i: (i, 0)),
        ),
        compiler_params=pltpu.CompilerParams(
            dimension_semantics=("parallel",),          # row tiles shard across TCs
            vmem_limit_bytes=vmem_limit,
        ),
        cost_estimate=cost,
    )(x2d, w1, b1_2d, w2, b2_2d, g_2d, beta_2d)

    if n_pad != n:
        out = out[:n]
    return out.reshape(orig_shape)


def _reference(x, w1, b1, w2, b2, gamma, beta):
    x32 = x.astype(jnp.float32)
    h = jnp.maximum(x32 @ w1.astype(jnp.float32) + b1, 0.0)
    y = h @ w2.astype(jnp.float32) + b2 + x32
    mean = jnp.mean(y, axis=-1, keepdims=True)
    var = jnp.mean((y - mean) ** 2, axis=-1, keepdims=True)
    return ((y - mean) * jax.lax.rsqrt(var + 1e-6)) * gamma + beta


if __name__ == "__main__":
    # Small shapes consistent with the module (d_in multiple of 128 so the
    # output store is lane-dense); N = 4*128 = 512 -> 2 grid steps at tm=256.
    batch, seq, d_in, d_hid = 4, 128, 256, 512

    key = jax.random.PRNGKey(0)
    kx, kw1, kb1, kw2, kb2, kx2 = jax.random.split(key, 6)

    x = jax.random.normal(kx, (batch, seq, d_in), dtype=jnp.float32)
    # deterministic synthetic parameters (not a checkpoint load)
    w1 = jax.random.normal(kw1, (d_in, d_hid), dtype=jnp.float32) * 0.05
    b1 = jax.random.normal(kb1, (d_hid,), dtype=jnp.float32) * 0.05
    w2 = jax.random.normal(kw2, (d_hid, d_in), dtype=jnp.float32) * 0.05
    b2 = jax.random.normal(kb2, (d_in,), dtype=jnp.float32) * 0.05
    gamma = jnp.ones((d_in,), dtype=jnp.float32)
    beta = jnp.zeros((d_in,), dtype=jnp.float32)

    out = positionwise_feed_forward(x, w1, b1, w2, b2, gamma, beta)
    out = jax.block_until_ready(out)
    ref = _reference(x, w1, b1, w2, b2, gamma, beta)
    assert out.shape == x.shape and out.dtype == x.dtype
    assert jnp.allclose(out, ref, atol=1e-4, rtol=1e-4), "mismatch vs reference"

    # Ragged row count (N = 300, not a multiple of the row tile) exercises
    # the cdiv + pad path.
    x_ragged = jax.random.normal(kx2, (3, 100, d_in), dtype=jnp.float32)
    out_r = jax.block_until_ready(
        positionwise_feed_forward(x_ragged, w1, b1, w2, b2, gamma, beta))
    ref_r = _reference(x_ragged, w1, b1, w2, b2, gamma, beta)
    assert out_r.shape == x_ragged.shape
    assert jnp.allclose(out_r, ref_r, atol=1e-4, rtol=1e-4), "ragged mismatch"

    print("KERNEL_OK")
</pallas_src>

<mosaic_0001>
module attributes {stable_mosaic.version = 11 : i64} {
  func.func @_ffn_kernel(%arg0: i32, %arg1: memref<256x256xf32, #tpu.memory_space<vmem>>, %arg2: memref<256x512xf32, #tpu.memory_space<vmem>>, %arg3: memref<1x512xf32, #tpu.memory_space<vmem>>, %arg4: memref<512x256xf32, #tpu.memory_space<vmem>>, %arg5: memref<1x256xf32, #tpu.memory_space<vmem>>, %arg6: memref<1x256xf32, #tpu.memory_space<vmem>>, %arg7: memref<1x256xf32, #tpu.memory_space<vmem>>, %arg8: memref<256x256xf32, #tpu.memory_space<vmem>>) attributes {dimension_semantics = [#tpu.dimension_semantics<parallel>], iteration_bounds = array<i64: 2>, scalar_prefetch = 0 : i64, scratch_operands = 0 : i64, tpu.core_type = #tpu.core_type<tc>, window_params = [{transform_indices = @transform_0, window_bounds = array<i64: 256, 256>}, {pipeline_mode = #tpu.pipeline_mode<synchronous>, transform_indices = @transform_1, window_bounds = array<i64: 256, 512>}, {pipeline_mode = #tpu.pipeline_mode<synchronous>, transform_indices = @transform_2, window_bounds = array<i64: 1, 512>}, {pipeline_mode = #tpu.pipeline_mode<synchronous>, transform_indices = @transform_3, window_bounds = array<i64: 512, 256>}, {pipeline_mode = #tpu.pipeline_mode<synchronous>, transform_indices = @transform_4, window_bounds = array<i64: 1, 256>}, {pipeline_mode = #tpu.pipeline_mode<synchronous>, transform_indices = @transform_5, window_bounds = array<i64: 1, 256>}, {pipeline_mode = #tpu.pipeline_mode<synchronous>, transform_indices = @transform_6, window_bounds = array<i64: 1, 256>}, {transform_indices = @transform_7, window_bounds = array<i64: 256, 256>}]} {
    %c0 = arith.constant 0 : index
    %c0_0 = arith.constant 0 : index
    %0 = vector.load %arg1[%c0, %c0_0] : memref<256x256xf32, #tpu.memory_space<vmem>>, vector<256x256xf32>
    %c0_1 = arith.constant 0 : index
    %c0_2 = arith.constant 0 : index
    %1 = vector.load %arg2[%c0_1, %c0_2] : memref<256x512xf32, #tpu.memory_space<vmem>>, vector<256x512xf32>
    %cst = arith.constant dense<0.000000e+00> : vector<256x512xf32>
    %2 = tpu.matmul %0, %1, %cst {dimension_numbers = #tpu.dot_dimension_numbers<[1], [0], [0], [1], [0, 0, 1, 1], [], []>} : vector<256x256xf32>, vector<256x512xf32>, vector<256x512xf32> -> vector<256x512xf32>
    %c0_3 = arith.constant 0 : index
    %c0_4 = arith.constant 0 : index
    %3 = vector.load %arg3[%c0_3, %c0_4] : memref<1x512xf32, #tpu.memory_space<vmem>>, vector<1x512xf32>
    %4 = vector.broadcast %3 : vector<1x512xf32> to vector<256x512xf32>
    %5 = arith.addf %2, %4 : vector<256x512xf32>
    %cst_5 = arith.constant 0.000000e+00 : f32
    %6 = vector.broadcast %cst_5 : f32 to vector<256x512xf32>
    %7 = arith.maximumf %5, %6 : vector<256x512xf32>
    %c0_6 = arith.constant 0 : index
    %c0_7 = arith.constant 0 : index
    %8 = vector.load %arg4[%c0_6, %c0_7] : memref<512x256xf32, #tpu.memory_space<vmem>>, vector<512x256xf32>
    %cst_8 = arith.constant dense<0.000000e+00> : vector<256x256xf32>
    %9 = tpu.matmul %7, %8, %cst_8 {dimension_numbers = #tpu.dot_dimension_numbers<[1], [0], [0], [1], [0, 0, 1, 1], [], []>} : vector<256x512xf32>, vector<512x256xf32>, vector<256x256xf32> -> vector<256x256xf32>
    %c0_9 = arith.constant 0 : index
    %c0_10 = arith.constant 0 : index
    %10 = vector.load %arg5[%c0_9, %c0_10] : memref<1x256xf32, #tpu.memory_space<vmem>>, vector<1x256xf32>
    %11 = vector.broadcast %10 : vector<1x256xf32> to vector<256x256xf32>
    %12 = arith.addf %9, %11 : vector<256x256xf32>
    %13 = arith.addf %12, %0 : vector<256x256xf32>
    %cst_11 = arith.constant dense<0.000000e+00> : vector<256xf32>
    %14 = vector.multi_reduction <add>, %13, %cst_11 [1] : vector<256x256xf32> to vector<256xf32>
    %15 = vector.shape_cast %14 : vector<256xf32> to vector<256x1xf32>
    %cst_12 = arith.constant 2.560000e+02 : f32
    %16 = vector.broadcast %cst_12 : f32 to vector<256x1xf32>
    %17 = arith.divf %15, %16 : vector<256x1xf32>
    %18 = vector.broadcast %17 : vector<256x1xf32> to vector<256x256xf32>
    %19 = arith.subf %13, %18 : vector<256x256xf32>
    %20 = arith.mulf %19, %19 : vector<256x256xf32>
    %cst_13 = arith.constant dense<0.000000e+00> : vector<256xf32>
    %21 = vector.multi_reduction <add>, %20, %cst_13 [1] : vector<256x256xf32> to vector<256xf32>
    %22 = vector.shape_cast %21 : vector<256xf32> to vector<256x1xf32>
    %cst_14 = arith.constant 2.560000e+02 : f32
    %23 = vector.broadcast %cst_14 : f32 to vector<256x1xf32>
    %24 = arith.divf %22, %23 : vector<256x1xf32>
    %cst_15 = arith.constant 9.99999997E-7 : f32
    %25 = vector.broadcast %cst_15 : f32 to vector<256x1xf32>
    %26 = arith.addf %24, %25 : vector<256x1xf32>
    %27 = math.rsqrt %26 : vector<256x1xf32>
    %28 = vector.broadcast %27 : vector<256x1xf32> to vector<256x256xf32>
    %29 = arith.mulf %19, %28 : vector<256x256xf32>
    %c0_16 = arith.constant 0 : index
    %c0_17 = arith.constant 0 : index
    %30 = vector.load %arg6[%c0_16, %c0_17] : memref<1x256xf32, #tpu.memory_space<vmem>>, vector<1x256xf32>
    %31 = vector.broadcast %30 : vector<1x256xf32> to vector<256x256xf32>
    %32 = arith.mulf %29, %31 : vector<256x256xf32>
    %c0_18 = arith.constant 0 : index
    %c0_19 = arith.constant 0 : index
    %33 = vector.load %arg7[%c0_18, %c0_19] : memref<1x256xf32, #tpu.memory_space<vmem>>, vector<1x256xf32>
    %34 = vector.broadcast %33 : vector<1x256xf32> to vector<256x256xf32>
    %35 = arith.addf %32, %34 : vector<256x256xf32>
    %c0_20 = arith.constant 0 : index
    %c0_21 = arith.constant 0 : index
    %36 = vector.load %arg8[%c0_20, %c0_21] : memref<256x256xf32, #tpu.memory_space<vmem>>, vector<256x256xf32>
    tpu.vector_store %arg8[%c0_20, %c0_21], %35 {strides = array<i32>} : memref<256x256xf32, #tpu.memory_space<vmem>>, vector<256x256xf32>,
    return
  }
  func.func @transform_0(%arg0: i32) -> (i32, i32) {
    %c0_i32 = arith.constant 0 : i32
    %c0_i32_0 = arith.constant 0 : i32
    return %arg0, %c0_i32 : i32, i32
  }
  func.func @transform_1(%arg0: i32) -> (i32, i32) {
    %c0_i32 = arith.constant 0 : i32
    %c0_i32_0 = arith.constant 0 : i32
    %c0_i32_1 = arith.constant 0 : i32
    return %c0_i32, %c0_i32_0 : i32, i32
  }
  func.func @transform_2(%arg0: i32) -> (i32, i32) {
    %c0_i32 = arith.constant 0 : i32
    %c0_i32_0 = arith.constant 0 : i32
    %c0_i32_1 = arith.constant 0 : i32
    return %c0_i32, %c0_i32_0 : i32, i32
  }
  func.func @transform_3(%arg0: i32) -> (i32, i32) {
    %c0_i32 = arith.constant 0 : i32
    %c0_i32_0 = arith.constant 0 : i32
    %c0_i32_1 = arith.constant 0 : i32
    return %c0_i32, %c0_i32_0 : i32, i32
  }
  func.func @transform_4(%arg0: i32) -> (i32, i32) {
    %c0_i32 = arith.constant 0 : i32
    %c0_i32_0 = arith.constant 0 : i32
    %c0_i32_1 = arith.constant 0 : i32
    return %c0_i32, %c0_i32_0 : i32, i32
  }
  func.func @transform_5(%arg0: i32) -> (i32, i32) {
    %c0_i32 = arith.constant 0 : i32
    %c0_i32_0 = arith.constant 0 : i32
    %c0_i32_1 = arith.constant 0 : i32
    return %c0_i32, %c0_i32_0 : i32, i32
  }
  func.func @transform_6(%arg0: i32) -> (i32, i32) {
    %c0_i32 = arith.constant 0 : i32
    %c0_i32_0 = arith.constant 0 : i32
    %c0_i32_1 = arith.constant 0 : i32
    return %c0_i32, %c0_i32_0 : i32, i32
  }
  func.func @transform_7(%arg0: i32) -> (i32, i32) {
    %c0_i32 = arith.constant 0 : i32
    %c0_i32_0 = arith.constant 0 : i32
    return %arg0, %c0_i32 : i32, i32
  }
}

</mosaic_0001>

<bundles_post_ra>
// kernel: tpu_custom_call.1
= control target key start
LH: loop header
LB: loop body
LE: loop exit
PB: predicated region body
PF: predicated region fallthrough
CT: control target
= control target key end

     0   :  { %s7556_s0 = inlined_call_operand.hbm [shape: f32[512,256], index: 0, kind: input, shape index: {}]   ;;  %s7557_s1 = inlined_call_operand.hbm [shape: f32[256,512], index: 1, kind: input, shape index: {}]   ;;  %s7558_s2 = inlined_call_operand.hbm [shape: f32[1,512], index: 2, kind: input, shape index: {}]   ;;  %s7559_s3 = inlined_call_operand.hbm [shape: f32[512,256], index: 3, kind: input, shape index: {}]   ;;  %s7560_s4 = inlined_call_operand.vmem [shape: f32[1,256], index: 4, kind: input, shape index: {}]   ;;  %s7561_s5 = inlined_call_operand.vmem [shape: f32[1,256], index: 5, kind: input, shape index: {}]   ;;  %s7562_s6 = inlined_call_operand.hbm [shape: f32[1,256], index: 6, kind: input, shape index: {}]   ;;  %s7563_s7 = inlined_call_operand.hbm [shape: f32[512,256], index: 7, kind: output, shape index: {}]  }
   0x1   :  { %7859 = sst [smem:[#allocation141_spill]] %s7557_s1 }
   0x2   :  { %12 = vsyncpa [#allocation3], 0 }
   0x3   :  { %14 = vsyncpa [#allocation3 + $0x1], 0 }
   0x4   :  { %15 = vsyncpa [#allocation6], 0 }
   0x5   :  { %16 = vsyncpa [#allocation9], 0 }
   0x6   :  { %17 = vsyncpa [#allocation4], 0 }
   0x7   :  { %19 = vsyncpa [#allocation4 + $0x1], 0  ;;  %s4370_s24 = smov 0   ;;  %s4372_s25 = smov 0  }
   0x8   :  { %s4374_s26 = smov 0   ;;  %s4376_s27 = smov 0  }
   0x9 LB: > { %s4391_s28 = sadd.s32 4294967295, %s4317_s27   ;;  %s3839_s29 = sadd.s32 4294967294, %s4317_s27   ;;  %s4317_s27 = sphi %s4376_s27, %s8487_s27   ;;  %s4313_s26 = sphi %s4374_s26, %s8486_s26   ;;  %s4309_s25 = sphi %s4372_s25, %s8485_s25   ;;  %s4305_s24 = sphi %s4370_s24, %s8484_s24  }
   0xa   : > { %p45_p0 = scmp.ne.s32.totalorder %s4309_s25, %s4305_s24  ;;  %p46_p1 = scmp.eq.s32.totalorder %s4391_s28, 0 }
   0xb   : > { %p195_p2 = scmp.eq.s32.totalorder %s4391_s28, 1  ;;  %p201_p3 = scmp.eq.s32.totalorder %s3839_s29, 1 }
   0xc   : > { %p4400_p4 = por %p46_p1, %p45_p0  ;;  %p3840_p5 = scmp.ge.s32.totalorder %s4317_s27, 1 }
   0xd   : > { %p4405_p6 = por %p201_p3, %p45_p0  ;;  %p208_p7 = scmp.lt.s32.totalorder %s4317_s27, 3 }
   0xe   : > { %s7862_s1 = sld [smem:[#allocation141_spill]]  ;;  %s4319_s13 = smov [#allocation5]  }
   0xf   : > { %p4413_p8 = pnand %p3840_p5, %p208_p7  ;;  %s221_s14 = sshll.u32 %s4319_s13, 4  ;;  %s222_s14 = int_to_ptr.vmem [resolvable:$true] %s221_s14 }
  0x10   : > { %s245_s18 = sshll.u32 %s7559_s3, 4  ;;  %s4320_s19 = smov 512   ;;  %s246_s18 = int_to_ptr.hbm [resolvable:$true] %s245_s18 }
  0x11   : > { %p3887_p9 = pneg %p4413_p8  ;;  %s4321_s20 = smov 32  }
  0x12   : > { %s4322_s21 = smov [#allocation8]   ;;  %s7564_s23 = smov 256  }
  0x13   : > { %p4421_p10 = pnand %p3887_p9, %p46_p1  ;;  %s247_s22 = sshll.u32 %s4322_s21, 4  ;;  %s248_s22 = int_to_ptr.vmem [resolvable:$true] %s247_s22 }
  0x14   : > { %s219_s11 = sshll.u32 %s7862_s1, 4  ;;  %s7565_s29 = smov 16   ;;  %s220_s11 = int_to_ptr.hbm [resolvable:$true] %s219_s11 }
  0x15   : > { %3890 = dma.hbm_to_vmem [thread:$0]  (!%p4421_p10), %s220_s11, 16384, %s222_s14, [#allocation6], %s4320_s19, %s4320_s19, %s4321_s20  }
  0x16   : > { %3896 = dma.hbm_to_vmem [thread:$0]  (!%p4421_p10), %s246_s18, 16384, %s248_s22, [#allocation9], %s7564_s23, %s7564_s23, %s7565_s29  }
  0x17   : > { %s234_s11 = sshll.u32 %s7558_s2, 4  ;;  %s4325_s13 = smov [#allocation7]   ;;  %s235_s11 = int_to_ptr.hbm [resolvable:$true] %s234_s11 }
  0x18   : > { %s236_s14 = sshll.u32 %s4325_s13, 4  ;;  %s266_s19 = sshll.u32 %s7562_s6, 4  ;;  %s237_s14 = int_to_ptr.vmem [resolvable:$true] %s236_s14  ;;  %s267_s19 = int_to_ptr.hbm [resolvable:$true] %s266_s19 }
  0x19   : > { %3893 = dma.hbm_to_vmem [thread:$0]  (!%p4421_p10), %s235_s11, 64, %s237_s14, [#allocation6]  }
  0x1a   : > { %s4326_s18 = smov [#allocation10]   ;;  %s4447_s21 = sadd.s32 1, %s4317_s27  }
  0x1b   : > { %s268_s20 = sshll.u32 %s4326_s18, 4  ;;  %s32_s22 = sadd.s32 1, %s4313_s26  ;;  %s269_s20 = int_to_ptr.vmem [resolvable:$true] %s268_s20 }
  0x1c   : > { %3899 = dma.hbm_to_vmem [thread:$0]  (!%p4421_p10), %s267_s19, 32, %s269_s20, [#allocation9]  }
  0x1d   : > { %s29_s9 = ssub.s32 %s4317_s27, %s4447_s21  ;;  %p39_p12 = scmp.ne.s32.totalorder %s4313_s26, %s4309_s25 }
  0x1e   : > { %p30_p13 = scmp.eq.s32.totalorder %s29_s9, 0  ;;  %p40_p0 = scmp.eq.s32.totalorder %s4317_s27, 0 }
  0x1f   : > { %p4457_p3 = por %p195_p2, %p39_p12  ;;  %p3912_p5 = scmp.lt.s32.totalorder %s4317_s27, 2 }
  0x20   : > { %s4463_s11 = scalar_select %p30_p13, %s4313_s26, %s32_s22  }
  0x21   : > { %p41_p7 = por %p40_p0, %p39_p12  ;;  %s279_s13 = sand.u32 1, %s4313_s26  }
  0x22   : > { %s3846_s15 = sshll.u32 %s279_s13, 9  ;;  %s3864_s14 = sshll.u32 %s4317_s27, 9 }
  0x23   : > { %s289_s19 = scalar_lea.hbm %s7556_s0, %s3864_s14  ;;  %s283_s18 = scalar_lea.vmem [#allocation2], %s3846_s15 }
  0x24   : > { %s292_s20 = sshll.u32 %s283_s18, 4  ;;  %s290_s9 = sshll.u32 %s289_s19, 4  ;;  %s293_s20 = int_to_ptr.vmem [resolvable:$true] %s292_s20  ;;  %s291_s9 = int_to_ptr.hbm [resolvable:$true] %s290_s9 }
  0x25   : > { %p4470_p2 = pnand %p3912_p5, %p41_p7  ;;  %s280_s22 = scalar_lea.sflag [#allocation3], %s279_s13 }
  0x26   : > { %s4213_s29 = sshra.s32 %s291_s9, 4  ;;  %s4220_s16 = scalar_lea.hbm %s7556_s0, 1024  ;;  %s4214_s29 = int_to_ptr.hbm [resolvable:$true] %s4213_s29 }
  0x27   : > { %s4215_s1 = scalar_lea.hbm %s4214_s29, 512  ;;  %p4217_p10 = pneg %p4470_p2 }
  0x28   : > { %p4216_p9 = scmp.ne.s32.totalorder %s4214_s29, %s4215_s1  ;;  %p4221_p0 = scmp.lt.s32.totalorder %s4214_s29, %s7556_s0 }
  0x29   : > { %p4222_p5 = scmp.lt.s32.totalorder %s4220_s16, %s4215_s1 }
  0x2a   : > { %p4218_p12 = pnand %p4217_p10, %p4216_p9 }
  0x2b   : > { %p4223_p7 = por %p4222_p5, %p4221_p0 }
  0x2c   : > { %p4219_p13 = pneg %p4218_p12 }
  0x2e   : > { %p4224_p11 = pnand %p4223_p7, %p4219_p13 }
  0x30   : > { %4227 = shalt.err (!%p4224_p11)
}
  0x31   : > { %s7867_s13 = smov 16   ;;  %s7868_s18 = smov 256  }
  0x32   : > { %3903 = dma.hbm_to_vmem [thread:$0]  (!%p4470_p2), %s291_s9, 8192, %s293_s20, %s280_s22, %s7868_s18, %s7868_s18, %s7867_s13  }
  0x33   : > { %304 = sbr.rel (%p4413_p8) target bundleno = 1528 (0x5f8), region = 48 }
  0x38   : > { %s4490_s14 = sand.u32 1, %s4309_s25  }
  0x39   : > { %s3851_s1 = sshll.u32 %s4490_s14, 9  ;;  %s307_s29 = scalar_lea.sflag [#allocation3], %s4490_s14 }
  0x3a   : > { %s4496_s15 = scalar_lea.vmem [#allocation2], %s3851_s1 }
  0x3b   : > { %4288 = dma.done.wait (%p4400_p4), %s307_s29, 8192  }
  0x3c   : > { %4290 = vsyncadd (%p4400_p4), %s307_s29, 4294959104 }
  0x3d   : > { %4292 = dma.done.wait (%p46_p1), [#allocation6], 16448  }
  0x3e   : > { %4294 = vsyncadd (%p46_p1), [#allocation6], 4294950848 }
  0x3f   : > { %4296 = dma.done.wait (%p46_p1), [#allocation9], 16416  }
  0x40   : > { %4298 = vsyncadd (%p46_p1), [#allocation9], 4294950880  ;;  %v488_v0 = vld [vmem:[#allocation5 + $0x1e0] sm:$0xff]  ;;  %v489_v2 = vld [vmem:[#allocation5 + $0x1e8] sm:$0xff]  ;;  %s7052_s16 = scalar_lea.vmem [#allocation11], %s3851_s1  ;;  %s3866_s17 = sshll.u32 %s4391_s28, 9 }
  0x41   : > { %v552_v1 = vld [vmem:[#allocation5 + $0x3e0] sm:$0xff]  ;;  %566 = vmatpush.msra.mxu0 %v488_v0  ;;  %v553_v3 = vld [vmem:[#allocation5 + $0x3e8] sm:$0xff]  ;;  %792 = vmatpush.msra.mxu2 %v489_v2  ;;  %v491_v2 = vld [vmem:[#allocation5 + $0x1f8] sm:$0xff]  ;;  %s3724_s18 = scalar_lea.hbm %s7563_s7, %s3866_s17  ;;  %s3725_s28 = sshll.u32 %s7052_s16, 4  ;;  %s3726_s28 = int_to_ptr.vmem [resolvable:$true] %s3725_s28 }
  0x42   : > { %679 = vmatpush.msra.mxu1 %v552_v1  ;;  %v484_v4 = vld [vmem:[#allocation5 + $0x1c0] sm:$0xff]  ;;  %905 = vmatpush.msra.mxu3 %v553_v3  ;;  %v485_v6 = vld [vmem:[#allocation5 + $0x1c8] sm:$0xff]  ;;  %v490_v3 = vld [vmem:[#allocation5 + $0x1f0] sm:$0xff]  ;;  %s3727_s1 = sshll.u32 %s3724_s18, 4  ;;  %s3712_s29 = scalar_lea.sflag [#allocation4], %s4490_s14  ;;  %s3728_s1 = int_to_ptr.hbm [resolvable:$true] %s3727_s1 }
  0x43   : > { %v548_v5 = vld [vmem:[#allocation5 + $0x3c0] sm:$0xff]  ;;  %v549_v7 = vld [vmem:[#allocation5 + $0x3c8] sm:$0xff]  ;;  %567 = vmatpush.msra.mxu0 %v484_v4  ;;  %793 = vmatpush.msra.mxu2 %v485_v6  ;;  %v555_v4 = vld [vmem:[#allocation5 + $0x3f8] sm:$0xff]  ;;  %s4263_s20 = scalar_lea.hbm %s7563_s7, 1024 }
  0x44   : > { %v480_v8 = vld [vmem:[#allocation5 + $0x1a0] sm:$0xff]  ;;  %680 = vmatpush.msra.mxu1 %v548_v5  ;;  %v481_v10 = vld [vmem:[#allocation5 + $0x1a8] sm:$0xff]  ;;  %906 = vmatpush.msra.mxu3 %v549_v7  ;;  %v554_v5 = vld [vmem:[#allocation5 + $0x3f0] sm:$0xff] }
  0x45   : > { %v544_v9 = vld [vmem:[#allocation5 + $0x3a0] sm:$0xff]  ;;  %v545_v11 = vld [vmem:[#allocation5 + $0x3a8] sm:$0xff]  ;;  %568 = vmatpush.msra.mxu0 %v480_v8  ;;  %794 = vmatpush.msra.mxu2 %v481_v10  ;;  %v487_v6 = vld [vmem:[#allocation5 + $0x1d8] sm:$0xff] }
  0x46   : > { %v476_v12 = vld [vmem:[#allocation5 + $0x180] sm:$0xff]  ;;  %681 = vmatpush.msra.mxu1 %v544_v9  ;;  %v477_v14 = vld [vmem:[#allocation5 + $0x188] sm:$0xff]  ;;  %907 = vmatpush.msra.mxu3 %v545_v11  ;;  %v486_v7 = vld [vmem:[#allocation5 + $0x1d0] sm:$0xff] }
  0x47   : > { %v540_v13 = vld [vmem:[#allocation5 + $0x380] sm:$0xff]  ;;  %v541_v15 = vld [vmem:[#allocation5 + $0x388] sm:$0xff]  ;;  %569 = vmatpush.msra.mxu0 %v476_v12  ;;  %795 = vmatpush.msra.mxu2 %v477_v14  ;;  %v551_v8 = vld [vmem:[#allocation5 + $0x3d8] sm:$0xff] }
  0x48   : > { %v472_v16 = vld [vmem:[#allocation5 + $0x160] sm:$0xff]  ;;  %682 = vmatpush.msra.mxu1 %v540_v13  ;;  %v473_v18 = vld [vmem:[#allocation5 + $0x168] sm:$0xff]  ;;  %908 = vmatpush.msra.mxu3 %v541_v15  ;;  %v550_v9 = vld [vmem:[#allocation5 + $0x3d0] sm:$0xff] }
  0x49   : > { %v536_v17 = vld [vmem:[#allocation5 + $0x360] sm:$0xff]  ;;  %v537_v19 = vld [vmem:[#allocation5 + $0x368] sm:$0xff]  ;;  %570 = vmatpush.msra.mxu0 %v472_v16  ;;  %796 = vmatpush.msra.mxu2 %v473_v18  ;;  %v483_v10 = vld [vmem:[#allocation5 + $0x1b8] sm:$0xff] }
  0x4a   : > { %v468_v20 = vld [vmem:[#allocation5 + $0x140] sm:$0xff]  ;;  %683 = vmatpush.msra.mxu1 %v536_v17  ;;  %v469_v22 = vld [vmem:[#allocation5 + $0x148] sm:$0xff]  ;;  %909 = vmatpush.msra.mxu3 %v537_v19  ;;  %v482_v11 = vld [vmem:[#allocation5 + $0x1b0] sm:$0xff] }
  0x4b   : > { %v532_v21 = vld [vmem:[#allocation5 + $0x340] sm:$0xff]  ;;  %v533_v23 = vld [vmem:[#allocation5 + $0x348] sm:$0xff]  ;;  %571 = vmatpush.msra.mxu0 %v468_v20  ;;  %797 = vmatpush.msra.mxu2 %v469_v22  ;;  %v547_v12 = vld [vmem:[#allocation5 + $0x3b8] sm:$0xff] }
  0x4c   : > { %v464_v24 = vld [vmem:[#allocation5 + $0x120] sm:$0xff]  ;;  %684 = vmatpush.msra.mxu1 %v532_v21  ;;  %v465_v26 = vld [vmem:[#allocation5 + $0x128] sm:$0xff]  ;;  %910 = vmatpush.msra.mxu3 %v533_v23  ;;  %v546_v13 = vld [vmem:[#allocation5 + $0x3b0] sm:$0xff] }
  0x4d   : > { %v528_v25 = vld [vmem:[#allocation5 + $0x320] sm:$0xff]  ;;  %v529_v27 = vld [vmem:[#allocation5 + $0x328] sm:$0xff]  ;;  %572 = vmatpush.msra.mxu0 %v464_v24  ;;  %798 = vmatpush.msra.mxu2 %v465_v26  ;;  %v4521_v14 = vld [vmem:[%s4496_s15 + $0x10] sm:$0xff] }
  0x4e   : > { %v460_v28 = vld [vmem:[#allocation5 + $0x100] sm:$0xff]  ;;  %685 = vmatpush.msra.mxu1 %v528_v25  ;;  %v461_v30 = vld [vmem:[#allocation5 + $0x108] sm:$0xff]  ;;  %911 = vmatpush.msra.mxu3 %v529_v27  ;;  %v4524_v15 = vld [vmem:[%s4496_s15 + $0x18] sm:$0xff] }
  0x4f   : > { %v524_v29 = vld [vmem:[#allocation5 + $0x300] sm:$0xff]  ;;  %v525_v31 = vld [vmem:[#allocation5 + $0x308] sm:$0xff]  ;;  %573 = vmatpush.msra.mxu0 %v460_v28  ;;  %799 = vmatpush.msra.mxu2 %v461_v30  ;;  %v479_v18 = vld [vmem:[#allocation5 + $0x198] sm:$0xff] }
  0x50   : > { %v456_v32 = vld [vmem:[#allocation5 + $0xe0] sm:$0xff]  ;;  %686 = vmatpush.msra.mxu1 %v524_v29  ;;  %v457_v34 = vld [vmem:[#allocation5 + $0xe8] sm:$0xff]  ;;  %912 = vmatpush.msra.mxu3 %v525_v31  ;;  %v478_v19 = vld [vmem:[#allocation5 + $0x190] sm:$0xff] }
  0x51   : > { %v520_v33 = vld [vmem:[#allocation5 + $0x2e0] sm:$0xff]  ;;  %v521_v35 = vld [vmem:[#allocation5 + $0x2e8] sm:$0xff]  ;;  %574 = vmatpush.msra.mxu0 %v456_v32  ;;  %800 = vmatpush.msra.mxu2 %v457_v34  ;;  %v543_v20 = vld [vmem:[#allocation5 + $0x398] sm:$0xff] }
  0x52   : > { %v452_v36 = vld [vmem:[#allocation5 + $0xc0] sm:$0xff]  ;;  %687 = vmatpush.msra.mxu1 %v520_v33  ;;  %v453_v38 = vld [vmem:[#allocation5 + $0xc8] sm:$0xff]  ;;  %913 = vmatpush.msra.mxu3 %v521_v35  ;;  %v542_v21 = vld [vmem:[#allocation5 + $0x390] sm:$0xff] }
  0x53   : > { %v516_v37 = vld [vmem:[#allocation5 + $0x2c0] sm:$0xff]  ;;  %v517_v39 = vld [vmem:[#allocation5 + $0x2c8] sm:$0xff]  ;;  %575 = vmatpush.msra.mxu0 %v452_v36  ;;  %801 = vmatpush.msra.mxu2 %v453_v38  ;;  %v4541_v22 = vld [vmem:[%s4496_s15 + $0x30] sm:$0xff] }
  0x54   : > { %v448_v40 = vld [vmem:[#allocation5 + $0xa0] sm:$0xff]  ;;  %688 = vmatpush.msra.mxu1 %v516_v37  ;;  %v449_v42 = vld [vmem:[#allocation5 + $0xa8] sm:$0xff]  ;;  %914 = vmatpush.msra.mxu3 %v517_v39  ;;  %v4544_v23 = vld [vmem:[%s4496_s15 + $0x38] sm:$0xff] }
  0x55   : > { %v512_v41 = vld [vmem:[#allocation5 + $0x2a0] sm:$0xff]  ;;  %v513_v43 = vld [vmem:[#allocation5 + $0x2a8] sm:$0xff]  ;;  %576 = vmatpush.msra.mxu0 %v448_v40  ;;  %802 = vmatpush.msra.mxu2 %v449_v42  ;;  %v475_v26 = vld [vmem:[#allocation5 + $0x178] sm:$0xff] }
  0x56   : > { %v444_v44 = vld [vmem:[#allocation5 + $0x80] sm:$0xff]  ;;  %689 = vmatpush.msra.mxu1 %v512_v41  ;;  %v445_v46 = vld [vmem:[#allocation5 + $0x88] sm:$0xff]  ;;  %915 = vmatpush.msra.mxu3 %v513_v43  ;;  %v474_v27 = vld [vmem:[#allocation5 + $0x170] sm:$0xff] }
  0x57   : > { %v508_v45 = vld [vmem:[#allocation5 + $0x280] sm:$0xff]  ;;  %v509_v47 = vld [vmem:[#allocation5 + $0x288] sm:$0xff]  ;;  %577 = vmatpush.msra.mxu0 %v444_v44  ;;  %803 = vmatpush.msra.mxu2 %v445_v46  ;;  %v539_v28 = vld [vmem:[#allocation5 + $0x378] sm:$0xff] }
  0x58   : > { %v440_v48 = vld [vmem:[#allocation5 + $0x60] sm:$0xff]  ;;  %690 = vmatpush.msra.mxu1 %v508_v45  ;;  %v441_v50 = vld [vmem:[#allocation5 + $0x68] sm:$0xff]  ;;  %916 = vmatpush.msra.mxu3 %v509_v47  ;;  %v538_v29 = vld [vmem:[#allocation5 + $0x370] sm:$0xff] }
  0x59   : > { %v504_v49 = vld [vmem:[#allocation5 + $0x260] sm:$0xff]  ;;  %v505_v51 = vld [vmem:[#allocation5 + $0x268] sm:$0xff]  ;;  %578 = vmatpush.msra.mxu0 %v440_v48  ;;  %804 = vmatpush.msra.mxu2 %v441_v50  ;;  %v4561_v30 = vld [vmem:[%s4496_s15 + $0x50] sm:$0xff] }
  0x5a   : > { %v436_v52 = vld [vmem:[#allocation5 + $0x40] sm:$0xff]  ;;  %691 = vmatpush.msra.mxu1 %v504_v49  ;;  %v437_v54 = vld [vmem:[#allocation5 + $0x48] sm:$0xff]  ;;  %917 = vmatpush.msra.mxu3 %v505_v51  ;;  %v4564_v31 = vld [vmem:[%s4496_s15 + $0x58] sm:$0xff] }
  0x5b   : > { %v500_v53 = vld [vmem:[#allocation5 + $0x240] sm:$0xff]  ;;  %v501_v55 = vld [vmem:[#allocation5 + $0x248] sm:$0xff]  ;;  %579 = vmatpush.msra.mxu0 %v436_v52  ;;  %805 = vmatpush.msra.mxu2 %v437_v54  ;;  %v471_v34 = vld [vmem:[#allocation5 + $0x158] sm:$0xff] }
  0x5c   : > { %v432_v56 = vld [vmem:[#allocation5 + $0x20] sm:$0xff]  ;;  %692 = vmatpush.msra.mxu1 %v500_v53  ;;  %v433_v58 = vld [vmem:[#allocation5 + $0x28] sm:$0xff]  ;;  %918 = vmatpush.msra.mxu3 %v501_v55  ;;  %v470_v35 = vld [vmem:[#allocation5 + $0x150] sm:$0xff] }
  0x5d   : > { %v496_v57 = vld [vmem:[#allocation5 + $0x220] sm:$0xff]  ;;  %v497_v59 = vld [vmem:[#allocation5 + $0x228] sm:$0xff]  ;;  %580 = vmatpush.msra.mxu0 %v432_v56  ;;  %806 = vmatpush.msra.mxu2 %v433_v58  ;;  %v535_v36 = vld [vmem:[#allocation5 + $0x358] sm:$0xff] }
  0x5e   : > { %v428_v60 = vld [vmem:[#allocation5] sm:$0xff]  ;;  %693 = vmatpush.msra.mxu1 %v496_v57  ;;  %v429_v62 = vld [vmem:[#allocation5 + $0x8] sm:$0xff]  ;;  %919 = vmatpush.msra.mxu3 %v497_v59  ;;  %v534_v37 = vld [vmem:[#allocation5 + $0x350] sm:$0xff] }
  0x5f   : > { %v492_v61 = vld [vmem:[#allocation5 + $0x200] sm:$0xff]  ;;  %v493_v63 = vld [vmem:[#allocation5 + $0x208] sm:$0xff]  ;;  %581 = vmatpush.msra.mxu0 %v428_v60  ;;  %807 = vmatpush.msra.mxu2 %v429_v62  ;;  %v4581_v38 = vld [vmem:[%s4496_s15 + $0x70] sm:$0xff] }
  0x60   : > { %v4511_v0 = vld [vmem:[%s4496_s15] sm:$0xff]  ;;  %v4514_v1 = vld [vmem:[%s4496_s15 + $0x8] sm:$0xff]  ;;  %694 = vmatpush.msra.mxu1 %v492_v61  ;;  %920 = vmatpush.msra.mxu3 %v493_v63  ;;  %v4584_v39 = vld [vmem:[%s4496_s15 + $0x78] sm:$0xff] }
  0x61   : > { %582 = vmatmul.f32.vlgmr.msra.gmra.mxu0 %v4511_v0  ;;  %695 = vmatmul.f32.vlgmr.msra.gmra.mxu1 %v4514_v1  ;;  %v4531_v16 = vld [vmem:[%s4496_s15 + $0x20] sm:$0xff]  ;;  %v4534_v17 = vld [vmem:[%s4496_s15 + $0x28] sm:$0xff]  ;;  %v467_v42 = vld [vmem:[#allocation5 + $0x138] sm:$0xff] }
  0x62   : > { %808 = vmatmul.f32.vlgmr.msra.gmra.mxu2 %v4511_v0  ;;  %921 = vmatmul.f32.vlgmr.msra.gmra.mxu3 %v4514_v1  ;;  %v4551_v24 = vld [vmem:[%s4496_s15 + $0x40] sm:$0xff]  ;;  %v4554_v25 = vld [vmem:[%s4496_s15 + $0x48] sm:$0xff]  ;;  %v466_v43 = vld [vmem:[#allocation5 + $0x130] sm:$0xff] }
  0x63   : > { %1244 = vmatpush.msrb.mxu2 %v491_v2  ;;  %1018 = vmatpush.msrb.mxu0 %v490_v3  ;;  %v4571_v32 = vld [vmem:[%s4496_s15 + $0x60] sm:$0xff]  ;;  %v4574_v33 = vld [vmem:[%s4496_s15 + $0x68] sm:$0xff]  ;;  %v531_v44 = vld [vmem:[#allocation5 + $0x338] sm:$0xff] }
  0x64   : > { %1357 = vmatpush.msrb.mxu3 %v555_v4  ;;  %1131 = vmatpush.msrb.mxu1 %v554_v5  ;;  %v4591_v40 = vld [vmem:[%s4496_s15 + $0x80] sm:$0xff]  ;;  %v4594_v41 = vld [vmem:[%s4496_s15 + $0x88] sm:$0xff]  ;;  %v530_v45 = vld [vmem:[#allocation5 + $0x330] sm:$0xff] }
  0x65   : > { %1245 = vmatpush.msrb.mxu2 %v487_v6  ;;  %1019 = vmatpush.msrb.mxu0 %v486_v7  ;;  %v4601_v46 = vld [vmem:[%s4496_s15 + $0x90] sm:$0xff]  ;;  %v4604_v47 = vld [vmem:[%s4496_s15 + $0x98] sm:$0xff]  ;;  %v4611_v48 = vld [vmem:[%s4496_s15 + $0xa0] sm:$0xff] }
  0x66   : > { %1358 = vmatpush.msrb.mxu3 %v551_v8  ;;  %1132 = vmatpush.msrb.mxu1 %v550_v9  ;;  %v4614_v49 = vld [vmem:[%s4496_s15 + $0xa8] sm:$0xff]  ;;  %v463_v50 = vld [vmem:[#allocation5 + $0x118] sm:$0xff]  ;;  %v462_v51 = vld [vmem:[#allocation5 + $0x110] sm:$0xff] }
  0x67   : > { %1246 = vmatpush.msrb.mxu2 %v483_v10  ;;  %1020 = vmatpush.msrb.mxu0 %v482_v11  ;;  %v527_v52 = vld [vmem:[#allocation5 + $0x318] sm:$0xff]  ;;  %v526_v53 = vld [vmem:[#allocation5 + $0x310] sm:$0xff]  ;;  %v4631_v56 = vld [vmem:[%s4496_s15 + $0xc0] sm:$0xff] }
  0x68   : > { %1359 = vmatpush.msrb.mxu3 %v547_v12  ;;  %1133 = vmatpush.msrb.mxu1 %v546_v13  ;;  %v4621_v54 = vld [vmem:[%s4496_s15 + $0xb0] sm:$0xff]  ;;  %v4624_v55 = vld [vmem:[%s4496_s15 + $0xb8] sm:$0xff]  ;;  %v4634_v57 = vld [vmem:[%s4496_s15 + $0xc8] sm:$0xff] }
  0x69   : > { %585 = vmatmul.f32.gmra.mxu0 %v4521_v14  ;;  %698 = vmatmul.f32.gmra.mxu1 %v4524_v15  ;;  %v459_v58 = vld [vmem:[#allocation5 + $0xf8] sm:$0xff]  ;;  %v458_v59 = vld [vmem:[#allocation5 + $0xf0] sm:$0xff]  ;;  %v4651_v2 = vld [vmem:[%s4496_s15 + $0xe0] sm:$0xff] }
  0x6a   : > { %811 = vmatmul.f32.gmra.mxu2 %v4521_v14  ;;  %924 = vmatmul.f32.gmra.mxu3 %v4524_v15  ;;  %v523_v60 = vld [vmem:[#allocation5 + $0x2f8] sm:$0xff]  ;;  %v4641_v61 = vld [vmem:[%s4496_s15 + $0xd0] sm:$0xff]  ;;  %v4654_v3 = vld [vmem:[%s4496_s15 + $0xe8] sm:$0xff] }
  0x6b   : > { %1247 = vmatpush.msrb.mxu2 %v479_v18  ;;  %1021 = vmatpush.msrb.mxu0 %v478_v19  ;;  %v4644_v62 = vld [vmem:[%s4496_s15 + $0xd8] sm:$0xff]  ;;  %v522_v63 = vld [vmem:[#allocation5 + $0x2f0] sm:$0xff]  ;;  %v4675_v12 = vld [vmem:[%s4496_s15 + $0x100] sm:$0xff] }
  0x6c   : > { %1360 = vmatpush.msrb.mxu3 %v543_v20  ;;  %1134 = vmatpush.msrb.mxu1 %v542_v21  ;;  %v455_v4 = vld [vmem:[#allocation5 + $0xd8] sm:$0xff]  ;;  %v454_v5 = vld [vmem:[#allocation5 + $0xd0] sm:$0xff]  ;;  %v4678_v13 = vld [vmem:[%s4496_s15 + $0x108] sm:$0xff] }
  0x6d   : > { %1248 = vmatpush.msrb.mxu2 %v475_v26  ;;  %1022 = vmatpush.msrb.mxu0 %v474_v27  ;;  %v519_v6 = vld [vmem:[#allocation5 + $0x2d8] sm:$0xff]  ;;  %v4661_v7 = vld [vmem:[%s4496_s15 + $0xf0] sm:$0xff]  ;;  %v4680_v18 = vld [vmem:[#allocation7] sm:$0xf] }
  0x6e   : > { %1361 = vmatpush.msrb.mxu3 %v539_v28  ;;  %1135 = vmatpush.msrb.mxu1 %v538_v29  ;;  %v4664_v8 = vld [vmem:[%s4496_s15 + $0xf8] sm:$0xff]  ;;  %v518_v9 = vld [vmem:[#allocation5 + $0x2d0] sm:$0xff]  ;;  %v4687_v19 = vperm.slane %v4680_v18, 1 }
  0x6f   : > { %1249 = vmatpush.msrb.mxu2 %v471_v34  ;;  %1023 = vmatpush.msrb.mxu0 %v470_v35  ;;  %v451_v20 = vld [vmem:[#allocation5 + $0xb8] sm:$0xff]  ;;  %v450_v21 = vld [vmem:[#allocation5 + $0xb0] sm:$0xff] }
  0x70   : > { %1362 = vmatpush.msrb.mxu3 %v535_v36  ;;  %1136 = vmatpush.msrb.mxu1 %v534_v37  ;;  %v515_v26 = vld [vmem:[#allocation5 + $0x2b8] sm:$0xff]  ;;  %v4695_v36 = vld [vmem:[%s4496_s15 + $0x110] sm:$0xff] }
  0x71   : > { %588 = vmatmul.f32.gmra.mxu0 %v4531_v16  ;;  %701 = vmatmul.f32.gmra.mxu1 %v4534_v17  ;;  %v4698_v37 = vld [vmem:[%s4496_s15 + $0x118] sm:$0xff] }
  0x72   : > { %814 = vmatmul.f32.gmra.mxu2 %v4531_v16  ;;  %927 = vmatmul.f32.gmra.mxu3 %v4534_v17 }
  0x73   : > { %1250 = vmatpush.msrb.mxu2 %v467_v42  ;;  %1024 = vmatpush.msrb.mxu0 %v466_v43  ;;  %v514_v43 = vld [vmem:[#allocation5 + $0x2b0] sm:$0xff] }
  0x74   : > { %1363 = vmatpush.msrb.mxu3 %v531_v44  ;;  %1137 = vmatpush.msrb.mxu1 %v530_v45 }
  0x75   : > { %1251 = vmatpush.msrb.mxu2 %v463_v50  ;;  %1025 = vmatpush.msrb.mxu0 %v462_v51 }
  0x76   : > { %1364 = vmatpush.msrb.mxu3 %v527_v52  ;;  %1138 = vmatpush.msrb.mxu1 %v526_v53  ;;  %v4712_v53 = vld [vmem:[%s4496_s15 + $0x120] sm:$0xff] }
  0x77   : > { %1252 = vmatpush.msrb.mxu2 %v459_v58  ;;  %1026 = vmatpush.msrb.mxu0 %v458_v59  ;;  %v4715_v58 = vld [vmem:[%s4496_s15 + $0x128] sm:$0xff] }
  0x78   : > { %1365 = vmatpush.msrb.mxu3 %v523_v60  ;;  %1139 = vmatpush.msrb.mxu1 %v522_v63  ;;  %v447_v60 = vld [vmem:[#allocation5 + $0x98] sm:$0xff]  ;;  %v446_v63 = vld [vmem:[#allocation5 + $0x90] sm:$0xff] }
  0x79   : > { %591 = vmatmul.f32.gmra.mxu0 %v4541_v22  ;;  %704 = vmatmul.f32.gmra.mxu1 %v4544_v23 }
  0x7a   : > { %817 = vmatmul.f32.gmra.mxu2 %v4541_v22  ;;  %930 = vmatmul.f32.gmra.mxu3 %v4544_v23 }
  0x7b   : > { %1253 = vmatpush.msrb.mxu2 %v455_v4  ;;  %1027 = vmatpush.msrb.mxu0 %v454_v5  ;;  %v511_v4 = vld [vmem:[#allocation5 + $0x298] sm:$0xff] }
  0x7c   : > { %1366 = vmatpush.msrb.mxu3 %v519_v6  ;;  %1140 = vmatpush.msrb.mxu1 %v518_v9 }
  0x7d   : > { %1254 = vmatpush.msrb.mxu2 %v451_v20  ;;  %1028 = vmatpush.msrb.mxu0 %v450_v21 }
  0x7e   : > { %1367 = vmatpush.msrb.mxu3 %v515_v26  ;;  %1141 = vmatpush.msrb.mxu1 %v514_v43  ;;  %v4729_v26 = vld [vmem:[%s4496_s15 + $0x130] sm:$0xff] }
  0x7f   : > { %1255 = vmatpush.msrb.mxu2 %v447_v60  ;;  %1029 = vmatpush.msrb.mxu0 %v446_v63  ;;  %v4746_v63 = vld [vmem:[%s4496_s15 + $0x140] sm:$0xff] }
  0x80   : > { %1368 = vmatpush.msrb.mxu3 %v511_v4  ;;  %v4749_v4 = vld [vmem:[%s4496_s15 + $0x148] sm:$0xff] }
  0x81   : > { %594 = vmatmul.f32.gmra.mxu0 %v4551_v24  ;;  %707 = vmatmul.f32.gmra.mxu1 %v4554_v25 }
  0x82   : > { %820 = vmatmul.f32.gmra.mxu2 %v4551_v24  ;;  %933 = vmatmul.f32.gmra.mxu3 %v4554_v25 }
  0x89   : > { %597 = vmatmul.f32.gmra.mxu0 %v4561_v30  ;;  %710 = vmatmul.f32.gmra.mxu1 %v4564_v31 }
  0x8a   : > { %823 = vmatmul.f32.gmra.mxu2 %v4561_v30  ;;  %936 = vmatmul.f32.gmra.mxu3 %v4564_v31 }
  0x91   : > { %600 = vmatmul.f32.gmra.mxu0 %v4571_v32  ;;  %713 = vmatmul.f32.gmra.mxu1 %v4574_v33 }
  0x92   : > { %826 = vmatmul.f32.gmra.mxu2 %v4571_v32  ;;  %939 = vmatmul.f32.gmra.mxu3 %v4574_v33 }
  0x99   : > { %603 = vmatmul.f32.gmra.mxu0 %v4581_v38  ;;  %716 = vmatmul.f32.gmra.mxu1 %v4584_v39 }
  0x9a   : > { %829 = vmatmul.f32.gmra.mxu2 %v4581_v38  ;;  %942 = vmatmul.f32.gmra.mxu3 %v4584_v39 }
  0xa1   : > { %606 = vmatmul.f32.gmra.mxu0 %v4591_v40  ;;  %719 = vmatmul.f32.gmra.mxu1 %v4594_v41 }
  0xa2   : > { %832 = vmatmul.f32.gmra.mxu2 %v4591_v40  ;;  %945 = vmatmul.f32.gmra.mxu3 %v4594_v41 }
  0xa9   : > { %609 = vmatmul.f32.gmra.mxu0 %v4601_v46  ;;  %722 = vmatmul.f32.gmra.mxu1 %v4604_v47 }
  0xaa   : > { %835 = vmatmul.f32.gmra.mxu2 %v4601_v46  ;;  %948 = vmatmul.f32.gmra.mxu3 %v4604_v47 }
  0xb1   : > { %612 = vmatmul.f32.gmra.mxu0 %v4611_v48  ;;  %725 = vmatmul.f32.gmra.mxu1 %v4614_v49 }
  0xb2   : > { %838 = vmatmul.f32.gmra.mxu2 %v4611_v48  ;;  %951 = vmatmul.f32.gmra.mxu3 %v4614_v49 }
  0xb9   : > { %615 = vmatmul.f32.gmra.mxu0 %v4621_v54  ;;  %728 = vmatmul.f32.gmra.mxu1 %v4624_v55 }
  0xba   : > { %841 = vmatmul.f32.gmra.mxu2 %v4621_v54  ;;  %954 = vmatmul.f32.gmra.mxu3 %v4624_v55 }
  0xc1   : > { %618 = vmatmul.f32.gmra.mxu0 %v4631_v56  ;;  %731 = vmatmul.f32.gmra.mxu1 %v4634_v57 }
  0xc2   : > { %844 = vmatmul.f32.gmra.mxu2 %v4631_v56  ;;  %957 = vmatmul.f32.gmra.mxu3 %v4634_v57 }
  0xc9   : > { %621 = vmatmul.f32.gmra.mxu0 %v4641_v61  ;;  %734 = vmatmul.f32.gmra.mxu1 %v4644_v62 }
  0xca   : > { %847 = vmatmul.f32.gmra.mxu2 %v4641_v61  ;;  %960 = vmatmul.f32.gmra.mxu3 %v4644_v62 }
  0xd1   : > { %624 = vmatmul.f32.gmra.mxu0 %v4651_v2  ;;  %737 = vmatmul.f32.gmra.mxu1 %v4654_v3 }
  0xd2   : > { %850 = vmatmul.f32.gmra.mxu2 %v4651_v2  ;;  %963 = vmatmul.f32.gmra.mxu3 %v4654_v3 }
  0xd9   : > { %627 = vmatmul.f32.gmra.mxu0 %v4661_v7  ;;  %740 = vmatmul.f32.gmra.mxu1 %v4664_v8 }
  0xda   : > { %853 = vmatmul.f32.gmra.mxu2 %v4661_v7  ;;  %966 = vmatmul.f32.gmra.mxu3 %v4664_v8 }
  0xde   : > { %v4670_v10 = vpop.f32.mrf.mxu0  ;;  %v4672_v11 = vpop.f32.mrf.mxu1 }
  0xdf   : > { %7869 = vst [vmem:[#allocation16_spill] sm:$0xff] %v4670_v10 }
  0xe0   : > { %7870 = vst [vmem:[#allocation17_spill] sm:$0xff] %v4672_v11 }
  0xe1   : > { %630 = vmatmul.f32.gmra.mxu0 %v4675_v12  ;;  %743 = vmatmul.f32.gmra.mxu1 %v4678_v13 }
  0xe2   : > { %856 = vmatmul.f32.gmra.mxu2 %v4675_v12  ;;  %969 = vmatmul.f32.gmra.mxu3 %v4678_v13 }
  0xe5   : > { %v809_v27 = vpop.f32.mrf.mxu2  ;;  %v922_v28 = vpop.f32.mrf.mxu3 }
  0xe6   : > { %v810_v29 = vadd.f32 %v809_v27, %v4687_v19  ;;  %v4690_v34 = vpop.f32.mrf.mxu0  ;;  %v4692_v35 = vpop.f32.mrf.mxu1  ;;  %v4732_v27 = vld [vmem:[%s4496_s15 + $0x138] sm:$0xff] }
  0xe7   : > { %7871 = vst [vmem:[#allocation18_spill] sm:$0xff] %v4690_v34  ;;  %v4831_v34 = vld [vmem:[%s4496_s15 + $0x190] sm:$0xff] }
  0xe8   : > { %7872 = vst [vmem:[#allocation19_spill] sm:$0xff] %v4692_v35  ;;  %v4700_v42 = vadd.f32 %v922_v28, %v810_v29  ;;  %v510_v29 = vld [vmem:[#allocation5 + $0x290] sm:$0xff] }
  0xe9   : > { %633 = vmatmul.f32.gmra.mxu0 %v4695_v36  ;;  %746 = vmatmul.f32.gmra.mxu1 %v4698_v37  ;;  %7897 = vst [vmem:[#allocation44_spill] sm:$0xff] %v4831_v34 }
  0xea   : > { %7873 = vst [vmem:[#allocation20_spill] sm:$0xff] %v4700_v42  ;;  %859 = vmatmul.f32.gmra.mxu2 %v4695_v36  ;;  %972 = vmatmul.f32.gmra.mxu3 %v4698_v37  ;;  %v4834_v42 = vld [vmem:[%s4496_s15 + $0x198] sm:$0xff] }
  0xeb   : > { %1142 = vmatpush.msrb.mxu1 %v510_v29  ;;  %v507_v29 = vld [vmem:[#allocation5 + $0x278] sm:$0xff]  ;;  %7898 = vst [vmem:[#allocation45_spill] sm:$0xff] %v4834_v42 }
  0xec   : > { %1369 = vmatpush.msrb.mxu3 %v507_v29 }
  0xed   : > { %v812_v44 = vpop.f32.mrf.mxu2  ;;  %v925_v45 = vpop.f32.mrf.mxu3 }
  0xee   : > { %v813_v50 = vadd.f32 %v812_v44, %v4687_v19  ;;  %v4707_v51 = vpop.f32.mrf.mxu0  ;;  %v4709_v52 = vpop.f32.mrf.mxu1 }
  0xef   : > { %7874 = vst [vmem:[#allocation21_spill] sm:$0xff] %v4707_v51  ;;  %v4800_v51 = vld [vmem:[%s4496_s15 + $0x178] sm:$0xff] }
  0xf0   : > { %7875 = vst [vmem:[#allocation22_spill] sm:$0xff] %v4709_v52  ;;  %v4717_v59 = vadd.f32 %v925_v45, %v813_v50  ;;  %v4797_v52 = vld [vmem:[%s4496_s15 + $0x170] sm:$0xff] }
  0xf1   : > { %636 = vmatmul.f32.gmra.mxu0 %v4712_v53  ;;  %749 = vmatmul.f32.gmra.mxu1 %v4715_v58 }
  0xf2   : > { %7876 = vst [vmem:[#allocation23_spill] sm:$0xff] %v4717_v59  ;;  %862 = vmatmul.f32.gmra.mxu2 %v4712_v53  ;;  %975 = vmatmul.f32.gmra.mxu3 %v4715_v58 }
  0xf5   : > { %v815_v5 = vpop.f32.mrf.mxu2  ;;  %v928_v6 = vpop.f32.mrf.mxu3 }
  0xf6   : > { %v816_v9 = vadd.f32 %v815_v5, %v4687_v19  ;;  %v4724_v20 = vpop.f32.mrf.mxu0  ;;  %v4726_v21 = vpop.f32.mrf.mxu1 }
  0xf7   : > { %7877 = vst [vmem:[#allocation24_spill] sm:$0xff] %v4724_v20 }
  0xf8   : > { %7878 = vst [vmem:[#allocation25_spill] sm:$0xff] %v4726_v21  ;;  %v4734_v28 = vadd.f32 %v928_v6, %v816_v9  ;;  %v443_v6 = vld [vmem:[#allocation5 + $0x78] sm:$0xff]  ;;  %v442_v9 = vld [vmem:[#allocation5 + $0x70] sm:$0xff] }
  0xf9   : > { %639 = vmatmul.f32.gmra.mxu0 %v4729_v26  ;;  %752 = vmatmul.f32.gmra.mxu1 %v4732_v27  ;;  %v4766_v21 = vld [vmem:[%s4496_s15 + $0x158] sm:$0xff] }
  0xfa   : > { %7879 = vst [vmem:[#allocation26_spill] sm:$0xff] %v4734_v28  ;;  %865 = vmatmul.f32.gmra.mxu2 %v4729_v26  ;;  %978 = vmatmul.f32.gmra.mxu3 %v4732_v27 }
  0xfb   : > { %1256 = vmatpush.msrb.mxu2 %v443_v6  ;;  %1030 = vmatpush.msrb.mxu0 %v442_v9  ;;  %v506_v6 = vld [vmem:[#allocation5 + $0x270] sm:$0xff] }
  0xfc   : > { %1143 = vmatpush.msrb.mxu1 %v506_v6  ;;  %v439_v6 = vld [vmem:[#allocation5 + $0x58] sm:$0xff] }
  0xfd   : > { %v818_v43 = vpop.f32.mrf.mxu2  ;;  %v931_v44 = vpop.f32.mrf.mxu3  ;;  %1257 = vmatpush.msrb.mxu2 %v439_v6 }
  0xfe   : > { %v819_v45 = vadd.f32 %v818_v43, %v4687_v19  ;;  %v4741_v50 = vpop.f32.mrf.mxu0  ;;  %v4743_v60 = vpop.f32.mrf.mxu1 }
  0xff   : > { %7880 = vst [vmem:[#allocation27_spill] sm:$0xff] %v4741_v50 }
 0x100   : > { %7881 = vst [vmem:[#allocation28_spill] sm:$0xff] %v4743_v60  ;;  %v4751_v5 = vadd.f32 %v931_v44, %v819_v45 }
 0x101   : > { %642 = vmatmul.f32.gmra.mxu0 %v4746_v63  ;;  %755 = vmatmul.f32.gmra.mxu1 %v4749_v4 }
 0x102   : > { %7882 = vst [vmem:[#allocation29_spill] sm:$0xff] %v4751_v5  ;;  %868 = vmatmul.f32.gmra.mxu2 %v4746_v63  ;;  %981 = vmatmul.f32.gmra.mxu3 %v4749_v4  ;;  %v4763_v5 = vld [vmem:[%s4496_s15 + $0x150] sm:$0xff] }
 0x105   : > { %v821_v43 = vpop.f32.mrf.mxu2  ;;  %v934_v60 = vpop.f32.mrf.mxu3 }
 0x106   : > { %v822_v44 = vadd.f32 %v821_v43, %v4687_v19  ;;  %v4758_v45 = vpop.f32.mrf.mxu0  ;;  %v4760_v50 = vpop.f32.mrf.mxu1 }
 0x107   : > { %7883 = vst [vmem:[#allocation30_spill] sm:$0xff] %v4758_v45 }
 0x108   : > { %7884 = vst [vmem:[#allocation31_spill] sm:$0xff] %v4760_v50  ;;  %v4768_v20 = vadd.f32 %v934_v60, %v822_v44  ;;  %v4780_v60 = vld [vmem:[%s4496_s15 + $0x160] sm:$0xff]  ;;  %v4783_v44 = vld [vmem:[%s4496_s15 + $0x168] sm:$0xff] }
 0x109   : > { %645 = vmatmul.f32.gmra.mxu0 %v4763_v5  ;;  %758 = vmatmul.f32.gmra.mxu1 %v4766_v21 }
 0x10a   : > { %7885 = vst [vmem:[#allocation32_spill] sm:$0xff] %v4768_v20  ;;  %871 = vmatmul.f32.gmra.mxu2 %v4763_v5  ;;  %984 = vmatmul.f32.gmra.mxu3 %v4766_v21 }
 0x10d   : > { %v824_v9 = vpop.f32.mrf.mxu2  ;;  %v937_v29 = vpop.f32.mrf.mxu3 }
 0x10e   : > { %v825_v43 = vadd.f32 %v824_v9, %v4687_v19  ;;  %v4775_v50 = vpop.f32.mrf.mxu0  ;;  %v4777_v45 = vpop.f32.mrf.mxu1  ;;  %v438_v9 = vld [vmem:[#allocation5 + $0x50] sm:$0xff] }
 0x10f   : > { %7886 = vst [vmem:[#allocation33_spill] sm:$0xff] %v4775_v50  ;;  %v503_v50 = vld [vmem:[#allocation5 + $0x258] sm:$0xff]  ;;  %1031 = vmatpush.msrb.mxu0 %v438_v9 }
 0x110   : > { %7887 = vst [vmem:[#allocation34_spill] sm:$0xff] %v4777_v45  ;;  %v4785_v20 = vadd.f32 %v937_v29, %v825_v43  ;;  %1370 = vmatpush.msrb.mxu3 %v503_v50  ;;  %v502_v50 = vld [vmem:[#allocation5 + $0x250] sm:$0xff] }
 0x111   : > { %648 = vmatmul.f32.gmra.mxu0 %v4780_v60  ;;  %761 = vmatmul.f32.gmra.mxu1 %v4783_v44 }
 0x112   : > { %7888 = vst [vmem:[#allocation35_spill] sm:$0xff] %v4785_v20  ;;  %874 = vmatmul.f32.gmra.mxu2 %v4780_v60  ;;  %987 = vmatmul.f32.gmra.mxu3 %v4783_v44 }
 0x113   : > { %1144 = vmatpush.msrb.mxu1 %v502_v50  ;;  %v435_v50 = vld [vmem:[#allocation5 + $0x38] sm:$0xff] }
 0x114   : > { %1258 = vmatpush.msrb.mxu2 %v435_v50 }
 0x115   : > { %v827_v45 = vpop.f32.mrf.mxu2  ;;  %v940_v28 = vpop.f32.mrf.mxu3 }
 0x116   : > { %v828_v29 = vadd.f32 %v827_v45, %v4687_v19  ;;  %v4792_v43 = vpop.f32.mrf.mxu0  ;;  %v4794_v20 = vpop.f32.mrf.mxu1 }
 0x117   : > { %7889 = vst [vmem:[#allocation36_spill] sm:$0xff] %v4792_v43 }
 0x118   : > { %7890 = vst [vmem:[#allocation37_spill] sm:$0xff] %v4794_v20  ;;  %v4802_v59 = vadd.f32 %v940_v28, %v828_v29  ;;  %v4814_v28 = vld [vmem:[%s4496_s15 + $0x180] sm:$0xff]  ;;  %v4817_v29 = vld [vmem:[%s4496_s15 + $0x188] sm:$0xff] }
 0x119   : > { %651 = vmatmul.f32.gmra.mxu0 %v4797_v52  ;;  %764 = vmatmul.f32.gmra.mxu1 %v4800_v51 }
 0x11a   : > { %7891 = vst [vmem:[#allocation38_spill] sm:$0xff] %v4802_v59  ;;  %877 = vmatmul.f32.gmra.mxu2 %v4797_v52  ;;  %990 = vmatmul.f32.gmra.mxu3 %v4800_v51 }
 0x11d   : > { %v830_v45 = vpop.f32.mrf.mxu2  ;;  %v943_v6 = vpop.f32.mrf.mxu3 }
 0x11e   : > { %v831_v9 = vadd.f32 %v830_v45, %v4687_v19  ;;  %v4809_v20 = vpop.f32.mrf.mxu0  ;;  %v4811_v43 = vpop.f32.mrf.mxu1  ;;  %v434_v45 = vld [vmem:[#allocation5 + $0x30] sm:$0xff] }
 0x11f   : > { %7892 = vst [vmem:[#allocation39_spill] sm:$0xff] %v4809_v20  ;;  %v499_v20 = vld [vmem:[#allocation5 + $0x238] sm:$0xff]  ;;  %1032 = vmatpush.msrb.mxu0 %v434_v45 }
 0x120   : > { %7893 = vst [vmem:[#allocation40_spill] sm:$0xff] %v4811_v43  ;;  %v4819_v59 = vadd.f32 %v943_v6, %v831_v9  ;;  %1371 = vmatpush.msrb.mxu3 %v499_v20  ;;  %v498_v20 = vld [vmem:[#allocation5 + $0x230] sm:$0xff] }
 0x121   : > { %654 = vmatmul.f32.gmra.mxu0 %v4814_v28  ;;  %767 = vmatmul.f32.gmra.mxu1 %v4817_v29 }
 0x122   : > { %7894 = vst [vmem:[#allocation41_spill] sm:$0xff] %v4819_v59  ;;  %880 = vmatmul.f32.gmra.mxu2 %v4814_v28  ;;  %993 = vmatmul.f32.gmra.mxu3 %v4817_v29 }
 0x123   : > { %1145 = vmatpush.msrb.mxu1 %v498_v20  ;;  %v431_v20 = vld [vmem:[#allocation5 + $0x18] sm:$0xff] }
 0x124   : > { %1259 = vmatpush.msrb.mxu2 %v431_v20 }
 0x125   : > { %v833_v43 = vpop.f32.mrf.mxu2  ;;  %v946_v35 = vpop.f32.mrf.mxu3 }
 0x126   : > { %v834_v6 = vadd.f32 %v833_v43, %v4687_v19  ;;  %v4826_v9 = vpop.f32.mrf.mxu0  ;;  %v4828_v59 = vpop.f32.mrf.mxu1 }
 0x127   : > { %7895 = vst [vmem:[#allocation42_spill] sm:$0xff] %v4826_v9 }
 0x128   : > { %7896 = vst [vmem:[#allocation43_spill] sm:$0xff] %v4828_v59  ;;  %v4836_v11 = vadd.f32 %v946_v35, %v834_v6  ;;  %v4848_v35 = vld [vmem:[%s4496_s15 + $0x1a0] sm:$0xff]  ;;  %v4851_v6 = vld [vmem:[%s4496_s15 + $0x1a8] sm:$0xff] }
 0x129   : > { %657 = vmatmul.f32.gmra.mxu0 %v4831_v34  ;;  %770 = vmatmul.f32.gmra.mxu1 %v4834_v42  ;;  %7902 = vst [vmem:[#allocation49_spill] sm:$0xff] %v4848_v35 }
 0x12a   : > { %7899 = vst [vmem:[#allocation46_spill] sm:$0xff] %v4836_v11  ;;  %883 = vmatmul.f32.gmra.mxu2 %v4831_v34  ;;  %996 = vmatmul.f32.gmra.mxu3 %v4834_v42  ;;  %v4865_v42 = vld [vmem:[%s4496_s15 + $0x1b0] sm:$0xff]  ;;  %v4936_v34 = vld [vmem:[%s4496_s15 + $0x1f8] sm:$0xff] }
 0x12b   : > { %7903 = vst [vmem:[#allocation50_spill] sm:$0xff] %v4851_v6 }
 0x12c   : > { %7907 = vst [vmem:[#allocation54_spill] sm:$0xff] %v4865_v42 }
 0x12d   : > { %v836_v43 = vpop.f32.mrf.mxu2  ;;  %v949_v50 = vpop.f32.mrf.mxu3  ;;  %7926 = vst [vmem:[#allocation73_spill] sm:$0xff] %v4936_v34 }
 0x12e   : > { %v837_v45 = vadd.f32 %v836_v43, %v4687_v19  ;;  %v4843_v59 = vpop.f32.mrf.mxu0  ;;  %v4845_v9 = vpop.f32.mrf.mxu1  ;;  %v430_v43 = vld [vmem:[#allocation5 + $0x10] sm:$0xff] }
 0x12f   : > { %7900 = vst [vmem:[#allocation47_spill] sm:$0xff] %v4843_v59  ;;  %v495_v59 = vld [vmem:[#allocation5 + $0x218] sm:$0xff]  ;;  %1033 = vmatpush.msrb.mxu0 %v430_v43 }
 0x130   : > { %7901 = vst [vmem:[#allocation48_spill] sm:$0xff] %v4845_v9  ;;  %v4853_v11 = vadd.f32 %v949_v50, %v837_v45  ;;  %1372 = vmatpush.msrb.mxu3 %v495_v59  ;;  %v494_v59 = vld [vmem:[#allocation5 + $0x210] sm:$0xff] }
 0x131   : > { %660 = vmatmul.f32.gmra.mxu0 %v4848_v35  ;;  %773 = vmatmul.f32.gmra.mxu1 %v4851_v6 }
 0x132   : > { %7904 = vst [vmem:[#allocation51_spill] sm:$0xff] %v4853_v11  ;;  %886 = vmatmul.f32.gmra.mxu2 %v4848_v35  ;;  %999 = vmatmul.f32.gmra.mxu3 %v4851_v6  ;;  %v4868_v35 = vld [vmem:[%s4496_s15 + $0x1b8] sm:$0xff] }
 0x133   : > { %7908 = vst [vmem:[#allocation55_spill] sm:$0xff] %v4868_v35  ;;  %1146 = vmatpush.msrb.mxu1 %v494_v59  ;;  %v1692_v59 = vld [vmem:[#allocation8 + $0x2f0] sm:$0xff] }
 0x134   : > { %1958 = vmatpush.msra.mxu2 %v1692_v59 }
 0x135   : > { %v839_v9 = vpop.f32.mrf.mxu2  ;;  %v952_v10 = vpop.f32.mrf.mxu3 }
 0x136   : > { %v840_v50 = vadd.f32 %v839_v9, %v4687_v19  ;;  %v4860_v45 = vpop.f32.mrf.mxu0  ;;  %v4862_v11 = vpop.f32.mrf.mxu1 }
 0x137   : > { %7905 = vst [vmem:[#allocation52_spill] sm:$0xff] %v4860_v45 }
 0x138   : > { %7906 = vst [vmem:[#allocation53_spill] sm:$0xff] %v4862_v11  ;;  %v4870_v6 = vadd.f32 %v952_v10, %v840_v50  ;;  %v4882_v10 = vld [vmem:[%s4496_s15 + $0x1c0] sm:$0xff]  ;;  %v4885_v50 = vld [vmem:[%s4496_s15 + $0x1c8] sm:$0xff] }
 0x139   : > { %663 = vmatmul.f32.gmra.mxu0 %v4865_v42  ;;  %776 = vmatmul.f32.gmra.mxu1 %v4868_v35  ;;  %7912 = vst [vmem:[#allocation59_spill] sm:$0xff] %v4882_v10 }
 0x13a   : > { %7909 = vst [vmem:[#allocation56_spill] sm:$0xff] %v4870_v6  ;;  %889 = vmatmul.f32.gmra.mxu2 %v4865_v42  ;;  %1002 = vmatmul.f32.gmra.mxu3 %v4868_v35  ;;  %v4899_v42 = vld [vmem:[%s4496_s15 + $0x1d0] sm:$0xff] }
 0x13b   : > { %7913 = vst [vmem:[#allocation60_spill] sm:$0xff] %v4885_v50 }
 0x13c   : > { %7917 = vst [vmem:[#allocation64_spill] sm:$0xff] %v4899_v42 }
 0x13d   : > { %v842_v9 = vpop.f32.mrf.mxu2  ;;  %v955_v20 = vpop.f32.mrf.mxu3 }
 0x13e   : > { %v843_v43 = vadd.f32 %v842_v9, %v4687_v19  ;;  %v4877_v11 = vpop.f32.mrf.mxu0  ;;  %v4879_v45 = vpop.f32.mrf.mxu1  ;;  %v1628_v9 = vld [vmem:[#allocation8 + $0xf0] sm:$0xff] }
 0x13f   : > { %7910 = vst [vmem:[#allocation57_spill] sm:$0xff] %v4877_v11  ;;  %v1724_v11 = vld [vmem:[#allocation8 + $0x3f0] sm:$0xff]  ;;  %1732 = vmatpush.msra.mxu0 %v1628_v9 }
 0x140   : > { %7911 = vst [vmem:[#allocation58_spill] sm:$0xff] %v4879_v45  ;;  %v4887_v6 = vadd.f32 %v955_v20, %v843_v43  ;;  %2071 = vmatpush.msra.mxu3 %v1724_v11  ;;  %v1660_v11 = vld [vmem:[#allocation8 + $0x1f0] sm:$0xff] }
 0x141   : > { %666 = vmatmul.f32.gmra.mxu0 %v4882_v10  ;;  %779 = vmatmul.f32.gmra.mxu1 %v4885_v50 }
 0x142   : > { %7914 = vst [vmem:[#allocation61_spill] sm:$0xff] %v4887_v6  ;;  %892 = vmatmul.f32.gmra.mxu2 %v4882_v10  ;;  %1005 = vmatmul.f32.gmra.mxu3 %v4885_v50  ;;  %v4902_v10 = vld [vmem:[%s4496_s15 + $0x1d8] sm:$0xff] }
 0x143   : > { %7918 = vst [vmem:[#allocation65_spill] sm:$0xff] %v4902_v10  ;;  %1845 = vmatpush.msra.mxu1 %v1660_v11  ;;  %v1690_v11 = vld [vmem:[#allocation8 + $0x2e0] sm:$0xff] }
 0x144   : > { %1959 = vmatpush.msra.mxu2 %v1690_v11 }
 0x145   : > { %v845_v45 = vpop.f32.mrf.mxu2  ;;  %v958_v35 = vpop.f32.mrf.mxu3 }
 0x146   : > { %v846_v20 = vadd.f32 %v845_v45, %v4687_v19  ;;  %v4894_v43 = vpop.f32.mrf.mxu0  ;;  %v4896_v6 = vpop.f32.mrf.mxu1 }
 0x147   : > { %7915 = vst [vmem:[#allocation62_spill] sm:$0xff] %v4894_v43 }
 0x148   : > { %7916 = vst [vmem:[#allocation63_spill] sm:$0xff] %v4896_v6  ;;  %v4904_v50 = vadd.f32 %v958_v35, %v846_v20  ;;  %v4916_v35 = vld [vmem:[%s4496_s15 + $0x1e0] sm:$0xff]  ;;  %v4919_v20 = vld [vmem:[%s4496_s15 + $0x1e8] sm:$0xff] }
 0x149   : > { %669 = vmatmul.f32.gmra.mxu0 %v4899_v42  ;;  %782 = vmatmul.f32.gmra.mxu1 %v4902_v10  ;;  %7922 = vst [vmem:[#allocation69_spill] sm:$0xff] %v4916_v35 }
 0x14a   : > { %7919 = vst [vmem:[#allocation66_spill] sm:$0xff] %v4904_v50  ;;  %895 = vmatmul.f32.gmra.mxu2 %v4899_v42  ;;  %1008 = vmatmul.f32.gmra.mxu3 %v4902_v10  ;;  %v4933_v42 = vld [vmem:[%s4496_s15 + $0x1f0] sm:$0xff] }
 0x14d   : > { %v848_v45 = vpop.f32.mrf.mxu2  ;;  %v961_v59 = vpop.f32.mrf.mxu3 }
 0x14e   : > { %v849_v9 = vadd.f32 %v848_v45, %v4687_v19  ;;  %v4911_v6 = vpop.f32.mrf.mxu0  ;;  %v4913_v43 = vpop.f32.mrf.mxu1  ;;  %v1626_v45 = vld [vmem:[#allocation8 + $0xe0] sm:$0xff] }
 0x14f   : > { %7920 = vst [vmem:[#allocation67_spill] sm:$0xff] %v4911_v6  ;;  %v1722_v6 = vld [vmem:[#allocation8 + $0x3e0] sm:$0xff]  ;;  %1733 = vmatpush.msra.mxu0 %v1626_v45 }
 0x150   : > { %7921 = vst [vmem:[#allocation68_spill] sm:$0xff] %v4913_v43  ;;  %v4921_v50 = vadd.f32 %v961_v59, %v849_v9  ;;  %2072 = vmatpush.msra.mxu3 %v1722_v6  ;;  %v1658_v6 = vld [vmem:[#allocation8 + $0x1e0] sm:$0xff] }
 0x151   : > { %672 = vmatmul.f32.gmra.mxu0 %v4916_v35  ;;  %785 = vmatmul.f32.gmra.mxu1 %v4919_v20 }
 0x152   : > { %7923 = vst [vmem:[#allocation70_spill] sm:$0xff] %v4921_v50  ;;  %898 = vmatmul.f32.gmra.mxu2 %v4916_v35  ;;  %1011 = vmatmul.f32.gmra.mxu3 %v4919_v20 }
 0x153   : > { %1846 = vmatpush.msra.mxu1 %v1658_v6  ;;  %v1624_v6 = vld [vmem:[#allocation8 + $0xd0] sm:$0xff] }
 0x154   : > { %1734 = vmatpush.msra.mxu0 %v1624_v6 }
 0x155   : > { %v851_v43 = vpop.f32.mrf.mxu2  ;;  %v964_v10 = vpop.f32.mrf.mxu3 }
 0x156   : > { %v852_v59 = vadd.f32 %v851_v43, %v4687_v19  ;;  %v4928_v9 = vpop.f32.mrf.mxu0  ;;  %v4930_v50 = vpop.f32.mrf.mxu1 }
 0x157   : > { %7924 = vst [vmem:[#allocation71_spill] sm:$0xff] %v4928_v9 }
 0x158   : > { %7925 = vst [vmem:[#allocation72_spill] sm:$0xff] %v4930_v50  ;;  %v4938_v35 = vadd.f32 %v964_v10, %v852_v59  ;;  %v1688_v59 = vld [vmem:[#allocation8 + $0x2d0] sm:$0xff] }
 0x159   : > { %675 = vmatmul.f32.gmra.mxu0 %v4933_v42  ;;  %788 = vmatmul.f32.gmra.mxu1 %v4936_v34 }
 0x15a   : > { %7927 = vst [vmem:[#allocation74_spill] sm:$0xff] %v4938_v35  ;;  %901 = vmatmul.f32.gmra.mxu2 %v4933_v42  ;;  %1014 = vmatmul.f32.gmra.mxu3 %v4936_v34  ;;  %v1720_v35 = vld [vmem:[#allocation8 + $0x3d0] sm:$0xff] }
 0x15b   : > { %1960 = vmatpush.msra.mxu2 %v1688_v59  ;;  %2073 = vmatpush.msra.mxu3 %v1720_v35 }
 0x15d   : > { %v854_v43 = vpop.f32.mrf.mxu2  ;;  %v967_v11 = vpop.f32.mrf.mxu3 }
 0x15e   : > { %v855_v45 = vadd.f32 %v854_v43, %v4687_v19  ;;  %v4945_v50 = vpop.f32.mrf.mxu0  ;;  %v4947_v9 = vpop.f32.mrf.mxu1 }
 0x15f   : > { %7928 = vst [vmem:[#allocation75_spill] sm:$0xff] %v4945_v50 }
 0x160   : > { %7929 = vst [vmem:[#allocation76_spill] sm:$0xff] %v4947_v9  ;;  %v4949_v10 = vadd.f32 %v967_v11, %v855_v45 }
 0x161   : > { %1034 = vmatmul.f32.vlgmr.msrb.gmra.mxu0 %v4511_v0  ;;  %1147 = vmatmul.f32.vlgmr.msrb.gmra.mxu1 %v4514_v1 }
 0x162   : > { %7930 = vst [vmem:[#allocation77_spill] sm:$0xff] %v4949_v10  ;;  %1260 = vmatmul.f32.vlgmr.msrb.gmra.mxu2 %v4511_v0  ;;  %1373 = vmatmul.f32.vlgmr.msrb.gmra.mxu3 %v4514_v1  ;;  %v1656_v0 = vld [vmem:[#allocation8 + $0x1d0] sm:$0xff] }
 0x163   : > { %1847 = vmatpush.msra.mxu1 %v1656_v0  ;;  %v8011_v10 = vld [vmem:[#allocation18_spill] sm:$0xff] }
 0x165   : > { %v857_v43 = vpop.f32.mrf.mxu2  ;;  %v970_v34 = vpop.f32.mrf.mxu3 }
 0x166   : > { %v858_v9 = vadd.f32 %v857_v43, %v4687_v19  ;;  %v4956_v11 = vpop.f32.mrf.mxu0  ;;  %v4958_v45 = vpop.f32.mrf.mxu1 }
 0x167   : > { %7931 = vst [vmem:[#allocation78_spill] sm:$0xff] %v4956_v11 }
 0x168   : > { %7932 = vst [vmem:[#allocation79_spill] sm:$0xff] %v4958_v45  ;;  %v4960_v50 = vadd.f32 %v970_v34, %v858_v9  ;;  %v1718_v9 = vld [vmem:[#allocation8 + $0x3c0] sm:$0xff] }
 0x169   : > { %1037 = vmatmul.f32.gmra.mxu0 %v4521_v14  ;;  %1150 = vmatmul.f32.gmra.mxu1 %v4524_v15 }
 0x16a   : > { %7933 = vst [vmem:[#allocation80_spill] sm:$0xff] %v4960_v50  ;;  %1263 = vmatmul.f32.gmra.mxu2 %v4521_v14  ;;  %1376 = vmatmul.f32.gmra.mxu3 %v4524_v15  ;;  %v1686_v14 = vld [vmem:[#allocation8 + $0x2c0] sm:$0xff] }
 0x16b   : > { %v1622_v15 = vld [vmem:[#allocation8 + $0xc0] sm:$0xff]  ;;  %1961 = vmatpush.msra.mxu2 %v1686_v14  ;;  %2074 = vmatpush.msra.mxu3 %v1718_v9 }
 0x16c   : > { %1735 = vmatpush.msra.mxu0 %v1622_v15  ;;  %v8010_v50 = vld [vmem:[#allocation20_spill] sm:$0xff] }
 0x16d   : > { %v860_v1 = vpop.f32.mrf.mxu2  ;;  %v973_v35 = vpop.f32.mrf.mxu3 }
 0x16e   : > { %v861_v59 = vadd.f32 %v860_v1, %v4687_v19  ;;  %v4967_v6 = vpop.f32.mrf.mxu0  ;;  %v4969_v43 = vpop.f32.mrf.mxu1 }
 0x16f   : > { %7934 = vst [vmem:[#allocation81_spill] sm:$0xff] %v4967_v6 }
 0x170   : > { %7935 = vst [vmem:[#allocation82_spill] sm:$0xff] %v4969_v43  ;;  %v4971_v34 = vadd.f32 %v973_v35, %v861_v59 }
 0x171   : > { %1040 = vmatmul.f32.gmra.mxu0 %v4531_v16  ;;  %1153 = vmatmul.f32.gmra.mxu1 %v4534_v17 }
 0x172   : > { %7936 = vst [vmem:[#allocation83_spill] sm:$0xff] %v4971_v34  ;;  %1266 = vmatmul.f32.gmra.mxu2 %v4531_v16  ;;  %1379 = vmatmul.f32.gmra.mxu3 %v4534_v17  ;;  %v1654_v16 = vld [vmem:[#allocation8 + $0x1c0] sm:$0xff] }
 0x173   : > { %1848 = vmatpush.msra.mxu1 %v1654_v16 }
 0x175   : > { %v863_v0 = vpop.f32.mrf.mxu2  ;;  %v976_v1 = vpop.f32.mrf.mxu3 }
 0x176   : > { %v864_v43 = vadd.f32 %v863_v0, %v4687_v19  ;;  %v4978_v35 = vpop.f32.mrf.mxu0  ;;  %v4980_v59 = vpop.f32.mrf.mxu1 }
 0x177   : > { %7937 = vst [vmem:[#allocation84_spill] sm:$0xff] %v4978_v35 }
 0x178   : > { %7938 = vst [vmem:[#allocation85_spill] sm:$0xff] %v4980_v59  ;;  %v4982_v6 = vadd.f32 %v976_v1, %v864_v43  ;;  %v1716_v1 = vld [vmem:[#allocation8 + $0x3b0] sm:$0xff] }
 0x179   : > { %1043 = vmatmul.f32.gmra.mxu0 %v4541_v22  ;;  %1156 = vmatmul.f32.gmra.mxu1 %v4544_v23 }
 0x17a   : > { %7939 = vst [vmem:[#allocation86_spill] sm:$0xff] %v4982_v6  ;;  %1269 = vmatmul.f32.gmra.mxu2 %v4541_v22  ;;  %1382 = vmatmul.f32.gmra.mxu3 %v4544_v23  ;;  %v1684_v22 = vld [vmem:[#allocation8 + $0x2b0] sm:$0xff] }
 0x17b   : > { %v1620_v23 = vld [vmem:[#allocation8 + $0xb0] sm:$0xff]  ;;  %1962 = vmatpush.msra.mxu2 %v1684_v22  ;;  %2075 = vmatpush.msra.mxu3 %v1716_v1 }
 0x17c   : > { %1736 = vmatpush.msra.mxu0 %v1620_v23 }
 0x17d   : > { %v866_v17 = vpop.f32.mrf.mxu2  ;;  %v979_v14 = vpop.f32.mrf.mxu3 }
 0x17e   : > { %v867_v15 = vadd.f32 %v866_v17, %v4687_v19  ;;  %v4989_v9 = vpop.f32.mrf.mxu0  ;;  %v4991_v0 = vpop.f32.mrf.mxu1 }
 0x17f   : > { %7940 = vst [vmem:[#allocation87_spill] sm:$0xff] %v4989_v9 }
 0x180   : > { %7941 = vst [vmem:[#allocation88_spill] sm:$0xff] %v4991_v0  ;;  %v4993_v43 = vadd.f32 %v979_v14, %v867_v15 }
 0x181   : > { %1046 = vmatmul.f32.gmra.mxu0 %v4551_v24  ;;  %1159 = vmatmul.f32.gmra.mxu1 %v4554_v25 }
 0x182   : > { %7942 = vst [vmem:[#allocation89_spill] sm:$0xff] %v4993_v43  ;;  %1272 = vmatmul.f32.gmra.mxu2 %v4551_v24  ;;  %1385 = vmatmul.f32.gmra.mxu3 %v4554_v25  ;;  %v1652_v24 = vld [vmem:[#allocation8 + $0x1b0] sm:$0xff] }
 0x183   : > { %1849 = vmatpush.msra.mxu1 %v1652_v24 }
 0x185   : > { %v869_v16 = vpop.f32.mrf.mxu2  ;;  %v982_v17 = vpop.f32.mrf.mxu3 }
 0x186   : > { %v870_v0 = vadd.f32 %v869_v16, %v4687_v19  ;;  %v5000_v14 = vpop.f32.mrf.mxu0  ;;  %v5002_v15 = vpop.f32.mrf.mxu1 }
 0x187   : > { %7943 = vst [vmem:[#allocation90_spill] sm:$0xff] %v5000_v14 }
 0x188   : > { %7944 = vst [vmem:[#allocation91_spill] sm:$0xff] %v5002_v15  ;;  %v5004_v9 = vadd.f32 %v982_v17, %v870_v0  ;;  %v1714_v17 = vld [vmem:[#allocation8 + $0x3a0] sm:$0xff] }
 0x189   : > { %1049 = vmatmul.f32.gmra.mxu0 %v4561_v30  ;;  %1162 = vmatmul.f32.gmra.mxu1 %v4564_v31  ;;  %v7998_v15 = vld [vmem:[#allocation64_spill] sm:$0xff] }
 0x18a   : > { %7945 = vst [vmem:[#allocation92_spill] sm:$0xff] %v5004_v9  ;;  %1275 = vmatmul.f32.gmra.mxu2 %v4561_v30  ;;  %1388 = vmatmul.f32.gmra.mxu3 %v4564_v31  ;;  %v1682_v30 = vld [vmem:[#allocation8 + $0x2a0] sm:$0xff]  ;;  %v1627_v9 = vld [vmem:[#allocation8 + $0xe8] sm:$0xff] }
 0x18b   : > { %v1618_v31 = vld [vmem:[#allocation8 + $0xa0] sm:$0xff]  ;;  %1963 = vmatpush.msra.mxu2 %v1682_v30  ;;  %2076 = vmatpush.msra.mxu3 %v1714_v17 }
 0x18c   : > { %1737 = vmatpush.msra.mxu0 %v1618_v31 }
 0x18d   : > { %v872_v25 = vpop.f32.mrf.mxu2  ;;  %v985_v22 = vpop.f32.mrf.mxu3 }
 0x18e   : > { %v873_v23 = vadd.f32 %v872_v25, %v4687_v19  ;;  %v5011_v1 = vpop.f32.mrf.mxu0  ;;  %v5013_v16 = vpop.f32.mrf.mxu1 }
 0x18f   : > { %7946 = vst [vmem:[#allocation93_spill] sm:$0xff] %v5011_v1 }
 0x190   : > { %7947 = vst [vmem:[#allocation94_spill] sm:$0xff] %v5013_v16  ;;  %v5015_v0 = vadd.f32 %v985_v22, %v873_v23 }
 0x191   : > { %1052 = vmatmul.f32.gmra.mxu0 %v4571_v32  ;;  %1165 = vmatmul.f32.gmra.mxu1 %v4574_v33 }
 0x192   : > { %7948 = vst [vmem:[#allocation95_spill] sm:$0xff] %v5015_v0  ;;  %1278 = vmatmul.f32.gmra.mxu2 %v4571_v32  ;;  %1391 = vmatmul.f32.gmra.mxu3 %v4574_v33  ;;  %v1650_v32 = vld [vmem:[#allocation8 + $0x1a0] sm:$0xff] }
 0x193   : > { %1850 = vmatpush.msra.mxu1 %v1650_v32 }
 0x195   : > { %v875_v24 = vpop.f32.mrf.mxu2  ;;  %v988_v25 = vpop.f32.mrf.mxu3 }
 0x196   : > { %v876_v16 = vadd.f32 %v875_v24, %v4687_v19  ;;  %v5022_v22 = vpop.f32.mrf.mxu0  ;;  %v5024_v23 = vpop.f32.mrf.mxu1 }
 0x197   : > { %7949 = vst [vmem:[#allocation96_spill] sm:$0xff] %v5022_v22 }
 0x198   : > { %7950 = vst [vmem:[#allocation97_spill] sm:$0xff] %v5024_v23  ;;  %v5026_v1 = vadd.f32 %v988_v25, %v876_v16  ;;  %v1712_v25 = vld [vmem:[#allocation8 + $0x390] sm:$0xff]  ;;  %v7996_v23 = vld [vmem:[#allocation60_spill] sm:$0xff] }
 0x199   : > { %1055 = vmatmul.f32.gmra.mxu0 %v4581_v38  ;;  %1168 = vmatmul.f32.gmra.mxu1 %v4584_v39 }
 0x19a   : > { %7951 = vst [vmem:[#allocation98_spill] sm:$0xff] %v5026_v1  ;;  %1281 = vmatmul.f32.gmra.mxu2 %v4581_v38  ;;  %1394 = vmatmul.f32.gmra.mxu3 %v4584_v39  ;;  %v1680_v38 = vld [vmem:[#allocation8 + $0x290] sm:$0xff] }
 0x19b   : > { %v1616_v39 = vld [vmem:[#allocation8 + $0x90] sm:$0xff]  ;;  %1964 = vmatpush.msra.mxu2 %v1680_v38  ;;  %2077 = vmatpush.msra.mxu3 %v1712_v25 }
 0x19c   : > { %1738 = vmatpush.msra.mxu0 %v1616_v39 }
 0x19d   : > { %v878_v33 = vpop.f32.mrf.mxu2  ;;  %v991_v30 = vpop.f32.mrf.mxu3 }
 0x19e   : > { %v879_v31 = vadd.f32 %v878_v33, %v4687_v19  ;;  %v5033_v17 = vpop.f32.mrf.mxu0  ;;  %v5035_v24 = vpop.f32.mrf.mxu1 }
 0x19f   : > { %7952 = vst [vmem:[#allocation99_spill] sm:$0xff] %v5033_v17 }
 0x1a0   : > { %7953 = vst [vmem:[#allocation100_spill] sm:$0xff] %v5035_v24  ;;  %v5037_v16 = vadd.f32 %v991_v30, %v879_v31 }
 0x1a1   : > { %1058 = vmatmul.f32.gmra.mxu0 %v4591_v40  ;;  %1171 = vmatmul.f32.gmra.mxu1 %v4594_v41 }
 0x1a2   : > { %7954 = vst [vmem:[#allocation101_spill] sm:$0xff] %v5037_v16  ;;  %1284 = vmatmul.f32.gmra.mxu2 %v4591_v40  ;;  %1397 = vmatmul.f32.gmra.mxu3 %v4594_v41  ;;  %v1648_v40 = vld [vmem:[#allocation8 + $0x190] sm:$0xff] }
 0x1a3   : > { %1851 = vmatpush.msra.mxu1 %v1648_v40 }
 0x1a5   : > { %v881_v32 = vpop.f32.mrf.mxu2  ;;  %v994_v33 = vpop.f32.mrf.mxu3 }
 0x1a6   : > { %v882_v24 = vadd.f32 %v881_v32, %v4687_v19  ;;  %v5044_v30 = vpop.f32.mrf.mxu0  ;;  %v5046_v31 = vpop.f32.mrf.mxu1 }
 0x1a7   : > { %7955 = vst [vmem:[#allocation102_spill] sm:$0xff] %v5044_v30 }
 0x1a8   : > { %7956 = vst [vmem:[#allocation103_spill] sm:$0xff] %v5046_v31  ;;  %v5048_v17 = vadd.f32 %v994_v33, %v882_v24  ;;  %v1710_v33 = vld [vmem:[#allocation8 + $0x380] sm:$0xff] }
 0x1a9   : > { %1061 = vmatmul.f32.gmra.mxu0 %v4601_v46  ;;  %1174 = vmatmul.f32.gmra.mxu1 %v4604_v47 }
 0x1aa   : > { %7957 = vst [vmem:[#allocation104_spill] sm:$0xff] %v5048_v17  ;;  %1287 = vmatmul.f32.gmra.mxu2 %v4601_v46  ;;  %1400 = vmatmul.f32.gmra.mxu3 %v4604_v47  ;;  %v1678_v46 = vld [vmem:[#allocation8 + $0x280] sm:$0xff]  ;;  %v7992_v17 = vld [vmem:[#allocation54_spill] sm:$0xff] }
 0x1ab   : > { %v1614_v47 = vld [vmem:[#allocation8 + $0x80] sm:$0xff]  ;;  %1965 = vmatpush.msra.mxu2 %v1678_v46  ;;  %2078 = vmatpush.msra.mxu3 %v1710_v33 }
 0x1ac   : > { %1739 = vmatpush.msra.mxu0 %v1614_v47 }
 0x1ad   : > { %v884_v41 = vpop.f32.mrf.mxu2  ;;  %v997_v38 = vpop.f32.mrf.mxu3 }
 0x1ae   : > { %v885_v39 = vadd.f32 %v884_v41, %v4687_v19  ;;  %v5055_v25 = vpop.f32.mrf.mxu0  ;;  %v5057_v32 = vpop.f32.mrf.mxu1 }
 0x1af   : > { %7958 = vst [vmem:[#allocation105_spill] sm:$0xff] %v5055_v25 }
 0x1b0   : > { %7959 = vst [vmem:[#allocation106_spill] sm:$0xff] %v5057_v32  ;;  %v5059_v24 = vadd.f32 %v997_v38, %v885_v39 }
 0x1b1   : > { %1064 = vmatmul.f32.gmra.mxu0 %v4611_v48  ;;  %1177 = vmatmul.f32.gmra.mxu1 %v4614_v49 }
 0x1b2   : > { %7960 = vst [vmem:[#allocation107_spill] sm:$0xff] %v5059_v24  ;;  %1290 = vmatmul.f32.gmra.mxu2 %v4611_v48  ;;  %1403 = vmatmul.f32.gmra.mxu3 %v4614_v49  ;;  %v1646_v48 = vld [vmem:[#allocation8 + $0x180] sm:$0xff] }
 0x1b3   : > { %1852 = vmatpush.msra.mxu1 %v1646_v48 }
 0x1b5   : > { %v887_v40 = vpop.f32.mrf.mxu2  ;;  %v1000_v41 = vpop.f32.mrf.mxu3 }
 0x1b6   : > { %v888_v32 = vadd.f32 %v887_v40, %v4687_v19  ;;  %v5066_v38 = vpop.f32.mrf.mxu0  ;;  %v5068_v39 = vpop.f32.mrf.mxu1 }
 0x1b7   : > { %7961 = vst [vmem:[#allocation108_spill] sm:$0xff] %v5066_v38 }
 0x1b8   : > { %7962 = vst [vmem:[#allocation109_spill] sm:$0xff] %v5068_v39  ;;  %v5070_v25 = vadd.f32 %v1000_v41, %v888_v32  ;;  %v1708_v41 = vld [vmem:[#allocation8 + $0x370] sm:$0xff]  ;;  %v7986_v39 = vld [vmem:[#allocation44_spill] sm:$0xff] }
 0x1b9   : > { %1067 = vmatmul.f32.gmra.mxu0 %v4621_v54  ;;  %1180 = vmatmul.f32.gmra.mxu1 %v4624_v55 }
 0x1ba   : > { %7963 = vst [vmem:[#allocation110_spill] sm:$0xff] %v5070_v25  ;;  %1293 = vmatmul.f32.gmra.mxu2 %v4621_v54  ;;  %1406 = vmatmul.f32.gmra.mxu3 %v4624_v55  ;;  %v1676_v54 = vld [vmem:[#allocation8 + $0x270] sm:$0xff] }
 0x1bb   : > { %v1612_v55 = vld [vmem:[#allocation8 + $0x70] sm:$0xff]  ;;  %1966 = vmatpush.msra.mxu2 %v1676_v54  ;;  %2079 = vmatpush.msra.mxu3 %v1708_v41 }
 0x1bc   : > { %1740 = vmatpush.msra.mxu0 %v1612_v55  ;;  %v7990_v25 = vld [vmem:[#allocation50_spill] sm:$0xff] }
 0x1bd   : > { %v890_v49 = vpop.f32.mrf.mxu2  ;;  %v1003_v46 = vpop.f32.mrf.mxu3 }
 0x1be   : > { %v891_v47 = vadd.f32 %v890_v49, %v4687_v19  ;;  %v5077_v33 = vpop.f32.mrf.mxu0  ;;  %v5079_v40 = vpop.f32.mrf.mxu1 }
 0x1bf   : > { %7964 = vst [vmem:[#allocation111_spill] sm:$0xff] %v5077_v33 }
 0x1c0   : > { %7965 = vst [vmem:[#allocation112_spill] sm:$0xff] %v5079_v40  ;;  %v5081_v32 = vadd.f32 %v1003_v46, %v891_v47 }
 0x1c1   : > { %1070 = vmatmul.f32.gmra.mxu0 %v4631_v56  ;;  %1183 = vmatmul.f32.gmra.mxu1 %v4634_v57 }
 0x1c2   : > { %7966 = vst [vmem:[#allocation113_spill] sm:$0xff] %v5081_v32  ;;  %1296 = vmatmul.f32.gmra.mxu2 %v4631_v56  ;;  %1409 = vmatmul.f32.gmra.mxu3 %v4634_v57  ;;  %v1644_v56 = vld [vmem:[#allocation8 + $0x170] sm:$0xff] }
 0x1c3   : > { %1853 = vmatpush.msra.mxu1 %v1644_v56 }
 0x1c5   : > { %v893_v48 = vpop.f32.mrf.mxu2  ;;  %v1006_v49 = vpop.f32.mrf.mxu3 }
 0x1c6   : > { %v894_v40 = vadd.f32 %v893_v48, %v4687_v19  ;;  %v5088_v46 = vpop.f32.mrf.mxu0  ;;  %v5090_v47 = vpop.f32.mrf.mxu1 }
 0x1c7   : > { %7967 = vst [vmem:[#allocation114_spill] sm:$0xff] %v5088_v46 }
 0x1c8   : > { %7968 = vst [vmem:[#allocation115_spill] sm:$0xff] %v5090_v47  ;;  %v5092_v33 = vadd.f32 %v1006_v49, %v894_v40  ;;  %v1706_v49 = vld [vmem:[#allocation8 + $0x360] sm:$0xff] }
 0x1c9   : > { %1073 = vmatmul.f32.gmra.mxu0 %v4641_v61  ;;  %1186 = vmatmul.f32.gmra.mxu1 %v4644_v62 }
 0x1ca   : > { %7969 = vst [vmem:[#allocation116_spill] sm:$0xff] %v5092_v33  ;;  %1299 = vmatmul.f32.gmra.mxu2 %v4641_v61  ;;  %1412 = vmatmul.f32.gmra.mxu3 %v4644_v62  ;;  %v1674_v61 = vld [vmem:[#allocation8 + $0x260] sm:$0xff] }
 0x1cb   : > { %v1610_v62 = vld [vmem:[#allocation8 + $0x60] sm:$0xff]  ;;  %1967 = vmatpush.msra.mxu2 %v1674_v61  ;;  %2080 = vmatpush.msra.mxu3 %v1706_v49 }
 0x1cc   : > { %1741 = vmatpush.msra.mxu0 %v1610_v62 }
 0x1cd   : > { %v896_v57 = vpop.f32.mrf.mxu2  ;;  %v1009_v54 = vpop.f32.mrf.mxu3 }
 0x1ce   : > { %v897_v55 = vadd.f32 %v896_v57, %v4687_v19  ;;  %v5099_v41 = vpop.f32.mrf.mxu0  ;;  %v5101_v48 = vpop.f32.mrf.mxu1 }
 0x1cf   : > { %7970 = vst [vmem:[#allocation117_spill] sm:$0xff] %v5099_v41 }
 0x1d0   : > { %7971 = vst [vmem:[#allocation118_spill] sm:$0xff] %v5101_v48  ;;  %v5103_v40 = vadd.f32 %v1009_v54, %v897_v55 }
 0x1d1   : > { %1076 = vmatmul.f32.gmra.mxu0 %v4651_v2  ;;  %1189 = vmatmul.f32.gmra.mxu1 %v4654_v3 }
 0x1d2   : > { %7972 = vst [vmem:[#allocation119_spill] sm:$0xff] %v5103_v40  ;;  %1302 = vmatmul.f32.gmra.mxu2 %v4651_v2  ;;  %1415 = vmatmul.f32.gmra.mxu3 %v4654_v3  ;;  %v1642_v2 = vld [vmem:[#allocation8 + $0x160] sm:$0xff] }
 0x1d3   : > { %1854 = vmatpush.msra.mxu1 %v1642_v2 }
 0x1d5   : > { %v899_v56 = vpop.f32.mrf.mxu2  ;;  %v1012_v57 = vpop.f32.mrf.mxu3 }
 0x1d6   : > { %v900_v48 = vadd.f32 %v899_v56, %v4687_v19  ;;  %v5110_v54 = vpop.f32.mrf.mxu0  ;;  %v5112_v55 = vpop.f32.mrf.mxu1 }
 0x1d7   : > { %7973 = vst [vmem:[#allocation120_spill] sm:$0xff] %v5110_v54 }
 0x1d8   : > { %7974 = vst [vmem:[#allocation121_spill] sm:$0xff] %v5112_v55  ;;  %v5114_v41 = vadd.f32 %v1012_v57, %v900_v48  ;;  %v1608_v57 = vld [vmem:[#allocation8 + $0x50] sm:$0xff] }
 0x1d9   : > { %1079 = vmatmul.f32.gmra.mxu0 %v4661_v7  ;;  %1192 = vmatmul.f32.gmra.mxu1 %v4664_v8 }
 0x1da   : > { %7975 = vst [vmem:[#allocation122_spill] sm:$0xff] %v5114_v41  ;;  %1305 = vmatmul.f32.gmra.mxu2 %v4661_v7  ;;  %1418 = vmatmul.f32.gmra.mxu3 %v4664_v8  ;;  %v5132_v7 = vperm.slane %v4680_v18, 3  ;;  %v1672_v8 = vld [vmem:[#allocation8 + $0x250] sm:$0xff] }
 0x1db   : > { %1968 = vmatpush.msra.mxu2 %v1672_v8  ;;  %1742 = vmatpush.msra.mxu0 %v1608_v57 }
 0x1dd   : > { %v902_v3 = vpop.f32.mrf.mxu2  ;;  %v1015_v61 = vpop.f32.mrf.mxu3 }
 0x1de   : > { %v903_v62 = vadd.f32 %v902_v3, %v4687_v19  ;;  %v5121_v49 = vpop.f32.mrf.mxu0  ;;  %v5123_v56 = vpop.f32.mrf.mxu1  ;;  %v1704_v19 = vld [vmem:[#allocation8 + $0x350] sm:$0xff] }
 0x1df   : > { %2081 = vmatpush.msra.mxu3 %v1704_v19 }
 0x1e0   : > { %v5125_v48 = vadd.f32 %v1015_v61, %v903_v62 }
 0x1e1   : > { %1082 = vmatmul.f32.gmra.mxu0 %v4675_v12  ;;  %1195 = vmatmul.f32.gmra.mxu1 %v4678_v13 }
 0x1e2   : > { %7976 = vst [vmem:[#allocation123_spill] sm:$0xff] %v5125_v48  ;;  %1308 = vmatmul.f32.gmra.mxu2 %v4675_v12  ;;  %1421 = vmatmul.f32.gmra.mxu3 %v4678_v13  ;;  %v1640_v13 = vld [vmem:[#allocation8 + $0x150] sm:$0xff] }
 0x1e3   : > { %1855 = vmatpush.msra.mxu1 %v1640_v13 }
 0x1e5   : > { %v1261_v2 = vpop.f32.mrf.mxu2  ;;  %v1374_v3 = vpop.f32.mrf.mxu3 }
 0x1e6   : > { %v1262_v61 = vadd.f32 %v1261_v2, %v5132_v7  ;;  %v5135_v62 = vpop.f32.mrf.mxu0  ;;  %v5137_v48 = vpop.f32.mrf.mxu1 }
 0x1e8   : > { %v5139_v12 = vadd.f32 %v1374_v3, %v1262_v61  ;;  %v1702_v61 = vld [vmem:[#allocation8 + $0x340] sm:$0xff] }
 0x1e9   : > { %1085 = vmatmul.f32.gmra.mxu0 %v4695_v36  ;;  %1198 = vmatmul.f32.gmra.mxu1 %v4698_v37 }
 0x1ea   : > { %7977 = vst [vmem:[#allocation124_spill] sm:$0xff] %v5139_v12  ;;  %1311 = vmatmul.f32.gmra.mxu2 %v4695_v36  ;;  %1424 = vmatmul.f32.gmra.mxu3 %v4698_v37  ;;  %v1670_v36 = vld [vmem:[#allocation8 + $0x240] sm:$0xff] }
 0x1eb   : > { %v1606_v37 = vld [vmem:[#allocation8 + $0x40] sm:$0xff]  ;;  %1969 = vmatpush.msra.mxu2 %v1670_v36  ;;  %2082 = vmatpush.msra.mxu3 %v1702_v61 }
 0x1ec   : > { %1743 = vmatpush.msra.mxu0 %v1606_v37 }
 0x1ed   : > { %v1264_v18 = vpop.f32.mrf.mxu2  ;;  %v1377_v8 = vpop.f32.mrf.mxu3 }
 0x1ee   : > { %v1265_v57 = vadd.f32 %v1264_v18, %v5132_v7  ;;  %v5146_v19 = vpop.f32.mrf.mxu0  ;;  %v5148_v2 = vpop.f32.mrf.mxu1 }
 0x1f0   : > { %v5150_v3 = vadd.f32 %v1377_v8, %v1265_v57 }
 0x1f1   : > { %1088 = vmatmul.f32.gmra.mxu0 %v4712_v53  ;;  %1201 = vmatmul.f32.gmra.mxu1 %v4715_v58 }
 0x1f2   : > { %7978 = vst [vmem:[#allocation125_spill] sm:$0xff] %v5150_v3  ;;  %1314 = vmatmul.f32.gmra.mxu2 %v4712_v53  ;;  %1427 = vmatmul.f32.gmra.mxu3 %v4715_v58  ;;  %v1638_v53 = vld [vmem:[#allocation8 + $0x140] sm:$0xff] }
 0x1f3   : > { %1856 = vmatpush.msra.mxu1 %v1638_v53 }
 0x1f5   : > { %v1267_v13 = vpop.f32.mrf.mxu2  ;;  %v1380_v18 = vpop.f32.mrf.mxu3 }
 0x1f6   : > { %v1268_v55 = vadd.f32 %v1267_v13, %v5132_v7  ;;  %v5157_v8 = vpop.f32.mrf.mxu0  ;;  %v5159_v57 = vpop.f32.mrf.mxu1 }
 0x1f8   : > { %v5161_v54 = vadd.f32 %v1380_v18, %v1268_v55  ;;  %v1700_v18 = vld [vmem:[#allocation8 + $0x330] sm:$0xff] }
 0x1f9   : > { %1091 = vmatmul.f32.gmra.mxu0 %v4729_v26  ;;  %1204 = vmatmul.f32.gmra.mxu1 %v4732_v27 }
 0x1fa   : > { %7979 = vst [vmem:[#allocation126_spill] sm:$0xff] %v5161_v54  ;;  %1317 = vmatmul.f32.gmra.mxu2 %v4729_v26  ;;  %1430 = vmatmul.f32.gmra.mxu3 %v4732_v27  ;;  %v1668_v26 = vld [vmem:[#allocation8 + $0x230] sm:$0xff] }
 0x1fb   : > { %v1604_v27 = vld [vmem:[#allocation8 + $0x30] sm:$0xff]  ;;  %1970 = vmatpush.msra.mxu2 %v1668_v26  ;;  %2083 = vmatpush.msra.mxu3 %v1700_v18 }
 0x1fc   : > { %1744 = vmatpush.msra.mxu0 %v1604_v27 }
 0x1fd   : > { %v1270_v58 = vpop.f32.mrf.mxu2  ;;  %v1383_v36 = vpop.f32.mrf.mxu3 }
 0x1fe   : > { %v1271_v37 = vadd.f32 %v1270_v58, %v5132_v7  ;;  %v5168_v61 = vpop.f32.mrf.mxu0  ;;  %v5170_v13 = vpop.f32.mrf.mxu1 }
 0x200   : > { %v5172_v55 = vadd.f32 %v1383_v36, %v1271_v37 }
 0x201   : > { %1094 = vmatmul.f32.gmra.mxu0 %v4746_v63  ;;  %1207 = vmatmul.f32.gmra.mxu1 %v4749_v4 }
 0x202   : > { %7980 = vst [vmem:[#allocation127_spill] sm:$0xff] %v5172_v55  ;;  %1320 = vmatmul.f32.gmra.mxu2 %v4746_v63  ;;  %1433 = vmatmul.f32.gmra.mxu3 %v4749_v4  ;;  %v1636_v63 = vld [vmem:[#allocation8 + $0x130] sm:$0xff] }
 0x203   : > { %1857 = vmatpush.msra.mxu1 %v1636_v63 }
 0x205   : > { %v1273_v53 = vpop.f32.mrf.mxu2  ;;  %v1386_v58 = vpop.f32.mrf.mxu3 }
 0x206   : > { %v1274_v41 = vadd.f32 %v1273_v53, %v5132_v7  ;;  %v5179_v36 = vpop.f32.mrf.mxu0  ;;  %v5181_v37 = vpop.f32.mrf.mxu1 }
 0x208   : > { %v5183_v40 = vadd.f32 %v1386_v58, %v1274_v41  ;;  %v1698_v58 = vld [vmem:[#allocation8 + $0x320] sm:$0xff] }
 0x209   : > { %1097 = vmatmul.f32.gmra.mxu0 %v4763_v5  ;;  %1210 = vmatmul.f32.gmra.mxu1 %v4766_v21 }
 0x20a   : > { %7981 = vst [vmem:[#allocation128_spill] sm:$0xff] %v5183_v40  ;;  %1323 = vmatmul.f32.gmra.mxu2 %v4763_v5  ;;  %1436 = vmatmul.f32.gmra.mxu3 %v4766_v21  ;;  %v1666_v21 = vld [vmem:[#allocation8 + $0x220] sm:$0xff] }
 0x20b   : > { %v1602_v5 = vld [vmem:[#allocation8 + $0x20] sm:$0xff]  ;;  %1971 = vmatpush.msra.mxu2 %v1666_v21  ;;  %2084 = vmatpush.msra.mxu3 %v1698_v58 }
 0x20c   : > { %1745 = vmatpush.msra.mxu0 %v1602_v5 }
 0x20d   : > { %v1276_v4 = vpop.f32.mrf.mxu2  ;;  %v1389_v26 = vpop.f32.mrf.mxu3 }
 0x20e   : > { %v1277_v27 = vadd.f32 %v1276_v4, %v5132_v7  ;;  %v5190_v18 = vpop.f32.mrf.mxu0  ;;  %v5192_v53 = vpop.f32.mrf.mxu1 }
 0x210   : > { %v5194_v41 = vadd.f32 %v1389_v26, %v1277_v27 }
 0x211   : > { %1100 = vmatmul.f32.gmra.mxu0 %v4780_v60  ;;  %1213 = vmatmul.f32.gmra.mxu1 %v4783_v44 }
 0x212   : > { %7982 = vst [vmem:[#allocation129_spill] sm:$0xff] %v5194_v41  ;;  %1326 = vmatmul.f32.gmra.mxu2 %v4780_v60  ;;  %1439 = vmatmul.f32.gmra.mxu3 %v4783_v44  ;;  %v1634_v60 = vld [vmem:[#allocation8 + $0x120] sm:$0xff] }
 0x213   : > { %1858 = vmatpush.msra.mxu1 %v1634_v60 }
 0x215   : > { %v1279_v63 = vpop.f32.mrf.mxu2  ;;  %v1392_v4 = vpop.f32.mrf.mxu3 }
 0x216   : > { %v1280_v47 = vadd.f32 %v1279_v63, %v5132_v7  ;;  %v5201_v26 = vpop.f32.mrf.mxu0  ;;  %v5203_v27 = vpop.f32.mrf.mxu1 }
 0x218   : > { %v5205_v46 = vadd.f32 %v1392_v4, %v1280_v47  ;;  %v1696_v4 = vld [vmem:[#allocation8 + $0x310] sm:$0xff] }
 0x219   : > { %1103 = vmatmul.f32.gmra.mxu0 %v4797_v52  ;;  %1216 = vmatmul.f32.gmra.mxu1 %v4800_v51 }
 0x21a   : > { %7983 = vst [vmem:[#allocation130_spill] sm:$0xff] %v5205_v46  ;;  %1329 = vmatmul.f32.gmra.mxu2 %v4797_v52  ;;  %1442 = vmatmul.f32.gmra.mxu3 %v4800_v51  ;;  %v1664_v51 = vld [vmem:[#allocation8 + $0x210] sm:$0xff] }
 0x21b   : > { %v1600_v52 = vld [vmem:[#allocation8 + $0x10] sm:$0xff]  ;;  %1972 = vmatpush.msra.mxu2 %v1664_v51  ;;  %2085 = vmatpush.msra.mxu3 %v1696_v4 }
 0x21c   : > { %1746 = vmatpush.msra.mxu0 %v1600_v52 }
 0x21d   : > { %v1282_v44 = vpop.f32.mrf.mxu2  ;;  %v1395_v21 = vpop.f32.mrf.mxu3 }
 0x21e   : > { %v1283_v5 = vadd.f32 %v1282_v44, %v5132_v7  ;;  %v5212_v58 = vpop.f32.mrf.mxu0  ;;  %v5214_v63 = vpop.f32.mrf.mxu1 }
 0x220   : > { %v5216_v47 = vadd.f32 %v1395_v21, %v1283_v5 }
 0x221   : > { %1106 = vmatmul.f32.gmra.mxu0 %v4814_v28  ;;  %1219 = vmatmul.f32.gmra.mxu1 %v4817_v29 }
 0x222   : > { %7984 = vst [vmem:[#allocation131_spill] sm:$0xff] %v5216_v47  ;;  %1332 = vmatmul.f32.gmra.mxu2 %v4814_v28  ;;  %1445 = vmatmul.f32.gmra.mxu3 %v4817_v29  ;;  %v7987_v28 = vld [vmem:[#allocation45_spill] sm:$0xff] }
 0x223   : > { %v1632_v29 = vld [vmem:[#allocation8 + $0x110] sm:$0xff] }
 0x224   : > { %1859 = vmatpush.msra.mxu1 %v1632_v29  ;;  %v1694_v29 = vld [vmem:[#allocation8 + $0x300] sm:$0xff] }
 0x225   : > { %v1285_v60 = vpop.f32.mrf.mxu2  ;;  %v1398_v44 = vpop.f32.mrf.mxu3  ;;  %2086 = vmatpush.msra.mxu3 %v1694_v29 }
 0x226   : > { %v1286_v33 = vadd.f32 %v1285_v60, %v5132_v7  ;;  %v5223_v21 = vpop.f32.mrf.mxu0  ;;  %v5225_v5 = vpop.f32.mrf.mxu1 }
 0x228   : > { %v5227_v32 = vadd.f32 %v1398_v44, %v1286_v33  ;;  %v7989_v44 = vld [vmem:[#allocation49_spill] sm:$0xff] }
 0x229   : > { %1109 = vmatmul.f32.gmra.mxu0 %v7986_v39  ;;  %1222 = vmatmul.f32.gmra.mxu1 %v7987_v28 }
 0x22a   : > { %7985 = vst [vmem:[#allocation132_spill] sm:$0xff] %v5227_v32  ;;  %1335 = vmatmul.f32.gmra.mxu2 %v7986_v39  ;;  %1448 = vmatmul.f32.gmra.mxu3 %v7987_v28  ;;  %v1662_v39 = vld [vmem:[#allocation8 + $0x200] sm:$0xff] }
 0x22b   : > { %v1598_v28 = vld [vmem:[#allocation8] sm:$0xff]  ;;  %1973 = vmatpush.msra.mxu2 %v1662_v39 }
 0x22c   : > { %1747 = vmatpush.msra.mxu0 %v1598_v28 }
 0x22d   : > { %v1288_v51 = vpop.f32.mrf.mxu2  ;;  %v1401_v52 = vpop.f32.mrf.mxu3 }
 0x22e   : > { %v1289_v4 = vadd.f32 %v1288_v51, %v5132_v7  ;;  %v5234_v60 = vpop.f32.mrf.mxu0  ;;  %v5236_v38 = vpop.f32.mrf.mxu1 }
 0x230   : > { %v5238_v33 = vadd.f32 %v1401_v52, %v1289_v4 }
 0x231   : > { %1112 = vmatmul.f32.gmra.mxu0 %v7989_v44  ;;  %1225 = vmatmul.f32.gmra.mxu1 %v7990_v25 }
 0x232   : > { %7988 = vst [vmem:[#allocation44_spill] sm:$0xff] %v5238_v33  ;;  %1338 = vmatmul.f32.gmra.mxu2 %v7989_v44  ;;  %1451 = vmatmul.f32.gmra.mxu3 %v7990_v25  ;;  %v7993_v44 = vld [vmem:[#allocation55_spill] sm:$0xff] }
 0x233   : > { %v1630_v25 = vld [vmem:[#allocation8 + $0x100] sm:$0xff] }
 0x234   : > { %1860 = vmatpush.msra.mxu1 %v1630_v25  ;;  %v1725_v25 = vld [vmem:[#allocation8 + $0x3f8] sm:$0xff] }
 0x235   : > { %v1291_v51 = vpop.f32.mrf.mxu2  ;;  %v1404_v24 = vpop.f32.mrf.mxu3  ;;  %2523 = vmatpush.msrb.mxu3 %v1725_v25 }
 0x236   : > { %v1292_v31 = vadd.f32 %v1291_v51, %v5132_v7  ;;  %v5245_v52 = vpop.f32.mrf.mxu0  ;;  %v5247_v4 = vpop.f32.mrf.mxu1 }
 0x238   : > { %v5249_v30 = vadd.f32 %v1404_v24, %v1292_v31  ;;  %v7995_v24 = vld [vmem:[#allocation59_spill] sm:$0xff] }
 0x239   : > { %1115 = vmatmul.f32.gmra.mxu0 %v7992_v17  ;;  %1228 = vmatmul.f32.gmra.mxu1 %v7993_v44 }
 0x23a   : > { %7991 = vst [vmem:[#allocation45_spill] sm:$0xff] %v5249_v30  ;;  %1341 = vmatmul.f32.gmra.mxu2 %v7992_v17  ;;  %1454 = vmatmul.f32.gmra.mxu3 %v7993_v44  ;;  %v1693_v17 = vld [vmem:[#allocation8 + $0x2f8] sm:$0xff] }
 0x23b   : > { %v1629_v44 = vld [vmem:[#allocation8 + $0xf8] sm:$0xff]  ;;  %2410 = vmatpush.msrb.mxu2 %v1693_v17 }
 0x23c   : > { %2184 = vmatpush.msrb.mxu0 %v1629_v44 }
 0x23d   : > { %v1294_v39 = vpop.f32.mrf.mxu2  ;;  %v1407_v28 = vpop.f32.mrf.mxu3 }
 0x23e   : > { %v1295_v29 = vadd.f32 %v1294_v39, %v5132_v7  ;;  %v5256_v51 = vpop.f32.mrf.mxu0  ;;  %v5258_v16 = vpop.f32.mrf.mxu1  ;;  %2185 = vmatpush.msrb.mxu0 %v1627_v9  ;;  %v8004_v9 = vld [vmem:[#allocation73_spill] sm:$0xff] }
 0x240   : > { %v5260_v31 = vadd.f32 %v1407_v28, %v1295_v29 }
 0x241   : > { %1118 = vmatmul.f32.gmra.mxu0 %v7995_v24  ;;  %1231 = vmatmul.f32.gmra.mxu1 %v7996_v23 }
 0x242   : > { %7994 = vst [vmem:[#allocation49_spill] sm:$0xff] %v5260_v31  ;;  %1344 = vmatmul.f32.gmra.mxu2 %v7995_v24  ;;  %1457 = vmatmul.f32.gmra.mxu3 %v7996_v23  ;;  %v7999_v24 = vld [vmem:[#allocation65_spill] sm:$0xff]  ;;  %v1661_v23 = vld [vmem:[#allocation8 + $0x1f8] sm:$0xff] }
 0x243   : > { %2297 = vmatpush.msrb.mxu1 %v1661_v23  ;;  %v1691_v23 = vld [vmem:[#allocation8 + $0x2e8] sm:$0xff] }
 0x244   : > { %2411 = vmatpush.msrb.mxu2 %v1691_v23  ;;  %v8005_v23 = vld [vmem:[#allocation17_spill] sm:$0xff] }
 0x245   : > { %v1297_v39 = vpop.f32.mrf.mxu2  ;;  %v1410_v22 = vpop.f32.mrf.mxu3 }
 0x246   : > { %v1298_v1 = vadd.f32 %v1297_v39, %v5132_v7  ;;  %v5267_v28 = vpop.f32.mrf.mxu0  ;;  %v5269_v29 = vpop.f32.mrf.mxu1 }
 0x248   : > { %v5271_v0 = vadd.f32 %v1410_v22, %v1298_v1  ;;  %v8001_v22 = vld [vmem:[#allocation69_spill] sm:$0xff] }
 0x249   : > { %1121 = vmatmul.f32.gmra.mxu0 %v7998_v15  ;;  %1234 = vmatmul.f32.gmra.mxu1 %v7999_v24 }
 0x24a   : > { %7997 = vst [vmem:[#allocation50_spill] sm:$0xff] %v5271_v0  ;;  %1347 = vmatmul.f32.gmra.mxu2 %v7998_v15  ;;  %1460 = vmatmul.f32.gmra.mxu3 %v7999_v24  ;;  %v4027_v15 = vld [vmem:[#allocation7] sm:$0xf] }
 0x24b   : > { %v5288_v24 = vperm.slane %v4027_v15, 0  ;;  %v5290_v43 = vperm.slane %v4027_v15, 2  ;;  %v1659_v15 = vld [vmem:[#allocation8 + $0x1e8] sm:$0xff] }
 0x24c   : > { %2298 = vmatpush.msrb.mxu1 %v1659_v15 }
 0x24d   : > { %v1300_v17 = vpop.f32.mrf.mxu2  ;;  %v1413_v44 = vpop.f32.mrf.mxu3  ;;  %v1036_v34 = vadd.f32 %v5121_v49, %v5290_v43 }
 0x24e   : > { %v1301_v25 = vadd.f32 %v1300_v17, %v5132_v7  ;;  %v5278_v39 = vpop.f32.mrf.mxu0  ;;  %v5280_v14 = vpop.f32.mrf.mxu1  ;;  %v1723_v17 = vld [vmem:[#allocation8 + $0x3e8] sm:$0xff] }
 0x24f   : > { %2524 = vmatpush.msrb.mxu3 %v1723_v17 }
 0x250   : > { %v5282_v1 = vadd.f32 %v1413_v44, %v1301_v25 }
 0x251   : > { %1124 = vmatmul.f32.gmra.mxu0 %v8001_v22  ;;  %1237 = vmatmul.f32.gmra.mxu1 %v4919_v20 }
 0x252   : > { %8000 = vst [vmem:[#allocation54_spill] sm:$0xff] %v5282_v1  ;;  %1350 = vmatmul.f32.gmra.mxu2 %v8001_v22  ;;  %1463 = vmatmul.f32.gmra.mxu3 %v4919_v20  ;;  %v8002_v20 = vld [vmem:[#allocation16_spill] sm:$0xff] }
 0x253   : > { %v584_v6 = vadd.f32 %v8002_v20, %v5288_v24 }
 0x255   : > { %v1303_v44 = vpop.f32.mrf.mxu2  ;;  %v1416_v25 = vpop.f32.mrf.mxu3  ;;  %v5308_v17 = vadd.f32 %v8005_v23, %v584_v6  ;;  %v587_v6 = vadd.f32 %v8011_v10, %v5288_v24  ;;  %v8013_v10 = vld [vmem:[#allocation19_spill] sm:$0xff] }
 0x256   : > { %v1304_v59 = vadd.f32 %v1303_v44, %v5132_v7  ;;  %v5293_v35 = vpop.f32.mrf.mxu0  ;;  %v5295_v22 = vpop.f32.mrf.mxu1  ;;  %v5311_v44 = vadd.f32 %v5123_v56, %v1036_v34  ;;  %v7626_v34 = vmax.f32 %v5139_v12, 0.0  ;;  %v1039_v56 = vadd.f32 %v5135_v62, %v5290_v43  ;;  %v1721_v62 = vld [vmem:[#allocation8 + $0x3d8] sm:$0xff] }
 0x257   : > { %8006 = vst [vmem:[#allocation59_spill] sm:$0xff] %v5308_v17  ;;  %2525 = vmatpush.msrb.mxu3 %v1721_v62  ;;  %v8019_v62 = vld [vmem:[#allocation22_spill] sm:$0xff] }
 0x258   : > { %v5301_v45 = vadd.f32 %v1416_v25, %v1304_v59  ;;  %8007 = vst [vmem:[#allocation60_spill] sm:$0xff] %v5311_v44  ;;  %v7624_v15 = vmax.f32 %v5311_v44, 0.0  ;;  %v8017_v44 = vld [vmem:[#allocation21_spill] sm:$0xff] }
 0x259   : > { %1127 = vmatmul.f32.gmra.mxu0 %v4933_v42  ;;  %1240 = vmatmul.f32.gmra.mxu1 %v8004_v9 }
 0x25a   : > { %8003 = vst [vmem:[#allocation55_spill] sm:$0xff] %v5301_v45  ;;  %1353 = vmatmul.f32.gmra.mxu2 %v4933_v42  ;;  %1466 = vmatmul.f32.gmra.mxu3 %v8004_v9  ;;  %v7622_v42 = vmax.f32 %v5308_v17, 0.0  ;;  %v7623_v9 = vmax.f32 %v8010_v50, 0.0  ;;  %v590_v50 = vadd.f32 %v8017_v44, %v5288_v24  ;;  %v1657_v44 = vld [vmem:[#allocation8 + $0x1d8] sm:$0xff]  ;;  %v1623_v17 = vld [vmem:[#allocation8 + $0xc8] sm:$0xff] }
 0x25b   : > { %2299 = vmatpush.msrb.mxu1 %v1657_v44 }
 0x25d   : > { %v1306_v20 = vpop.f32.mrf.mxu2  ;;  %v1419_v49 = vpop.f32.mrf.mxu3 }
 0x25e   : > { %v1307_v59 = vadd.f32 %v1306_v20, %v5132_v7  ;;  %v5314_v25 = vpop.f32.mrf.mxu0  ;;  %v5316_v11 = vpop.f32.mrf.mxu1  ;;  %v5337_v20 = vadd.f32 %v8013_v10, %v587_v6  ;;  %v8016_v10 = vld [vmem:[#allocation23_spill] sm:$0xff] }
 0x25f   : > { %8008 = vst [vmem:[#allocation64_spill] sm:$0xff] %v5314_v25  ;;  %v1625_v25 = vld [vmem:[#allocation8 + $0xd8] sm:$0xff] }
 0x260   : > { %8009 = vst [vmem:[#allocation65_spill] sm:$0xff] %v5316_v11  ;;  %v5326_v23 = vadd.f32 %v1419_v49, %v1307_v59  ;;  %v1689_v11 = vld [vmem:[#allocation8 + $0x2d8] sm:$0xff]  ;;  %v5340_v49 = vadd.f32 %v5137_v48, %v1039_v56  ;;  %2186 = vmatpush.msrb.mxu0 %v1625_v25  ;;  %v7629_v6 = vmax.f32 %v5337_v20, 0.0  ;;  %v1042_v25 = vadd.f32 %v5146_v19, %v5290_v43 }
 0x261   : > { %1748 = vmatmul.f32.vlgmr.msra.gmra.mxu0 %v7622_v42  ;;  %1861 = vmatmul.f32.vlgmr.msra.gmra.mxu1 %v7623_v9  ;;  %8014 = vst [vmem:[#allocation16_spill] sm:$0xff] %v5337_v20  ;;  %v1687_v20 = vld [vmem:[#allocation8 + $0x2c8] sm:$0xff] }
 0x262   : > { %8012 = vst [vmem:[#allocation69_spill] sm:$0xff] %v5326_v23  ;;  %1974 = vmatmul.f32.vlgmr.msra.gmra.mxu2 %v7624_v15  ;;  %2087 = vmatmul.f32.vlgmr.msra.gmra.mxu3 %v7626_v34  ;;  %v7631_v34 = vmax.f32 %v8016_v10, 0.0  ;;  %v7632_v48 = vmax.f32 %v5340_v49, 0.0  ;;  %v5369_v19 = vadd.f32 %v5148_v2, %v1042_v25  ;;  %v7642_v2 = vmax.f32 %v5161_v54, 0.0 }
 0x263   : > { %8015 = vst [vmem:[#allocation73_spill] sm:$0xff] %v5340_v49  ;;  %2412 = vmatpush.msrb.mxu2 %v1689_v11  ;;  %v7634_v11 = vmax.f32 %v5150_v3, 0.0  ;;  %v8022_v3 = vld [vmem:[#allocation26_spill] sm:$0xff]  ;;  %v8023_v49 = vld [vmem:[#allocation24_spill] sm:$0xff]  ;;  %v1045_v25 = vadd.f32 %v5157_v8, %v5290_v43  ;;  %2187 = vmatpush.msrb.mxu0 %v1623_v17  ;;  %v7650_v17 = vmax.f32 %v5172_v55, 0.0 }
 0x264   : > { %8021 = vst [vmem:[#allocation19_spill] sm:$0xff] %v5369_v19  ;;  %v7640_v44 = vmax.f32 %v5369_v19, 0.0  ;;  %v1719_v8 = vld [vmem:[#allocation8 + $0x3c8] sm:$0xff]  ;;  %v8028_v19 = vld [vmem:[#allocation27_spill] sm:$0xff] }
 0x265   : > { %v1309_v59 = vpop.f32.mrf.mxu2  ;;  %v1422_v42 = vpop.f32.mrf.mxu3  ;;  %2413 = vmatpush.msrb.mxu2 %v1687_v20  ;;  %2526 = vmatpush.msrb.mxu3 %v1719_v8  ;;  %v1048_v20 = vadd.f32 %v5168_v61, %v5290_v43  ;;  %v8030_v8 = vld [vmem:[#allocation28_spill] sm:$0xff] }
 0x266   : > { %v1310_v9 = vadd.f32 %v1309_v59, %v5132_v7  ;;  %v5343_v15 = vpop.f32.mrf.mxu0  ;;  %v5345_v12 = vpop.f32.mrf.mxu1  ;;  %v5366_v59 = vadd.f32 %v8019_v62, %v590_v50  ;;  %v593_v50 = vadd.f32 %v8023_v49, %v5288_v24  ;;  %v8024_v49 = vld [vmem:[#allocation25_spill] sm:$0xff]  ;;  %v8033_v55 = vld [vmem:[#allocation32_spill] sm:$0xff] }
 0x267   : > { %v5427_v61 = vadd.f32 %v5170_v13, %v1048_v20  ;;  %v7658_v13 = vmax.f32 %v5183_v40, 0.0  ;;  %v1051_v20 = vadd.f32 %v5179_v36, %v5290_v43  ;;  %v1717_v36 = vld [vmem:[#allocation8 + $0x3b8] sm:$0xff] }
 0x268   : > { %v5355_v56 = vadd.f32 %v1422_v42, %v1310_v9  ;;  %8020 = vst [vmem:[#allocation18_spill] sm:$0xff] %v5366_v59  ;;  %2527 = vmatpush.msrb.mxu3 %v1717_v36  ;;  %v8041_v36 = vld [vmem:[#allocation34_spill] sm:$0xff] }
 0x269   : > { %1751 = vmatmul.f32.gmra.mxu0 %v7629_v6  ;;  %1864 = vmatmul.f32.gmra.mxu1 %v7631_v34  ;;  %8032 = vst [vmem:[#allocation27_spill] sm:$0xff] %v5427_v61 }
 0x26a   : > { %8018 = vst [vmem:[#allocation17_spill] sm:$0xff] %v5355_v56  ;;  %1977 = vmatmul.f32.gmra.mxu2 %v7632_v48  ;;  %2090 = vmatmul.f32.gmra.mxu3 %v7634_v11  ;;  %v7638_v48 = vmax.f32 %v5366_v59, 0.0  ;;  %v7639_v11 = vmax.f32 %v8022_v3, 0.0  ;;  %v596_v3 = vadd.f32 %v8028_v19, %v5288_v24  ;;  %v1655_v19 = vld [vmem:[#allocation8 + $0x1c8] sm:$0xff]  ;;  %v1621_v59 = vld [vmem:[#allocation8 + $0xb8] sm:$0xff] }
 0x26b   : > { %2300 = vmatpush.msrb.mxu1 %v1655_v19  ;;  %v7656_v19 = vmax.f32 %v5427_v61, 0.0  ;;  %2188 = vmatpush.msrb.mxu0 %v1621_v59  ;;  %v8039_v61 = vld [vmem:[#allocation33_spill] sm:$0xff]  ;;  %v7666_v59 = vmax.f32 %v5194_v41, 0.0  ;;  %v8044_v41 = vld [vmem:[#allocation38_spill] sm:$0xff] }
 0x26d   : > { %v1312_v42 = vpop.f32.mrf.mxu2  ;;  %v1425_v9 = vpop.f32.mrf.mxu3 }
 0x26e   : > { %v1313_v6 = vadd.f32 %v1312_v42, %v5132_v7  ;;  %v5372_v10 = vpop.f32.mrf.mxu0  ;;  %v5374_v34 = vpop.f32.mrf.mxu1  ;;  %v5395_v42 = vadd.f32 %v8024_v49, %v593_v50  ;;  %v8027_v49 = vld [vmem:[#allocation29_spill] sm:$0xff] }
 0x270   : > { %v5384_v62 = vadd.f32 %v1425_v9, %v1313_v6  ;;  %8025 = vst [vmem:[#allocation21_spill] sm:$0xff] %v5395_v42  ;;  %v5398_v6 = vadd.f32 %v5159_v57, %v1045_v25  ;;  %v7645_v50 = vmax.f32 %v5395_v42, 0.0  ;;  %v1685_v42 = vld [vmem:[#allocation8 + $0x2b8] sm:$0xff] }
 0x271   : > { %1754 = vmatmul.f32.gmra.mxu0 %v7638_v48  ;;  %1867 = vmatmul.f32.gmra.mxu1 %v7639_v11 }
 0x272   : > { %1980 = vmatmul.f32.gmra.mxu2 %v7640_v44  ;;  %2093 = vmatmul.f32.gmra.mxu3 %v7642_v2  ;;  %8026 = vst [vmem:[#allocation22_spill] sm:$0xff] %v5398_v6  ;;  %v7647_v2 = vmax.f32 %v8027_v49, 0.0  ;;  %v7648_v57 = vmax.f32 %v5398_v6, 0.0  ;;  %v8034_v6 = vld [vmem:[#allocation30_spill] sm:$0xff] }
 0x273   : > { %2414 = vmatpush.msrb.mxu2 %v1685_v42  ;;  %v1054_v42 = vadd.f32 %v5190_v18, %v5290_v43 }
 0x275   : > { %v1315_v9 = vpop.f32.mrf.mxu2  ;;  %v1428_v48 = vpop.f32.mrf.mxu3  ;;  %v5485_v18 = vadd.f32 %v5192_v53, %v1054_v42  ;;  %v7674_v53 = vmax.f32 %v5205_v46, 0.0  ;;  %v1057_v42 = vadd.f32 %v5201_v26, %v5290_v43  ;;  %v1715_v26 = vld [vmem:[#allocation8 + $0x3a8] sm:$0xff] }
 0x276   : > { %v1316_v11 = vadd.f32 %v1315_v9, %v5132_v7  ;;  %v5401_v44 = vpop.f32.mrf.mxu0  ;;  %v5403_v54 = vpop.f32.mrf.mxu1  ;;  %v5424_v9 = vadd.f32 %v8030_v8, %v596_v3  ;;  %v599_v3 = vadd.f32 %v8034_v6, %v5288_v24  ;;  %v8035_v6 = vld [vmem:[#allocation31_spill] sm:$0xff]  ;;  %2528 = vmatpush.msrb.mxu3 %v1715_v26  ;;  %v8052_v26 = vld [vmem:[#allocation40_spill] sm:$0xff] }
 0x277   : > { %8043 = vst [vmem:[#allocation34_spill] sm:$0xff] %v5485_v18 }
 0x278   : > { %v5413_v25 = vadd.f32 %v1428_v48, %v1316_v11  ;;  %8031 = vst [vmem:[#allocation25_spill] sm:$0xff] %v5424_v9 }
 0x279   : > { %1757 = vmatmul.f32.gmra.mxu0 %v7645_v50  ;;  %1870 = vmatmul.f32.gmra.mxu1 %v7647_v2 }
 0x27a   : > { %8029 = vst [vmem:[#allocation24_spill] sm:$0xff] %v5413_v25  ;;  %1983 = vmatmul.f32.gmra.mxu2 %v7648_v57  ;;  %2096 = vmatmul.f32.gmra.mxu3 %v7650_v17  ;;  %v7654_v57 = vmax.f32 %v5424_v9, 0.0  ;;  %v7655_v17 = vmax.f32 %v8033_v55, 0.0  ;;  %v602_v55 = vadd.f32 %v8039_v61, %v5288_v24  ;;  %v1653_v61 = vld [vmem:[#allocation8 + $0x1b8] sm:$0xff]  ;;  %v1619_v9 = vld [vmem:[#allocation8 + $0xa8] sm:$0xff] }
 0x27b   : > { %2301 = vmatpush.msrb.mxu1 %v1653_v61  ;;  %v7672_v61 = vmax.f32 %v5485_v18, 0.0  ;;  %2189 = vmatpush.msrb.mxu0 %v1619_v9  ;;  %v8050_v18 = vld [vmem:[#allocation39_spill] sm:$0xff]  ;;  %v7682_v9 = vmax.f32 %v5216_v47, 0.0  ;;  %v8055_v47 = vld [vmem:[#allocation46_spill] sm:$0xff] }
 0x27d   : > { %v1318_v48 = vpop.f32.mrf.mxu2  ;;  %v1431_v11 = vpop.f32.mrf.mxu3 }
 0x27e   : > { %v1319_v50 = vadd.f32 %v1318_v48, %v5132_v7  ;;  %v5430_v49 = vpop.f32.mrf.mxu0  ;;  %v5432_v2 = vpop.f32.mrf.mxu1  ;;  %v5453_v48 = vadd.f32 %v8035_v6, %v599_v3  ;;  %v8038_v6 = vld [vmem:[#allocation35_spill] sm:$0xff] }
 0x280   : > { %v5442_v8 = vadd.f32 %v1431_v11, %v1319_v50  ;;  %8036 = vst [vmem:[#allocation28_spill] sm:$0xff] %v5453_v48  ;;  %v5456_v50 = vadd.f32 %v5181_v37, %v1051_v20  ;;  %v7661_v3 = vmax.f32 %v5453_v48, 0.0  ;;  %v1683_v48 = vld [vmem:[#allocation8 + $0x2a8] sm:$0xff] }
 0x281   : > { %1760 = vmatmul.f32.gmra.mxu0 %v7654_v57  ;;  %1873 = vmatmul.f32.gmra.mxu1 %v7655_v17 }
 0x282   : > { %1986 = vmatmul.f32.gmra.mxu2 %v7656_v19  ;;  %2099 = vmatmul.f32.gmra.mxu3 %v7658_v13  ;;  %8037 = vst [vmem:[#allocation30_spill] sm:$0xff] %v5456_v50  ;;  %v7663_v13 = vmax.f32 %v8038_v6, 0.0  ;;  %v7664_v37 = vmax.f32 %v5456_v50, 0.0  ;;  %v8045_v50 = vld [vmem:[#allocation36_spill] sm:$0xff] }
 0x283   : > { %2415 = vmatpush.msrb.mxu2 %v1683_v48  ;;  %v1060_v48 = vadd.f32 %v5212_v58, %v5290_v43 }
 0x285   : > { %v1321_v11 = vpop.f32.mrf.mxu2  ;;  %v1434_v57 = vpop.f32.mrf.mxu3  ;;  %v5543_v58 = vadd.f32 %v5214_v63, %v1060_v48  ;;  %v7690_v63 = vmax.f32 %v5227_v32, 0.0  ;;  %v1063_v48 = vadd.f32 %v5223_v21, %v5290_v43  ;;  %v1713_v21 = vld [vmem:[#allocation8 + $0x398] sm:$0xff] }
 0x286   : > { %v1322_v17 = vadd.f32 %v1321_v11, %v5132_v7  ;;  %v5459_v19 = vpop.f32.mrf.mxu0  ;;  %v5461_v40 = vpop.f32.mrf.mxu1  ;;  %v5482_v11 = vadd.f32 %v8041_v36, %v602_v55  ;;  %v605_v55 = vadd.f32 %v8045_v50, %v5288_v24  ;;  %v8046_v50 = vld [vmem:[#allocation37_spill] sm:$0xff]  ;;  %2529 = vmatpush.msrb.mxu3 %v1713_v21  ;;  %v8063_v21 = vld [vmem:[#allocation48_spill] sm:$0xff] }
 0x287   : > { %8054 = vst [vmem:[#allocation133_spill] sm:$0xff] %v5543_v58 }
 0x288   : > { %v5471_v20 = vadd.f32 %v1434_v57, %v1322_v17  ;;  %8042 = vst [vmem:[#allocation33_spill] sm:$0xff] %v5482_v11 }
 0x289   : > { %1763 = vmatmul.f32.gmra.mxu0 %v7661_v3  ;;  %1876 = vmatmul.f32.gmra.mxu1 %v7663_v13 }
 0x28a   : > { %8040 = vst [vmem:[#allocation31_spill] sm:$0xff] %v5471_v20  ;;  %1989 = vmatmul.f32.gmra.mxu2 %v7664_v37  ;;  %2102 = vmatmul.f32.gmra.mxu3 %v7666_v59  ;;  %v7670_v37 = vmax.f32 %v5482_v11, 0.0  ;;  %v7671_v59 = vmax.f32 %v8044_v41, 0.0  ;;  %v608_v41 = vadd.f32 %v8050_v18, %v5288_v24  ;;  %v1651_v18 = vld [vmem:[#allocation8 + $0x1a8] sm:$0xff]  ;;  %v1617_v11 = vld [vmem:[#allocation8 + $0x98] sm:$0xff] }
 0x28b   : > { %2302 = vmatpush.msrb.mxu1 %v1651_v18  ;;  %v7688_v18 = vmax.f32 %v5543_v58, 0.0  ;;  %2190 = vmatpush.msrb.mxu0 %v1617_v11  ;;  %v8061_v58 = vld [vmem:[#allocation47_spill] sm:$0xff]  ;;  %v7698_v11 = vmax.f32 %v5238_v33, 0.0  ;;  %v8066_v33 = vld [vmem:[#allocation56_spill] sm:$0xff] }
 0x28d   : > { %v1324_v57 = vpop.f32.mrf.mxu2  ;;  %v1437_v17 = vpop.f32.mrf.mxu3 }
 0x28e   : > { %v1325_v3 = vadd.f32 %v1324_v57, %v5132_v7  ;;  %v5488_v6 = vpop.f32.mrf.mxu0  ;;  %v5490_v13 = vpop.f32.mrf.mxu1  ;;  %v5511_v57 = vadd.f32 %v8046_v50, %v605_v55  ;;  %v8049_v50 = vld [vmem:[#allocation41_spill] sm:$0xff] }
 0x290   : > { %v5500_v36 = vadd.f32 %v1437_v17, %v1325_v3  ;;  %8047 = vst [vmem:[#allocation36_spill] sm:$0xff] %v5511_v57  ;;  %v5514_v3 = vadd.f32 %v5203_v27, %v1057_v42  ;;  %v7677_v55 = vmax.f32 %v5511_v57, 0.0  ;;  %v1681_v57 = vld [vmem:[#allocation8 + $0x298] sm:$0xff] }
 0x291   : > { %1766 = vmatmul.f32.gmra.mxu0 %v7670_v37  ;;  %1879 = vmatmul.f32.gmra.mxu1 %v7671_v59 }
 0x292   : > { %1992 = vmatmul.f32.gmra.mxu2 %v7672_v61  ;;  %2105 = vmatmul.f32.gmra.mxu3 %v7674_v53  ;;  %8048 = vst [vmem:[#allocation37_spill] sm:$0xff] %v5514_v3  ;;  %v7679_v53 = vmax.f32 %v8049_v50, 0.0  ;;  %v7680_v27 = vmax.f32 %v5514_v3, 0.0  ;;  %v8056_v3 = vld [vmem:[#allocation42_spill] sm:$0xff] }
 0x293   : > { %2416 = vmatpush.msrb.mxu2 %v1681_v57  ;;  %v1066_v57 = vadd.f32 %v5234_v60, %v5290_v43 }
 0x295   : > { %v1327_v17 = vpop.f32.mrf.mxu2  ;;  %v1440_v37 = vpop.f32.mrf.mxu3  ;;  %v5601_v60 = vadd.f32 %v5236_v38, %v1066_v57  ;;  %v7706_v38 = vmax.f32 %v5249_v30, 0.0  ;;  %v1069_v57 = vadd.f32 %v5245_v52, %v5290_v43  ;;  %v1711_v52 = vld [vmem:[#allocation8 + $0x388] sm:$0xff] }
 0x296   : > { %v1328_v59 = vadd.f32 %v1327_v17, %v5132_v7  ;;  %v5517_v61 = vpop.f32.mrf.mxu0  ;;  %v5519_v46 = vpop.f32.mrf.mxu1  ;;  %v5540_v17 = vadd.f32 %v8052_v26, %v608_v41  ;;  %v611_v41 = vadd.f32 %v8056_v3, %v5288_v24  ;;  %v8057_v3 = vld [vmem:[#allocation43_spill] sm:$0xff]  ;;  %2530 = vmatpush.msrb.mxu3 %v1711_v52  ;;  %v8074_v52 = vld [vmem:[#allocation58_spill] sm:$0xff] }
 0x297   : > { %8065 = vst [vmem:[#allocation134_spill] sm:$0xff] %v5601_v60 }
 0x298   : > { %v5529_v42 = vadd.f32 %v1440_v37, %v1328_v59  ;;  %8053 = vst [vmem:[#allocation40_spill] sm:$0xff] %v5540_v17 }
 0x299   : > { %1769 = vmatmul.f32.gmra.mxu0 %v7677_v55  ;;  %1882 = vmatmul.f32.gmra.mxu1 %v7679_v53 }
 0x29a   : > { %8051 = vst [vmem:[#allocation39_spill] sm:$0xff] %v5529_v42  ;;  %1995 = vmatmul.f32.gmra.mxu2 %v7680_v27  ;;  %2108 = vmatmul.f32.gmra.mxu3 %v7682_v9  ;;  %v7686_v27 = vmax.f32 %v5540_v17, 0.0  ;;  %v7687_v9 = vmax.f32 %v8055_v47, 0.0  ;;  %v614_v47 = vadd.f32 %v8061_v58, %v5288_v24  ;;  %v1649_v58 = vld [vmem:[#allocation8 + $0x198] sm:$0xff]  ;;  %v1615_v17 = vld [vmem:[#allocation8 + $0x88] sm:$0xff] }
 0x29b   : > { %2303 = vmatpush.msrb.mxu1 %v1649_v58  ;;  %v7704_v58 = vmax.f32 %v5601_v60, 0.0  ;;  %2191 = vmatpush.msrb.mxu0 %v1615_v17  ;;  %v8072_v60 = vld [vmem:[#allocation57_spill] sm:$0xff]  ;;  %v7714_v17 = vmax.f32 %v5260_v31, 0.0  ;;  %v8078_v31 = vld [vmem:[#allocation66_spill] sm:$0xff] }
 0x29d   : > { %v1330_v37 = vpop.f32.mrf.mxu2  ;;  %v1443_v59 = vpop.f32.mrf.mxu3 }
 0x29e   : > { %v1331_v55 = vadd.f32 %v1330_v37, %v5132_v7  ;;  %v5546_v50 = vpop.f32.mrf.mxu0  ;;  %v5548_v53 = vpop.f32.mrf.mxu1  ;;  %v5569_v37 = vadd.f32 %v8057_v3, %v611_v41  ;;  %v8060_v3 = vld [vmem:[#allocation51_spill] sm:$0xff] }
 0x2a0   : > { %v5558_v26 = vadd.f32 %v1443_v59, %v1331_v55  ;;  %8058 = vst [vmem:[#allocation42_spill] sm:$0xff] %v5569_v37  ;;  %v5572_v55 = vadd.f32 %v5225_v5, %v1063_v48  ;;  %v7693_v41 = vmax.f32 %v5569_v37, 0.0  ;;  %v1679_v37 = vld [vmem:[#allocation8 + $0x288] sm:$0xff] }
 0x2a1   : > { %1772 = vmatmul.f32.gmra.mxu0 %v7686_v27  ;;  %1885 = vmatmul.f32.gmra.mxu1 %v7687_v9 }
 0x2a2   : > { %1998 = vmatmul.f32.gmra.mxu2 %v7688_v18  ;;  %2111 = vmatmul.f32.gmra.mxu3 %v7690_v63  ;;  %8059 = vst [vmem:[#allocation43_spill] sm:$0xff] %v5572_v55  ;;  %v7695_v63 = vmax.f32 %v8060_v3, 0.0  ;;  %v7696_v5 = vmax.f32 %v5572_v55, 0.0  ;;  %v8067_v55 = vld [vmem:[#allocation52_spill] sm:$0xff] }
 0x2a3   : > { %2417 = vmatpush.msrb.mxu2 %v1679_v37  ;;  %v1072_v37 = vadd.f32 %v5256_v51, %v5290_v43 }
 0x2a5   : > { %v1333_v59 = vpop.f32.mrf.mxu2  ;;  %v1446_v27 = vpop.f32.mrf.mxu3  ;;  %v5659_v51 = vadd.f32 %v5258_v16, %v1072_v37  ;;  %v7721_v16 = vmax.f32 %v5271_v0, 0.0  ;;  %v1075_v37 = vadd.f32 %v5267_v28, %v5290_v43  ;;  %v8084_v0 = vld [vmem:[#allocation70_spill] sm:$0xff] }
 0x2a6   : > { %v1334_v9 = vadd.f32 %v1333_v59, %v5132_v7  ;;  %v5575_v18 = vpop.f32.mrf.mxu0  ;;  %v5577_v32 = vpop.f32.mrf.mxu1  ;;  %v5598_v59 = vadd.f32 %v8063_v21, %v614_v47  ;;  %v617_v47 = vadd.f32 %v8067_v55, %v5288_v24  ;;  %v8068_v55 = vld [vmem:[#allocation53_spill] sm:$0xff] }
 0x2a7   : > { %8076 = vst [vmem:[#allocation135_spill] sm:$0xff] %v5659_v51  ;;  %v5688_v28 = vadd.f32 %v5269_v29, %v1075_v37  ;;  %v7730_v29 = vmax.f32 %v5282_v1, 0.0 }
 0x2a8   : > { %v5587_v48 = vadd.f32 %v1446_v27, %v1334_v9  ;;  %8064 = vst [vmem:[#allocation48_spill] sm:$0xff] %v5598_v59 }
 0x2a9   : > { %1775 = vmatmul.f32.gmra.mxu0 %v7693_v41  ;;  %1888 = vmatmul.f32.gmra.mxu1 %v7695_v63  ;;  %8083 = vst [vmem:[#allocation137_spill] sm:$0xff] %v5688_v28 }
 0x2aa   : > { %8062 = vst [vmem:[#allocation47_spill] sm:$0xff] %v5587_v48  ;;  %2001 = vmatmul.f32.gmra.mxu2 %v7696_v5  ;;  %2114 = vmatmul.f32.gmra.mxu3 %v7698_v11  ;;  %v7702_v5 = vmax.f32 %v5598_v59, 0.0  ;;  %v7703_v11 = vmax.f32 %v8066_v33, 0.0  ;;  %v620_v33 = vadd.f32 %v8072_v60, %v5288_v24  ;;  %v1647_v60 = vld [vmem:[#allocation8 + $0x188] sm:$0xff]  ;;  %v8081_v59 = vld [vmem:[#allocation63_spill] sm:$0xff] }
 0x2ab   : > { %2304 = vmatpush.msrb.mxu1 %v1647_v60  ;;  %v7719_v60 = vmax.f32 %v5659_v51, 0.0  ;;  %v7726_v51 = vmax.f32 %v8084_v0, 0.0  ;;  %v1707_v0 = vld [vmem:[#allocation8 + $0x368] sm:$0xff] }
 0x2ad   : > { %v1336_v27 = vpop.f32.mrf.mxu2  ;;  %v1449_v9 = vpop.f32.mrf.mxu3 }
 0x2ae   : > { %v1337_v41 = vadd.f32 %v1336_v27, %v5132_v7  ;;  %v5604_v3 = vpop.f32.mrf.mxu0  ;;  %v5606_v63 = vpop.f32.mrf.mxu1  ;;  %v5627_v27 = vadd.f32 %v8068_v55, %v617_v47  ;;  %v8071_v55 = vld [vmem:[#allocation61_spill] sm:$0xff] }
 0x2b0   : > { %v5616_v21 = vadd.f32 %v1449_v9, %v1337_v41  ;;  %8069 = vst [vmem:[#allocation52_spill] sm:$0xff] %v5627_v27  ;;  %v5630_v41 = vadd.f32 %v5247_v4, %v1069_v57  ;;  %v7709_v47 = vmax.f32 %v5627_v27, 0.0  ;;  %v1709_v27 = vld [vmem:[#allocation8 + $0x378] sm:$0xff] }
 0x2b1   : > { %1778 = vmatmul.f32.gmra.mxu0 %v7702_v5  ;;  %1891 = vmatmul.f32.gmra.mxu1 %v7703_v11 }
 0x2b2   : > { %2004 = vmatmul.f32.gmra.mxu2 %v7704_v58  ;;  %2117 = vmatmul.f32.gmra.mxu3 %v7706_v38  ;;  %8070 = vst [vmem:[#allocation53_spill] sm:$0xff] %v5630_v41  ;;  %v7711_v38 = vmax.f32 %v8071_v55, 0.0  ;;  %v7712_v4 = vmax.f32 %v5630_v41, 0.0  ;;  %v8079_v41 = vld [vmem:[#allocation62_spill] sm:$0xff] }
 0x2b3   : > { %2531 = vmatpush.msrb.mxu3 %v1709_v27  ;;  %v1078_v27 = vadd.f32 %v5278_v39, %v5290_v43 }
 0x2b5   : > { %v1339_v9 = vpop.f32.mrf.mxu2  ;;  %v1452_v5 = vpop.f32.mrf.mxu3  ;;  %v5717_v39 = vadd.f32 %v5280_v14, %v1078_v27  ;;  %v7737_v14 = vmax.f32 %v5301_v45, 0.0  ;;  %v1081_v27 = vadd.f32 %v5293_v35, %v5290_v43  ;;  %2532 = vmatpush.msrb.mxu3 %v1707_v0  ;;  %v8097_v45 = vld [vmem:[#allocation77_spill] sm:$0xff] }
 0x2b6   : > { %v1340_v11 = vadd.f32 %v1339_v9, %v5132_v7  ;;  %v5633_v58 = vpop.f32.mrf.mxu0  ;;  %v5635_v30 = vpop.f32.mrf.mxu1  ;;  %v5656_v9 = vadd.f32 %v8074_v52, %v620_v33  ;;  %v623_v33 = vadd.f32 %v8079_v41, %v5288_v24  ;;  %v1677_v41 = vld [vmem:[#allocation8 + $0x278] sm:$0xff] }
 0x2b7   : > { %2418 = vmatpush.msrb.mxu2 %v1677_v41  ;;  %v7727_v41 = vmax.f32 %v5688_v28, 0.0  ;;  %8089 = vst [vmem:[#allocation138_spill] sm:$0xff] %v5717_v39  ;;  %v8090_v28 = vld [vmem:[#allocation74_spill] sm:$0xff]  ;;  %v5746_v35 = vadd.f32 %v5295_v22, %v1081_v27  ;;  %v7749_v27 = vmax.f32 %v5326_v23, 0.0 }
 0x2b8   : > { %v5645_v57 = vadd.f32 %v1452_v5, %v1340_v11  ;;  %8075 = vst [vmem:[#allocation58_spill] sm:$0xff] %v5656_v9  ;;  %v7734_v1 = vmax.f32 %v8090_v28, 0.0 }
 0x2b9   : > { %1781 = vmatmul.f32.gmra.mxu0 %v7709_v47  ;;  %1894 = vmatmul.f32.gmra.mxu1 %v7711_v38  ;;  %8095 = vst [vmem:[#allocation139_spill] sm:$0xff] %v5746_v35  ;;  %v7746_v0 = vmax.f32 %v5746_v35, 0.0  ;;  %v8105_v35 = vld [vmem:[#allocation80_spill] sm:$0xff] }
 0x2ba   : > { %8073 = vst [vmem:[#allocation57_spill] sm:$0xff] %v5645_v57  ;;  %2007 = vmatmul.f32.gmra.mxu2 %v7712_v4  ;;  %2120 = vmatmul.f32.gmra.mxu3 %v7714_v17  ;;  %v7720_v4 = vmax.f32 %v5656_v9, 0.0  ;;  %v7718_v17 = vmax.f32 %v8078_v31, 0.0  ;;  %v8093_v31 = vld [vmem:[#allocation72_spill] sm:$0xff]  ;;  %v7750_v23 = vmax.f32 %v8105_v35, 0.0 }
 0x2bd   : > { %v1342_v5 = vpop.f32.mrf.mxu2  ;;  %v1455_v11 = vpop.f32.mrf.mxu3 }
 0x2be   : > { %v1343_v47 = vadd.f32 %v1342_v5, %v5132_v7  ;;  %v5662_v55 = vpop.f32.mrf.mxu0  ;;  %v5664_v38 = vpop.f32.mrf.mxu1  ;;  %v1613_v5 = vld [vmem:[#allocation8 + $0x78] sm:$0xff] }
 0x2bf   : > { %8077 = vst [vmem:[#allocation136_spill] sm:$0xff] %v5664_v38  ;;  %v5685_v38 = vadd.f32 %v8081_v59, %v623_v33  ;;  %2192 = vmatpush.msrb.mxu0 %v1613_v5  ;;  %v8085_v59 = vld [vmem:[#allocation67_spill] sm:$0xff] }
 0x2c0   : > { %v5674_v52 = vadd.f32 %v1455_v11, %v1343_v47  ;;  %v626_v33 = vadd.f32 %v8085_v59, %v5288_v24  ;;  %v1645_v5 = vld [vmem:[#allocation8 + $0x178] sm:$0xff] }
 0x2c1   : > { %1784 = vmatmul.f32.gmra.mxu0 %v7720_v4  ;;  %1897 = vmatmul.f32.gmra.mxu1 %v7718_v17  ;;  %8082 = vst [vmem:[#allocation63_spill] sm:$0xff] %v5685_v38 }
 0x2c2   : > { %8080 = vst [vmem:[#allocation62_spill] sm:$0xff] %v5674_v52  ;;  %2010 = vmatmul.f32.gmra.mxu2 %v7719_v60  ;;  %2123 = vmatmul.f32.gmra.mxu3 %v7721_v16  ;;  %v7724_v16 = vmax.f32 %v5685_v38, 0.0 }
 0x2c3   : > { %2305 = vmatpush.msrb.mxu1 %v1645_v5  ;;  %v7735_v5 = vmax.f32 %v5717_v39, 0.0  ;;  %v7742_v39 = vmax.f32 %v8097_v45, 0.0 }
 0x2c5   : > { %v1345_v47 = vpop.f32.mrf.mxu2  ;;  %v1458_v11 = vpop.f32.mrf.mxu3 }
 0x2c6   : > { %v1346_v17 = vadd.f32 %v1345_v47, %v5132_v7  ;;  %v5691_v60 = vpop.f32.mrf.mxu0  ;;  %v5693_v4 = vpop.f32.mrf.mxu1  ;;  %v8087_v47 = vld [vmem:[#allocation68_spill] sm:$0xff] }
 0x2c7   : > { %v5714_v59 = vadd.f32 %v8087_v47, %v626_v33 }
 0x2c8   : > { %v5703_v37 = vadd.f32 %v1458_v11, %v1346_v17 }
 0x2c9   : > { %1787 = vmatmul.f32.gmra.mxu0 %v7724_v16  ;;  %1900 = vmatmul.f32.gmra.mxu1 %v7726_v51  ;;  %8088 = vst [vmem:[#allocation68_spill] sm:$0xff] %v5714_v59 }
 0x2ca   : > { %8086 = vst [vmem:[#allocation67_spill] sm:$0xff] %v5703_v37  ;;  %2013 = vmatmul.f32.gmra.mxu2 %v7727_v41  ;;  %2126 = vmatmul.f32.gmra.mxu3 %v7730_v29  ;;  %v7736_v41 = vmax.f32 %v5714_v59, 0.0  ;;  %v8091_v29 = vld [vmem:[#allocation71_spill] sm:$0xff] }
 0x2cb   : > { %v629_v33 = vadd.f32 %v8091_v29, %v5288_v24  ;;  %v1675_v29 = vld [vmem:[#allocation8 + $0x268] sm:$0xff] }
 0x2cc   : > { %2419 = vmatpush.msrb.mxu2 %v1675_v29  ;;  %v8099_v29 = vld [vmem:[#allocation64_spill] sm:$0xff] }
 0x2cd   : > { %v1348_v17 = vpop.f32.mrf.mxu2  ;;  %v1461_v11 = vpop.f32.mrf.mxu3  ;;  %v5743_v9 = vadd.f32 %v8093_v31, %v629_v33  ;;  %v8098_v31 = vld [vmem:[#allocation75_spill] sm:$0xff]  ;;  %v1084_v22 = vadd.f32 %v8099_v29, %v5290_v43  ;;  %v8101_v29 = vld [vmem:[#allocation76_spill] sm:$0xff] }
 0x2ce   : > { %v1349_v16 = vadd.f32 %v1348_v17, %v5132_v7  ;;  %v5720_v38 = vpop.f32.mrf.mxu0  ;;  %v5722_v51 = vpop.f32.mrf.mxu1  ;;  %v1611_v17 = vld [vmem:[#allocation8 + $0x68] sm:$0xff]  ;;  %v632_v33 = vadd.f32 %v8098_v31, %v5288_v24  ;;  %v1726_v31 = vld [vmem:[%s7560_s4] sm:$0x3] }
 0x2cf   : > { %8094 = vst [vmem:[#allocation72_spill] sm:$0xff] %v5743_v9  ;;  %2193 = vmatpush.msrb.mxu0 %v1611_v17 }
 0x2d0   : > { %v5732_v47 = vadd.f32 %v1461_v11, %v1349_v16 }
 0x2d1   : > { %1790 = vmatmul.f32.gmra.mxu0 %v7736_v41  ;;  %1903 = vmatmul.f32.gmra.mxu1 %v7734_v1 }
 0x2d2   : > { %8092 = vst [vmem:[#allocation71_spill] sm:$0xff] %v5732_v47  ;;  %2016 = vmatmul.f32.gmra.mxu2 %v7735_v5  ;;  %2129 = vmatmul.f32.gmra.mxu3 %v7737_v14  ;;  %v7741_v14 = vmax.f32 %v5743_v9, 0.0 }
 0x2d5   : > { %v1351_v16 = vpop.f32.mrf.mxu2  ;;  %v1464_v11 = vpop.f32.mrf.mxu3 }
 0x2d6   : > { %v1352_v1 = vadd.f32 %v1351_v16, %v5132_v7  ;;  %v5749_v5 = vpop.f32.mrf.mxu0  ;;  %v5751_v41 = vpop.f32.mrf.mxu1  ;;  %v1643_v16 = vld [vmem:[#allocation8 + $0x168] sm:$0xff] }
 0x2d7   : > { %8096 = vst [vmem:[#allocation140_spill] sm:$0xff] %v5751_v41  ;;  %2306 = vmatpush.msrb.mxu1 %v1643_v16  ;;  %v1087_v16 = vadd.f32 %v5343_v15, %v5290_v43  ;;  %v8108_v15 = vld [vmem:[#allocation79_spill] sm:$0xff] }
 0x2d8   : > { %v5761_v17 = vadd.f32 %v1464_v11, %v1352_v1  ;;  %v5775_v1 = vadd.f32 %v8101_v29, %v632_v33  ;;  %v8103_v11 = vld [vmem:[#allocation65_spill] sm:$0xff] }
 0x2d9   : > { %1793 = vmatmul.f32.gmra.mxu0 %v7741_v14  ;;  %1906 = vmatmul.f32.gmra.mxu1 %v7742_v39  ;;  %v5778_v28 = vadd.f32 %v8103_v11, %v1084_v22  ;;  %v5780_v14 = vperm.slane %v1726_v31, 0  ;;  %v7755_v22 = vmax.f32 %v5355_v56, 0.0  ;;  %v1705_v11 = vld [vmem:[#allocation8 + $0x358] sm:$0xff] }
 0x2da   : > { %8100 = vst [vmem:[#allocation75_spill] sm:$0xff] %v5761_v17  ;;  %2019 = vmatmul.f32.gmra.mxu2 %v7746_v0  ;;  %2132 = vmatmul.f32.gmra.mxu3 %v7749_v27  ;;  %v7751_v0 = vmax.f32 %v5775_v1, 0.0  ;;  %v8106_v27 = vld [vmem:[#allocation78_spill] sm:$0xff]  ;;  %v8109_v56 = vld [vmem:[#allocation83_spill] sm:$0xff] }
 0x2db   : > { %8102 = vst [vmem:[#allocation64_spill] sm:$0xff] %v5775_v1  ;;  %v635_v33 = vadd.f32 %v8106_v27, %v5288_v24  ;;  %v7753_v29 = vmax.f32 %v5778_v28, 0.0  ;;  %v1609_v27 = vld [vmem:[#allocation8 + $0x58] sm:$0xff]  ;;  %2533 = vmatpush.msrb.mxu3 %v1705_v11  ;;  %v7759_v1 = vmax.f32 %v8109_v56, 0.0 }
 0x2dc   : > { %8104 = vst [vmem:[#allocation76_spill] sm:$0xff] %v5778_v28  ;;  %2194 = vmatpush.msrb.mxu0 %v1609_v27 }
 0x2dd   : > { %v1354_v39 = vpop.f32.mrf.mxu2  ;;  %v1467_v45 = vpop.f32.mrf.mxu3 }
 0x2de   : > { %v1355_v9 = vadd.f32 %v1354_v39, %v5132_v7  ;;  %v1749_v59 = vpop.f32.mrf.mxu0  ;;  %v1862_v41 = vpop.f32.mrf.mxu1  ;;  %v1673_v39 = vld [vmem:[#allocation8 + $0x258] sm:$0xff] }
 0x2df   : > { %v1750_v7 = vadd.f32 %v1749_v59, %v5780_v14  ;;  %2420 = vmatpush.msrb.mxu2 %v1673_v39  ;;  %v1090_v39 = vadd.f32 %v5372_v10, %v5290_v43  ;;  %v8112_v10 = vld [vmem:[#allocation82_spill] sm:$0xff] }
 0x2e0   : > { %v5791_v31 = vadd.f32 %v1467_v45, %v1355_v9  ;;  %v5803_v45 = vadd.f32 %v8108_v15, %v635_v33  ;;  %v5806_v9 = vadd.f32 %v5345_v12, %v1087_v16 }
 0x2e1   : > { %1796 = vmatmul.f32.gmra.mxu0 %v7751_v0  ;;  %1909 = vmatmul.f32.gmra.mxu1 %v7750_v23  ;;  %v1863_v59 = vadd.f32 %v1862_v41, %v1750_v7  ;;  %v7762_v41 = vmax.f32 %v5384_v62, 0.0  ;;  %v1641_v7 = vld [vmem:[#allocation8 + $0x158] sm:$0xff] }
 0x2e2   : > { %8107 = vst [vmem:[#allocation65_spill] sm:$0xff] %v5791_v31  ;;  %2022 = vmatmul.f32.gmra.mxu2 %v7753_v29  ;;  %2135 = vmatmul.f32.gmra.mxu3 %v7755_v22  ;;  %v7760_v22 = vmax.f32 %v5803_v45, 0.0  ;;  %v8110_v31 = vld [vmem:[#allocation81_spill] sm:$0xff]  ;;  %v7761_v12 = vmax.f32 %v5806_v9, 0.0 }
 0x2e3   : > { %v638_v33 = vadd.f32 %v8110_v31, %v5288_v24  ;;  %2307 = vmatpush.msrb.mxu1 %v1641_v7  ;;  %v1703_v7 = vld [vmem:[#allocation8 + $0x348] sm:$0xff] }
 0x2e4   : > { %2534 = vmatpush.msrb.mxu3 %v1703_v7 }
 0x2e5   : > { %v1975_v23 = vpop.f32.mrf.mxu2  ;;  %v2088_v0 = vpop.f32.mrf.mxu3  ;;  %v5828_v31 = vadd.f32 %v8112_v10, %v638_v33  ;;  %v7766_v10 = vmax.f32 %v5413_v25, 0.0 }
 0x2e6   : > { %v1976_v28 = vadd.f32 %v1975_v23, %v1863_v59  ;;  %v1752_v29 = vpop.f32.mrf.mxu0  ;;  %v1865_v35 = vpop.f32.mrf.mxu1 }
 0x2e7   : > { %v1753_v23 = vadd.f32 %v1752_v29, %v5780_v14 }
 0x2e8   : > { %v5816_v16 = vadd.f32 %v2088_v0, %v1976_v28  ;;  %v5831_v28 = vadd.f32 %v5374_v34, %v1090_v39  ;;  %v1093_v34 = vadd.f32 %v5401_v44, %v5290_v43  ;;  %v8117_v44 = vld [vmem:[#allocation85_spill] sm:$0xff] }
 0x2e9   : > { %1799 = vmatmul.f32.gmra.mxu0 %v7760_v22  ;;  %1912 = vmatmul.f32.gmra.mxu1 %v7759_v1  ;;  %v1866_v0 = vadd.f32 %v1865_v35, %v1753_v23  ;;  %v7765_v1 = vmax.f32 %v5828_v31, 0.0  ;;  %v8114_v22 = vld [vmem:[#allocation86_spill] sm:$0xff]  ;;  %v1607_v23 = vld [vmem:[#allocation8 + $0x48] sm:$0xff] }
 0x2ea   : > { %8111 = vst [vmem:[#allocation78_spill] sm:$0xff] %v5816_v16  ;;  %2025 = vmatmul.f32.gmra.mxu2 %v7761_v12  ;;  %2138 = vmatmul.f32.gmra.mxu3 %v7762_v41  ;;  %v7763_v12 = vmax.f32 %v8114_v22, 0.0  ;;  %v8115_v16 = vld [vmem:[#allocation84_spill] sm:$0xff]  ;;  %v7764_v33 = vmax.f32 %v5831_v28, 0.0 }
 0x2eb   : > { %8113 = vst [vmem:[#allocation79_spill] sm:$0xff] %v5831_v28  ;;  %v641_v41 = vadd.f32 %v8115_v16, %v5288_v24  ;;  %v1671_v16 = vld [vmem:[#allocation8 + $0x248] sm:$0xff]  ;;  %2195 = vmatpush.msrb.mxu0 %v1607_v23  ;;  %v8119_v28 = vld [vmem:[#allocation87_spill] sm:$0xff] }
 0x2ec   : > { %2421 = vmatpush.msrb.mxu2 %v1671_v16  ;;  %v1096_v16 = vadd.f32 %v5430_v49, %v5290_v43  ;;  %v1639_v23 = vld [vmem:[#allocation8 + $0x148] sm:$0xff] }
 0x2ed   : > { %v1978_v29 = vpop.f32.mrf.mxu2  ;;  %v2091_v27 = vpop.f32.mrf.mxu3  ;;  %v8121_v49 = vld [vmem:[#allocation88_spill] sm:$0xff]  ;;  %2308 = vmatpush.msrb.mxu1 %v1639_v23  ;;  %v1701_v23 = vld [vmem:[#allocation8 + $0x338] sm:$0xff] }
 0x2ee   : > { %v1979_v11 = vadd.f32 %v1978_v29, %v1866_v0  ;;  %v1755_v15 = vpop.f32.mrf.mxu0  ;;  %v1868_v59 = vpop.f32.mrf.mxu1  ;;  %v5853_v0 = vadd.f32 %v8117_v44, %v641_v41  ;;  %v5856_v29 = vadd.f32 %v5403_v54, %v1093_v34  ;;  %v644_v41 = vadd.f32 %v8119_v28, %v5288_v24  ;;  %2535 = vmatpush.msrb.mxu3 %v1701_v23 }
 0x2ef   : > { %v1756_v39 = vadd.f32 %v1755_v15, %v5780_v14 }
 0x2f0   : > { %v5841_v35 = vadd.f32 %v2091_v27, %v1979_v11  ;;  %v7771_v54 = vmax.f32 %v5856_v29, 0.0  ;;  %v5878_v28 = vadd.f32 %v8121_v49, %v644_v41  ;;  %v7776_v49 = vmax.f32 %v5471_v20, 0.0 }
 0x2f1   : > { %1802 = vmatmul.f32.gmra.mxu0 %v7765_v1  ;;  %1915 = vmatmul.f32.gmra.mxu1 %v7763_v12  ;;  %v1869_v27 = vadd.f32 %v1868_v59, %v1756_v39  ;;  %v7772_v59 = vmax.f32 %v5442_v8, 0.0 }
 0x2f2   : > { %8116 = vst [vmem:[#allocation83_spill] sm:$0xff] %v5841_v35  ;;  %2028 = vmatmul.f32.gmra.mxu2 %v7764_v33  ;;  %2141 = vmatmul.f32.gmra.mxu3 %v7766_v10  ;;  %v7770_v10 = vmax.f32 %v5853_v0, 0.0  ;;  %v8118_v35 = vld [vmem:[#allocation89_spill] sm:$0xff] }
 0x2f3   : > { %v7769_v25 = vmax.f32 %v8118_v35, 0.0 }
 0x2f5   : > { %v1981_v11 = vpop.f32.mrf.mxu2  ;;  %v2094_v15 = vpop.f32.mrf.mxu3 }
 0x2f6   : > { %v1982_v12 = vadd.f32 %v1981_v11, %v1869_v27  ;;  %v1758_v33 = vpop.f32.mrf.mxu0  ;;  %v1871_v1 = vpop.f32.mrf.mxu1 }
 0x2f7   : > { %v1759_v39 = vadd.f32 %v1758_v33, %v5780_v14 }
 0x2f8   : > { %v5866_v34 = vadd.f32 %v2094_v15, %v1982_v12  ;;  %v5881_v12 = vadd.f32 %v5432_v2, %v1096_v16  ;;  %v1099_v2 = vadd.f32 %v5459_v19, %v5290_v43  ;;  %v8126_v19 = vld [vmem:[#allocation91_spill] sm:$0xff] }
 0x2f9   : > { %1805 = vmatmul.f32.gmra.mxu0 %v7770_v10  ;;  %1918 = vmatmul.f32.gmra.mxu1 %v7769_v25  ;;  %v1872_v33 = vadd.f32 %v1871_v1, %v1759_v39  ;;  %v7775_v25 = vmax.f32 %v5878_v28, 0.0  ;;  %v8123_v10 = vld [vmem:[#allocation92_spill] sm:$0xff]  ;;  %v1605_v39 = vld [vmem:[#allocation8 + $0x38] sm:$0xff] }
 0x2fa   : > { %8120 = vst [vmem:[#allocation81_spill] sm:$0xff] %v5866_v34  ;;  %2031 = vmatmul.f32.gmra.mxu2 %v7771_v54  ;;  %2144 = vmatmul.f32.gmra.mxu3 %v7772_v59  ;;  %v7773_v54 = vmax.f32 %v8123_v10, 0.0  ;;  %v8124_v34 = vld [vmem:[#allocation90_spill] sm:$0xff]  ;;  %v7774_v41 = vmax.f32 %v5881_v12, 0.0 }
 0x2fb   : > { %8122 = vst [vmem:[#allocation82_spill] sm:$0xff] %v5881_v12  ;;  %v647_v59 = vadd.f32 %v8124_v34, %v5288_v24  ;;  %v1669_v34 = vld [vmem:[#allocation8 + $0x238] sm:$0xff]  ;;  %2196 = vmatpush.msrb.mxu0 %v1605_v39  ;;  %v8128_v12 = vld [vmem:[#allocation93_spill] sm:$0xff] }
 0x2fc   : > { %2422 = vmatpush.msrb.mxu2 %v1669_v34  ;;  %v1102_v34 = vadd.f32 %v5488_v6, %v5290_v43  ;;  %v1637_v39 = vld [vmem:[#allocation8 + $0x138] sm:$0xff] }
 0x2fd   : > { %v1984_v7 = vpop.f32.mrf.mxu2  ;;  %v2097_v44 = vpop.f32.mrf.mxu3  ;;  %v8130_v6 = vld [vmem:[#allocation94_spill] sm:$0xff]  ;;  %2309 = vmatpush.msrb.mxu1 %v1637_v39  ;;  %v1699_v39 = vld [vmem:[#allocation8 + $0x328] sm:$0xff] }
 0x2fe   : > { %v1985_v27 = vadd.f32 %v1984_v7, %v1872_v33  ;;  %v1761_v11 = vpop.f32.mrf.mxu0  ;;  %v1874_v15 = vpop.f32.mrf.mxu1  ;;  %v5903_v33 = vadd.f32 %v8126_v19, %v647_v59  ;;  %v5906_v7 = vadd.f32 %v5461_v40, %v1099_v2  ;;  %v650_v59 = vadd.f32 %v8128_v12, %v5288_v24  ;;  %2536 = vmatpush.msrb.mxu3 %v1699_v39 }
 0x2ff   : > { %v1762_v16 = vadd.f32 %v1761_v11, %v5780_v14 }
 0x300   : > { %v5891_v1 = vadd.f32 %v2097_v44, %v1985_v27  ;;  %v7781_v40 = vmax.f32 %v5906_v7, 0.0  ;;  %v5928_v12 = vadd.f32 %v8130_v6, %v650_v59  ;;  %v7786_v6 = vmax.f32 %v5529_v42, 0.0 }
 0x301   : > { %1808 = vmatmul.f32.gmra.mxu0 %v7775_v25  ;;  %1921 = vmatmul.f32.gmra.mxu1 %v7773_v54  ;;  %v1875_v44 = vadd.f32 %v1874_v15, %v1762_v16  ;;  %v7782_v15 = vmax.f32 %v5500_v36, 0.0 }
 0x302   : > { %8125 = vst [vmem:[#allocation86_spill] sm:$0xff] %v5891_v1  ;;  %2034 = vmatmul.f32.gmra.mxu2 %v7774_v41  ;;  %2147 = vmatmul.f32.gmra.mxu3 %v7776_v49  ;;  %v7780_v49 = vmax.f32 %v5903_v33, 0.0  ;;  %v8127_v1 = vld [vmem:[#allocation95_spill] sm:$0xff] }
 0x303   : > { %v7779_v20 = vmax.f32 %v8127_v1, 0.0 }
 0x305   : > { %v1987_v27 = vpop.f32.mrf.mxu2  ;;  %v2100_v11 = vpop.f32.mrf.mxu3 }
 0x306   : > { %v1988_v54 = vadd.f32 %v1987_v27, %v1875_v44  ;;  %v1764_v41 = vpop.f32.mrf.mxu0  ;;  %v1877_v25 = vpop.f32.mrf.mxu1 }
 0x307   : > { %v1765_v16 = vadd.f32 %v1764_v41, %v5780_v14 }
 0x308   : > { %v5916_v2 = vadd.f32 %v2100_v11, %v1988_v54  ;;  %v5931_v54 = vadd.f32 %v5490_v13, %v1102_v34  ;;  %v1105_v13 = vadd.f32 %v5517_v61, %v5290_v43  ;;  %v8135_v61 = vld [vmem:[#allocation97_spill] sm:$0xff] }
 0x309   : > { %1811 = vmatmul.f32.gmra.mxu0 %v7780_v49  ;;  %1924 = vmatmul.f32.gmra.mxu1 %v7779_v20  ;;  %v1878_v41 = vadd.f32 %v1877_v25, %v1765_v16  ;;  %v7785_v20 = vmax.f32 %v5928_v12, 0.0  ;;  %v8132_v49 = vld [vmem:[#allocation98_spill] sm:$0xff]  ;;  %v1603_v16 = vld [vmem:[#allocation8 + $0x28] sm:$0xff] }
 0x30a   : > { %8129 = vst [vmem:[#allocation84_spill] sm:$0xff] %v5916_v2  ;;  %2037 = vmatmul.f32.gmra.mxu2 %v7781_v40  ;;  %2150 = vmatmul.f32.gmra.mxu3 %v7782_v15  ;;  %v7783_v40 = vmax.f32 %v8132_v49, 0.0  ;;  %v8133_v2 = vld [vmem:[#allocation96_spill] sm:$0xff]  ;;  %v7784_v59 = vmax.f32 %v5931_v54, 0.0 }
 0x30b   : > { %8131 = vst [vmem:[#allocation85_spill] sm:$0xff] %v5931_v54  ;;  %v653_v15 = vadd.f32 %v8133_v2, %v5288_v24  ;;  %v1667_v2 = vld [vmem:[#allocation8 + $0x228] sm:$0xff]  ;;  %2197 = vmatpush.msrb.mxu0 %v1603_v16  ;;  %v8137_v54 = vld [vmem:[#allocation99_spill] sm:$0xff] }
 0x30c   : > { %2423 = vmatpush.msrb.mxu2 %v1667_v2  ;;  %v1108_v2 = vadd.f32 %v5546_v50, %v5290_v43  ;;  %v1635_v16 = vld [vmem:[#allocation8 + $0x128] sm:$0xff] }
 0x30d   : > { %v1990_v23 = vpop.f32.mrf.mxu2  ;;  %v2103_v19 = vpop.f32.mrf.mxu3  ;;  %v8139_v50 = vld [vmem:[#allocation100_spill] sm:$0xff]  ;;  %2310 = vmatpush.msrb.mxu1 %v1635_v16  ;;  %v1697_v16 = vld [vmem:[#allocation8 + $0x318] sm:$0xff] }
 0x30e   : > { %v1991_v44 = vadd.f32 %v1990_v23, %v1878_v41  ;;  %v1767_v27 = vpop.f32.mrf.mxu0  ;;  %v1880_v11 = vpop.f32.mrf.mxu1  ;;  %v5953_v41 = vadd.f32 %v8135_v61, %v653_v15  ;;  %v5956_v23 = vadd.f32 %v5519_v46, %v1105_v13  ;;  %v656_v15 = vadd.f32 %v8137_v54, %v5288_v24  ;;  %2537 = vmatpush.msrb.mxu3 %v1697_v16 }
 0x30f   : > { %v1768_v34 = vadd.f32 %v1767_v27, %v5780_v14 }
 0x310   : > { %v5941_v25 = vadd.f32 %v2103_v19, %v1991_v44  ;;  %v7791_v46 = vmax.f32 %v5956_v23, 0.0  ;;  %v5978_v54 = vadd.f32 %v8139_v50, %v656_v15  ;;  %v7796_v50 = vmax.f32 %v5587_v48, 0.0 }
 0x311   : > { %1814 = vmatmul.f32.gmra.mxu0 %v7785_v20  ;;  %1927 = vmatmul.f32.gmra.mxu1 %v7783_v40  ;;  %v1881_v19 = vadd.f32 %v1880_v11, %v1768_v34  ;;  %v7792_v11 = vmax.f32 %v5558_v26, 0.0 }
 0x312   : > { %8134 = vst [vmem:[#allocation89_spill] sm:$0xff] %v5941_v25  ;;  %2040 = vmatmul.f32.gmra.mxu2 %v7784_v59  ;;  %2153 = vmatmul.f32.gmra.mxu3 %v7786_v6  ;;  %v7790_v6 = vmax.f32 %v5953_v41, 0.0  ;;  %v8136_v25 = vld [vmem:[#allocation101_spill] sm:$0xff] }
 0x313   : > { %v7789_v42 = vmax.f32 %v8136_v25, 0.0 }
 0x315   : > { %v1993_v44 = vpop.f32.mrf.mxu2  ;;  %v2106_v27 = vpop.f32.mrf.mxu3 }
 0x316   : > { %v1994_v40 = vadd.f32 %v1993_v44, %v1881_v19  ;;  %v1770_v59 = vpop.f32.mrf.mxu0  ;;  %v1883_v20 = vpop.f32.mrf.mxu1 }
 0x317   : > { %v1771_v34 = vadd.f32 %v1770_v59, %v5780_v14 }
 0x318   : > { %v5966_v13 = vadd.f32 %v2106_v27, %v1994_v40  ;;  %v5981_v40 = vadd.f32 %v5548_v53, %v1108_v2  ;;  %v1111_v53 = vadd.f32 %v5575_v18, %v5290_v43  ;;  %v8144_v18 = vld [vmem:[#allocation103_spill] sm:$0xff] }
 0x319   : > { %1817 = vmatmul.f32.gmra.mxu0 %v7790_v6  ;;  %1930 = vmatmul.f32.gmra.mxu1 %v7789_v42  ;;  %v1884_v59 = vadd.f32 %v1883_v20, %v1771_v34  ;;  %v7795_v42 = vmax.f32 %v5978_v54, 0.0  ;;  %v8141_v6 = vld [vmem:[#allocation104_spill] sm:$0xff]  ;;  %v1601_v34 = vld [vmem:[#allocation8 + $0x18] sm:$0xff] }
 0x31a   : > { %8138 = vst [vmem:[#allocation87_spill] sm:$0xff] %v5966_v13  ;;  %2043 = vmatmul.f32.gmra.mxu2 %v7791_v46  ;;  %2156 = vmatmul.f32.gmra.mxu3 %v7792_v11  ;;  %v7793_v46 = vmax.f32 %v8141_v6, 0.0  ;;  %v8142_v13 = vld [vmem:[#allocation102_spill] sm:$0xff]  ;;  %v7794_v15 = vmax.f32 %v5981_v40, 0.0 }
 0x31b   : > { %8140 = vst [vmem:[#allocation88_spill] sm:$0xff] %v5981_v40  ;;  %v659_v11 = vadd.f32 %v8142_v13, %v5288_v24  ;;  %v1665_v13 = vld [vmem:[#allocation8 + $0x218] sm:$0xff]  ;;  %2198 = vmatpush.msrb.mxu0 %v1601_v34  ;;  %v8146_v40 = vld [vmem:[#allocation105_spill] sm:$0xff] }
 0x31c   : > { %2424 = vmatpush.msrb.mxu2 %v1665_v13  ;;  %v1114_v13 = vadd.f32 %v5604_v3, %v5290_v43  ;;  %v1633_v34 = vld [vmem:[#allocation8 + $0x118] sm:$0xff] }
 0x31d   : > { %v1996_v39 = vpop.f32.mrf.mxu2  ;;  %v2109_v61 = vpop.f32.mrf.mxu3  ;;  %v8148_v3 = vld [vmem:[#allocation106_spill] sm:$0xff]  ;;  %2311 = vmatpush.msrb.mxu1 %v1633_v34  ;;  %v1695_v34 = vld [vmem:[#allocation8 + $0x308] sm:$0xff] }
 0x31e   : > { %v1997_v19 = vadd.f32 %v1996_v39, %v1884_v59  ;;  %v1773_v44 = vpop.f32.mrf.mxu0  ;;  %v1886_v27 = vpop.f32.mrf.mxu1  ;;  %v6003_v59 = vadd.f32 %v8144_v18, %v659_v11  ;;  %v6006_v39 = vadd.f32 %v5577_v32, %v1111_v53  ;;  %v662_v11 = vadd.f32 %v8146_v40, %v5288_v24  ;;  %2538 = vmatpush.msrb.mxu3 %v1695_v34 }
 0x31f   : > { %v1774_v2 = vadd.f32 %v1773_v44, %v5780_v14 }
 0x320   : > { %v5991_v20 = vadd.f32 %v2109_v61, %v1997_v19  ;;  %v7801_v32 = vmax.f32 %v6006_v39, 0.0  ;;  %v6028_v40 = vadd.f32 %v8148_v3, %v662_v11  ;;  %v7806_v3 = vmax.f32 %v5645_v57, 0.0 }
 0x321   : > { %1820 = vmatmul.f32.gmra.mxu0 %v7795_v42  ;;  %1933 = vmatmul.f32.gmra.mxu1 %v7793_v46  ;;  %v1887_v61 = vadd.f32 %v1886_v27, %v1774_v2  ;;  %v7802_v27 = vmax.f32 %v5616_v21, 0.0 }
 0x322   : > { %8143 = vst [vmem:[#allocation92_spill] sm:$0xff] %v5991_v20  ;;  %2046 = vmatmul.f32.gmra.mxu2 %v7794_v15  ;;  %2159 = vmatmul.f32.gmra.mxu3 %v7796_v50  ;;  %v7800_v50 = vmax.f32 %v6003_v59, 0.0  ;;  %v8145_v20 = vld [vmem:[#allocation107_spill] sm:$0xff] }
 0x323   : > { %v7799_v48 = vmax.f32 %v8145_v20, 0.0 }
 0x325   : > { %v1999_v19 = vpop.f32.mrf.mxu2  ;;  %v2112_v44 = vpop.f32.mrf.mxu3 }
 0x326   : > { %v2000_v46 = vadd.f32 %v1999_v19, %v1887_v61  ;;  %v1776_v15 = vpop.f32.mrf.mxu0  ;;  %v1889_v42 = vpop.f32.mrf.mxu1 }
 0x327   : > { %v1777_v2 = vadd.f32 %v1776_v15, %v5780_v14 }
 0x328   : > { %v6016_v53 = vadd.f32 %v2112_v44, %v2000_v46  ;;  %v6031_v46 = vadd.f32 %v5606_v63, %v1114_v13  ;;  %v1117_v63 = vadd.f32 %v5633_v58, %v5290_v43  ;;  %v8153_v58 = vld [vmem:[#allocation109_spill] sm:$0xff] }
 0x329   : > { %1823 = vmatmul.f32.gmra.mxu0 %v7800_v50  ;;  %1936 = vmatmul.f32.gmra.mxu1 %v7799_v48  ;;  %v1890_v15 = vadd.f32 %v1889_v42, %v1777_v2  ;;  %v7805_v48 = vmax.f32 %v6028_v40, 0.0  ;;  %v8150_v50 = vld [vmem:[#allocation110_spill] sm:$0xff]  ;;  %v1599_v2 = vld [vmem:[#allocation8 + $0x8] sm:$0xff] }
 0x32a   : > { %8147 = vst [vmem:[#allocation90_spill] sm:$0xff] %v6016_v53  ;;  %2049 = vmatmul.f32.gmra.mxu2 %v7801_v32  ;;  %2162 = vmatmul.f32.gmra.mxu3 %v7802_v27  ;;  %v7803_v32 = vmax.f32 %v8150_v50, 0.0  ;;  %v8151_v53 = vld [vmem:[#allocation108_spill] sm:$0xff]  ;;  %v7804_v11 = vmax.f32 %v6031_v46, 0.0 }
 0x32b   : > { %8149 = vst [vmem:[#allocation91_spill] sm:$0xff] %v6031_v46  ;;  %v665_v27 = vadd.f32 %v8151_v53, %v5288_v24  ;;  %v1663_v53 = vld [vmem:[#allocation8 + $0x208] sm:$0xff]  ;;  %2199 = vmatpush.msrb.mxu0 %v1599_v2  ;;  %v8155_v46 = vld [vmem:[#allocation111_spill] sm:$0xff] }
 0x32c   : > { %2425 = vmatpush.msrb.mxu2 %v1663_v53  ;;  %v1120_v53 = vadd.f32 %v5662_v55, %v5290_v43  ;;  %v1631_v2 = vld [vmem:[#allocation8 + $0x108] sm:$0xff] }
 0x32d   : > { %v2002_v16 = vpop.f32.mrf.mxu2  ;;  %v2115_v18 = vpop.f32.mrf.mxu3  ;;  %v8157_v55 = vld [vmem:[#allocation112_spill] sm:$0xff]  ;;  %2312 = vmatpush.msrb.mxu1 %v1631_v2 }
 0x32e   : > { %v2003_v61 = vadd.f32 %v2002_v16, %v1890_v15  ;;  %v1779_v19 = vpop.f32.mrf.mxu0  ;;  %v1892_v44 = vpop.f32.mrf.mxu1  ;;  %v6053_v15 = vadd.f32 %v8153_v58, %v665_v27  ;;  %v6056_v16 = vadd.f32 %v5635_v30, %v1117_v63  ;;  %v668_v27 = vadd.f32 %v8155_v46, %v5288_v24 }
 0x32f   : > { %v1780_v13 = vadd.f32 %v1779_v19, %v5780_v14 }
 0x330   : > { %v6041_v42 = vadd.f32 %v2115_v18, %v2003_v61  ;;  %v7811_v30 = vmax.f32 %v6056_v16, 0.0  ;;  %v6078_v46 = vadd.f32 %v8157_v55, %v668_v27  ;;  %v7820_v55 = vmax.f32 %v5703_v37, 0.0 }
 0x331   : > { %1826 = vmatmul.f32.gmra.mxu0 %v7805_v48  ;;  %1939 = vmatmul.f32.gmra.mxu1 %v7803_v32  ;;  %v1893_v18 = vadd.f32 %v1892_v44, %v1780_v13  ;;  %v7813_v44 = vmax.f32 %v5674_v52, 0.0  ;;  %v8160_v52 = vld [vmem:[#allocation114_spill] sm:$0xff] }
 0x332   : > { %8152 = vst [vmem:[#allocation95_spill] sm:$0xff] %v6041_v42  ;;  %2052 = vmatmul.f32.gmra.mxu2 %v7804_v11  ;;  %2165 = vmatmul.f32.gmra.mxu3 %v7806_v3  ;;  %v7809_v3 = vmax.f32 %v6053_v15, 0.0  ;;  %v8154_v42 = vld [vmem:[#allocation113_spill] sm:$0xff] }
 0x333   : > { %v7810_v57 = vmax.f32 %v8154_v42, 0.0 }
 0x335   : > { %v2005_v61 = vpop.f32.mrf.mxu2  ;;  %v2118_v19 = vpop.f32.mrf.mxu3 }
 0x336   : > { %v2006_v32 = vadd.f32 %v2005_v61, %v1893_v18  ;;  %v1782_v11 = vpop.f32.mrf.mxu0  ;;  %v1895_v48 = vpop.f32.mrf.mxu1 }
 0x337   : > { %v1783_v13 = vadd.f32 %v1782_v11, %v5780_v14 }
 0x338   : > { %v6066_v63 = vadd.f32 %v2118_v19, %v2006_v32  ;;  %v8158_v32 = vld [vmem:[#allocation136_spill] sm:$0xff] }
 0x339   : > { %1829 = vmatmul.f32.gmra.mxu0 %v7809_v3  ;;  %1942 = vmatmul.f32.gmra.mxu1 %v7810_v57  ;;  %v6081_v34 = vadd.f32 %v8158_v32, %v1120_v53  ;;  %v1896_v11 = vadd.f32 %v1895_v48, %v1783_v13  ;;  %v7815_v57 = vmax.f32 %v6078_v46, 0.0  ;;  %v1123_v53 = vadd.f32 %v5691_v60, %v5290_v43 }
 0x33a   : > { %8156 = vst [vmem:[#allocation93_spill] sm:$0xff] %v6066_v63  ;;  %2055 = vmatmul.f32.gmra.mxu2 %v7811_v30  ;;  %2168 = vmatmul.f32.gmra.mxu3 %v7813_v44  ;;  %v8159_v63 = vld [vmem:[#allocation116_spill] sm:$0xff]  ;;  %v671_v44 = vadd.f32 %v8160_v52, %v5288_v24  ;;  %v8162_v52 = vld [vmem:[#allocation115_spill] sm:$0xff] }
 0x33b   : > { %v7814_v30 = vmax.f32 %v8159_v63, 0.0  ;;  %v7816_v27 = vmax.f32 %v6081_v34, 0.0  ;;  %v6106_v60 = vadd.f32 %v5693_v4, %v1123_v53  ;;  %v7823_v4 = vmax.f32 %v5732_v47, 0.0 }
 0x33c   : > { %v6103_v2 = vadd.f32 %v8162_v52, %v671_v44  ;;  %v1126_v44 = vadd.f32 %v5720_v38, %v5290_v43  ;;  %v8166_v38 = vld [vmem:[#allocation118_spill] sm:$0xff] }
 0x33d   : > { %v2008_v58 = vpop.f32.mrf.mxu2  ;;  %v2121_v18 = vpop.f32.mrf.mxu3  ;;  %v7821_v52 = vmax.f32 %v6106_v60, 0.0 }
 0x33e   : > { %v2009_v61 = vadd.f32 %v2008_v58, %v1896_v11  ;;  %v1785_v19 = vpop.f32.mrf.mxu0  ;;  %v1898_v3 = vpop.f32.mrf.mxu1 }
 0x33f   : > { %v1786_v13 = vadd.f32 %v1785_v19, %v5780_v14 }
 0x340   : > { %v6091_v48 = vadd.f32 %v2121_v18, %v2009_v61 }
 0x341   : > { %1832 = vmatmul.f32.gmra.mxu0 %v7815_v57  ;;  %1945 = vmatmul.f32.gmra.mxu1 %v7814_v30  ;;  %v1899_v32 = vadd.f32 %v1898_v3, %v1786_v13  ;;  %v7818_v30 = vmax.f32 %v6103_v2, 0.0  ;;  %v8163_v57 = vld [vmem:[#allocation119_spill] sm:$0xff]  ;;  %v6131_v13 = vadd.f32 %v5722_v51, %v1126_v44  ;;  %v1129_v51 = vadd.f32 %v5749_v5, %v5290_v43  ;;  %v8171_v43 = vld [vmem:[#allocation140_spill] sm:$0xff] }
 0x342   : > { %8161 = vst [vmem:[#allocation94_spill] sm:$0xff] %v6091_v48  ;;  %2058 = vmatmul.f32.gmra.mxu2 %v7816_v27  ;;  %2171 = vmatmul.f32.gmra.mxu3 %v7820_v55  ;;  %v7819_v48 = vmax.f32 %v8163_v57, 0.0  ;;  %v8164_v27 = vld [vmem:[#allocation117_spill] sm:$0xff]  ;;  %v8167_v55 = vld [vmem:[#allocation122_spill] sm:$0xff] }
 0x343   : > { %v674_v37 = vadd.f32 %v8164_v27, %v5288_v24  ;;  %v6156_v5 = vadd.f32 %v8171_v43, %v1129_v51 }
 0x345   : > { %v2011_v11 = vpop.f32.mrf.mxu2  ;;  %v2124_v58 = vpop.f32.mrf.mxu3  ;;  %v6128_v27 = vadd.f32 %v8166_v38, %v674_v37  ;;  %v7827_v37 = vmax.f32 %v5761_v17, 0.0 }
 0x346   : > { %v2012_v18 = vadd.f32 %v2011_v11, %v1899_v32  ;;  %v1788_v61 = vpop.f32.mrf.mxu0  ;;  %v1901_v19 = vpop.f32.mrf.mxu1 }
 0x347   : > { %v1789_v53 = vadd.f32 %v1788_v61, %v5780_v14 }
 0x348   : > { %v6116_v3 = vadd.f32 %v2124_v58, %v2012_v18 }
 0x349   : > { %1835 = vmatmul.f32.gmra.mxu0 %v7818_v30  ;;  %1948 = vmatmul.f32.gmra.mxu1 %v7819_v48  ;;  %v1902_v32 = vadd.f32 %v1901_v19, %v1789_v53  ;;  %v7825_v48 = vmax.f32 %v6128_v27, 0.0 }
 0x34a   : > { %8165 = vst [vmem:[#allocation98_spill] sm:$0xff] %v6116_v3  ;;  %2061 = vmatmul.f32.gmra.mxu2 %v7821_v52  ;;  %2174 = vmatmul.f32.gmra.mxu3 %v7823_v4  ;;  %v7824_v3 = vmax.f32 %v8167_v55, 0.0  ;;  %v8168_v52 = vld [vmem:[#allocation120_spill] sm:$0xff]  ;;  %v7826_v4 = vmax.f32 %v6131_v13, 0.0 }
 0x34b   : > { %v677_v47 = vadd.f32 %v8168_v52, %v5288_v24  ;;  %v8170_v24 = vld [vmem:[#allocation121_spill] sm:$0xff] }
 0x34d   : > { %v2014_v11 = vpop.f32.mrf.mxu2  ;;  %v2127_v58 = vpop.f32.mrf.mxu3  ;;  %v6153_v52 = vadd.f32 %v8170_v24, %v677_v47 }
 0x34e   : > { %v2015_v18 = vadd.f32 %v2014_v11, %v1902_v32  ;;  %v1791_v61 = vpop.f32.mrf.mxu0  ;;  %v1904_v30 = vpop.f32.mrf.mxu1 }
 0x34f   : > { %v1792_v44 = vadd.f32 %v1791_v61, %v5780_v14  ;;  %v7830_v61 = vmax.f32 %v6153_v52, 0.0 }
 0x350   : > { %v6141_v19 = vadd.f32 %v2127_v58, %v2015_v18 }
 0x351   : > { %1838 = vmatmul.f32.gmra.mxu0 %v7825_v48  ;;  %1951 = vmatmul.f32.gmra.mxu1 %v7824_v3  ;;  %v1905_v53 = vadd.f32 %v1904_v30, %v1792_v44  ;;  %v8172_v3 = vld [vmem:[#allocation123_spill] sm:$0xff] }
 0x352   : > { %8169 = vst [vmem:[#allocation96_spill] sm:$0xff] %v6141_v19  ;;  %2064 = vmatmul.f32.gmra.mxu2 %v7826_v4  ;;  %2177 = vmatmul.f32.gmra.mxu3 %v7827_v37  ;;  %v7829_v48 = vmax.f32 %v8172_v3, 0.0  ;;  %v7831_v4 = vmax.f32 %v6156_v5, 0.0  ;;  %v8173_v19 = vld [vmem:[#allocation65_spill] sm:$0xff] }
 0x353   : > { %v7832_v37 = vmax.f32 %v8173_v19, 0.0 }
 0x355   : > { %v2017_v38 = vpop.f32.mrf.mxu2  ;;  %v2130_v32 = vpop.f32.mrf.mxu3 }
 0x356   : > { %v2018_v11 = vadd.f32 %v2017_v38, %v1905_v53  ;;  %v1794_v58 = vpop.f32.mrf.mxu0  ;;  %v1907_v18 = vpop.f32.mrf.mxu1 }
 0x357   : > { %v1795_v47 = vadd.f32 %v1794_v58, %v5780_v14 }
 0x358   : > { %v6162_v17 = vadd.f32 %v2130_v32, %v2018_v11  ;;  %v8176_v11 = vld [vmem:[#allocation59_spill] sm:$0xff] }
 0x359   : > { %1841 = vmatmul.f32.gmra.mxu0 %v7830_v61  ;;  %1954 = vmatmul.f32.gmra.mxu1 %v7829_v48  ;;  %v1908_v30 = vadd.f32 %v1907_v18, %v1795_v47  ;;  %v8177_v58 = vmax.f32 %v8176_v11, 0.0  ;;  %v8178_v48 = vld [vmem:[#allocation20_spill] sm:$0xff] }
 0x35a   : > { %8174 = vst [vmem:[#allocation97_spill] sm:$0xff] %v6162_v17  ;;  %2067 = vmatmul.f32.gmra.mxu2 %v7831_v4  ;;  %2180 = vmatmul.f32.gmra.mxu3 %v7832_v37  ;;  %v8179_v61 = vmax.f32 %v8178_v48, 0.0  ;;  %v8180_v4 = vld [vmem:[#allocation60_spill] sm:$0xff]  ;;  %v8187_v48 = vld [vmem:[#allocation23_spill] sm:$0xff] }
 0x35b   : > { %v8181_v17 = vmax.f32 %v8180_v4, 0.0  ;;  %v8182_v37 = vld [vmem:[#allocation124_spill] sm:$0xff] }
 0x35c   : > { %v8183_v18 = vmax.f32 %v8182_v37, 0.0  ;;  %v8185_v11 = vld [vmem:[#allocation16_spill] sm:$0xff]  ;;  %v8191_v37 = vld [vmem:[#allocation125_spill] sm:$0xff] }
 0x35d   : > { %v2020_v51 = vpop.f32.mrf.mxu2  ;;  %v2133_v44 = vpop.f32.mrf.mxu3 }
 0x35e   : > { %v2021_v24 = vadd.f32 %v2020_v51, %v1908_v30  ;;  %v1797_v43 = vpop.f32.mrf.mxu0  ;;  %v1910_v53 = vpop.f32.mrf.mxu1 }
 0x35f   : > { %v1798_v32 = vadd.f32 %v1797_v43, %v5780_v14 }
 0x360   : > { %v6173_v38 = vadd.f32 %v2133_v44, %v2021_v24 }
 0x361   : > { %2200 = vmatmul.f32.vlgmr.msrb.gmra.mxu0 %v8177_v58  ;;  %2313 = vmatmul.f32.vlgmr.msrb.gmra.mxu1 %v8179_v61  ;;  %v1911_v47 = vadd.f32 %v1910_v53, %v1798_v32  ;;  %v8186_v58 = vmax.f32 %v8185_v11, 0.0  ;;  %v8188_v61 = vmax.f32 %v8187_v48, 0.0  ;;  %v8192_v53 = vmax.f32 %v8191_v37, 0.0  ;;  %v8194_v11 = vld [vmem:[#allocation18_spill] sm:$0xff] }
 0x362   : > { %8175 = vst [vmem:[#allocation101_spill] sm:$0xff] %v6173_v38  ;;  %2426 = vmatmul.f32.vlgmr.msrb.gmra.mxu2 %v8181_v17  ;;  %2539 = vmatmul.f32.vlgmr.msrb.gmra.mxu3 %v8183_v18  ;;  %v8189_v17 = vld [vmem:[#allocation73_spill] sm:$0xff]  ;;  %v8196_v48 = vld [vmem:[#allocation26_spill] sm:$0xff] }
 0x363   : > { %v8190_v4 = vmax.f32 %v8189_v17, 0.0  ;;  %v8198_v17 = vld [vmem:[#allocation19_spill] sm:$0xff]  ;;  %v8200_v37 = vld [vmem:[#allocation126_spill] sm:$0xff] }
 0x365   : > { %v2023_v30 = vpop.f32.mrf.mxu2  ;;  %v2136_v51 = vpop.f32.mrf.mxu3 }
 0x366   : > { %v2024_v19 = vadd.f32 %v2023_v30, %v1911_v47  ;;  %v1800_v44 = vpop.f32.mrf.mxu0  ;;  %v1913_v24 = vpop.f32.mrf.mxu1 }
 0x367   : > { %v1801_v43 = vadd.f32 %v1800_v44, %v5780_v14 }
 0x368   : > { %v6184_v38 = vadd.f32 %v2136_v51, %v2024_v19 }
 0x369   : > { %2203 = vmatmul.f32.gmra.mxu0 %v8186_v58  ;;  %2316 = vmatmul.f32.gmra.mxu1 %v8188_v61  ;;  %v1914_v32 = vadd.f32 %v1913_v24, %v1801_v43  ;;  %v8195_v58 = vmax.f32 %v8194_v11, 0.0  ;;  %v8197_v61 = vmax.f32 %v8196_v48, 0.0  ;;  %v8201_v24 = vmax.f32 %v8200_v37, 0.0  ;;  %v8203_v11 = vld [vmem:[#allocation21_spill] sm:$0xff]  ;;  %v8209_v37 = vld [vmem:[#allocation127_spill] sm:$0xff] }
 0x36a   : > { %8184 = vst [vmem:[#allocation99_spill] sm:$0xff] %v6184_v38  ;;  %2429 = vmatmul.f32.gmra.mxu2 %v8190_v4  ;;  %2542 = vmatmul.f32.gmra.mxu3 %v8192_v53  ;;  %v8199_v4 = vmax.f32 %v8198_v17, 0.0  ;;  %v8205_v48 = vld [vmem:[#allocation29_spill] sm:$0xff]  ;;  %v8207_v17 = vld [vmem:[#allocation22_spill] sm:$0xff] }
 0x36d   : > { %v2026_v18 = vpop.f32.mrf.mxu2  ;;  %v2139_v47 = vpop.f32.mrf.mxu3 }
 0x36e   : > { %v2027_v30 = vadd.f32 %v2026_v18, %v1914_v32  ;;  %v1803_v19 = vpop.f32.mrf.mxu0  ;;  %v1916_v51 = vpop.f32.mrf.mxu1 }
 0x36f   : > { %v1804_v44 = vadd.f32 %v1803_v19, %v5780_v14 }
 0x370   : > { %v6195_v38 = vadd.f32 %v2139_v47, %v2027_v30 }
 0x371   : > { %2206 = vmatmul.f32.gmra.mxu0 %v8195_v58  ;;  %2319 = vmatmul.f32.gmra.mxu1 %v8197_v61  ;;  %v1917_v43 = vadd.f32 %v1916_v51, %v1804_v44  ;;  %v8204_v58 = vmax.f32 %v8203_v11, 0.0  ;;  %v8206_v61 = vmax.f32 %v8205_v48, 0.0  ;;  %v8210_v51 = vmax.f32 %v8209_v37, 0.0  ;;  %v8212_v11 = vld [vmem:[#allocation25_spill] sm:$0xff]  ;;  %v8214_v48 = vld [vmem:[#allocation32_spill] sm:$0xff] }
 0x372   : > { %8193 = vst [vmem:[#allocation100_spill] sm:$0xff] %v6195_v38  ;;  %2432 = vmatmul.f32.gmra.mxu2 %v8199_v4  ;;  %2545 = vmatmul.f32.gmra.mxu3 %v8201_v24  ;;  %v8208_v4 = vmax.f32 %v8207_v17, 0.0  ;;  %v8216_v17 = vld [vmem:[#allocation27_spill] sm:$0xff]  ;;  %v8218_v37 = vld [vmem:[#allocation128_spill] sm:$0xff] }
 0x375   : > { %v2029_v53 = vpop.f32.mrf.mxu2  ;;  %v2142_v32 = vpop.f32.mrf.mxu3 }
 0x376   : > { %v2030_v18 = vadd.f32 %v2029_v53, %v1917_v43  ;;  %v1806_v47 = vpop.f32.mrf.mxu0  ;;  %v1919_v30 = vpop.f32.mrf.mxu1 }
 0x377   : > { %v1807_v19 = vadd.f32 %v1806_v47, %v5780_v14 }
 0x378   : > { %v6206_v38 = vadd.f32 %v2142_v32, %v2030_v18 }
 0x379   : > { %2209 = vmatmul.f32.gmra.mxu0 %v8204_v58  ;;  %2322 = vmatmul.f32.gmra.mxu1 %v8206_v61  ;;  %v1920_v44 = vadd.f32 %v1919_v30, %v1807_v19  ;;  %v8213_v58 = vmax.f32 %v8212_v11, 0.0  ;;  %v8215_v61 = vmax.f32 %v8214_v48, 0.0  ;;  %v8219_v30 = vmax.f32 %v8218_v37, 0.0  ;;  %v8221_v11 = vld [vmem:[#allocation28_spill] sm:$0xff]  ;;  %v8223_v48 = vld [vmem:[#allocation35_spill] sm:$0xff]  ;;  %v8227_v37 = vld [vmem:[#allocation129_spill] sm:$0xff] }
 0x37a   : > { %8202 = vst [vmem:[#allocation104_spill] sm:$0xff] %v6206_v38  ;;  %2435 = vmatmul.f32.gmra.mxu2 %v8208_v4  ;;  %2548 = vmatmul.f32.gmra.mxu3 %v8210_v51  ;;  %v8217_v4 = vmax.f32 %v8216_v17, 0.0  ;;  %v8225_v17 = vld [vmem:[#allocation30_spill] sm:$0xff] }
 0x37d   : > { %v2032_v24 = vpop.f32.mrf.mxu2  ;;  %v2145_v43 = vpop.f32.mrf.mxu3 }
 0x37e   : > { %v2033_v53 = vadd.f32 %v2032_v24, %v1920_v44  ;;  %v1809_v32 = vpop.f32.mrf.mxu0  ;;  %v1922_v18 = vpop.f32.mrf.mxu1 }
 0x37f   : > { %v1810_v47 = vadd.f32 %v1809_v32, %v5780_v14 }
 0x380   : > { %v6217_v38 = vadd.f32 %v2145_v43, %v2033_v53 }
 0x381   : > { %2212 = vmatmul.f32.gmra.mxu0 %v8213_v58  ;;  %2325 = vmatmul.f32.gmra.mxu1 %v8215_v61  ;;  %v1923_v19 = vadd.f32 %v1922_v18, %v1810_v47  ;;  %v8222_v58 = vmax.f32 %v8221_v11, 0.0  ;;  %v8224_v61 = vmax.f32 %v8223_v48, 0.0  ;;  %v8228_v18 = vmax.f32 %v8227_v37, 0.0  ;;  %v8230_v11 = vld [vmem:[#allocation33_spill] sm:$0xff]  ;;  %v8232_v48 = vld [vmem:[#allocation38_spill] sm:$0xff] }
 0x382   : > { %8211 = vst [vmem:[#allocation102_spill] sm:$0xff] %v6217_v38  ;;  %2438 = vmatmul.f32.gmra.mxu2 %v8217_v4  ;;  %2551 = vmatmul.f32.gmra.mxu3 %v8219_v30  ;;  %v8226_v4 = vmax.f32 %v8225_v17, 0.0  ;;  %v8234_v17 = vld [vmem:[#allocation34_spill] sm:$0xff] }
 0x383   : > { %v8236_v37 = vld [vmem:[#allocation130_spill] sm:$0xff] }
 0x385   : > { %v2035_v51 = vpop.f32.mrf.mxu2  ;;  %v2148_v44 = vpop.f32.mrf.mxu3 }
 0x386   : > { %v2036_v24 = vadd.f32 %v2035_v51, %v1923_v19  ;;  %v1812_v43 = vpop.f32.mrf.mxu0  ;;  %v1925_v53 = vpop.f32.mrf.mxu1 }
 0x387   : > { %v1813_v32 = vadd.f32 %v1812_v43, %v5780_v14 }
 0x388   : > { %v6228_v38 = vadd.f32 %v2148_v44, %v2036_v24 }
 0x389   : > { %2215 = vmatmul.f32.gmra.mxu0 %v8222_v58  ;;  %2328 = vmatmul.f32.gmra.mxu1 %v8224_v61  ;;  %v1926_v47 = vadd.f32 %v1925_v53, %v1813_v32  ;;  %v8231_v58 = vmax.f32 %v8230_v11, 0.0  ;;  %v8233_v61 = vmax.f32 %v8232_v48, 0.0  ;;  %v8237_v53 = vmax.f32 %v8236_v37, 0.0  ;;  %v8239_v11 = vld [vmem:[#allocation36_spill] sm:$0xff]  ;;  %v8241_v48 = vld [vmem:[#allocation41_spill] sm:$0xff]  ;;  %v8245_v37 = vld [vmem:[#allocation131_spill] sm:$0xff] }
 0x38a   : > { %8220 = vst [vmem:[#allocation103_spill] sm:$0xff] %v6228_v38  ;;  %2441 = vmatmul.f32.gmra.mxu2 %v8226_v4  ;;  %2554 = vmatmul.f32.gmra.mxu3 %v8228_v18  ;;  %v8235_v4 = vmax.f32 %v8234_v17, 0.0  ;;  %v8243_v17 = vld [vmem:[#allocation37_spill] sm:$0xff] }
 0x38d   : > { %v2038_v30 = vpop.f32.mrf.mxu2  ;;  %v2151_v19 = vpop.f32.mrf.mxu3 }
 0x38e   : > { %v2039_v51 = vadd.f32 %v2038_v30, %v1926_v47  ;;  %v1815_v44 = vpop.f32.mrf.mxu0  ;;  %v1928_v24 = vpop.f32.mrf.mxu1 }
 0x38f   : > { %v1816_v43 = vadd.f32 %v1815_v44, %v5780_v14 }
 0x390   : > { %v6239_v38 = vadd.f32 %v2151_v19, %v2039_v51 }
 0x391   : > { %2218 = vmatmul.f32.gmra.mxu0 %v8231_v58  ;;  %2331 = vmatmul.f32.gmra.mxu1 %v8233_v61  ;;  %v1929_v32 = vadd.f32 %v1928_v24, %v1816_v43  ;;  %v8240_v58 = vmax.f32 %v8239_v11, 0.0  ;;  %v8242_v61 = vmax.f32 %v8241_v48, 0.0  ;;  %v8246_v24 = vmax.f32 %v8245_v37, 0.0  ;;  %v8248_v11 = vld [vmem:[#allocation40_spill] sm:$0xff]  ;;  %v8250_v48 = vld [vmem:[#allocation46_spill] sm:$0xff] }
 0x392   : > { %8229 = vst [vmem:[#allocation107_spill] sm:$0xff] %v6239_v38  ;;  %2444 = vmatmul.f32.gmra.mxu2 %v8235_v4  ;;  %2557 = vmatmul.f32.gmra.mxu3 %v8237_v53  ;;  %v8244_v4 = vmax.f32 %v8243_v17, 0.0  ;;  %v8252_v17 = vld [vmem:[#allocation133_spill] sm:$0xff]  ;;  %v8254_v37 = vld [vmem:[#allocation132_spill] sm:$0xff] }
 0x395   : > { %v2041_v18 = vpop.f32.mrf.mxu2  ;;  %v2154_v47 = vpop.f32.mrf.mxu3 }
 0x396   : > { %v2042_v30 = vadd.f32 %v2041_v18, %v1929_v32  ;;  %v1818_v19 = vpop.f32.mrf.mxu0  ;;  %v1931_v51 = vpop.f32.mrf.mxu1 }
 0x397   : > { %v1819_v44 = vadd.f32 %v1818_v19, %v5780_v14 }
 0x398   : > { %v6250_v38 = vadd.f32 %v2154_v47, %v2042_v30 }
 0x399   : > { %2221 = vmatmul.f32.gmra.mxu0 %v8240_v58  ;;  %2334 = vmatmul.f32.gmra.mxu1 %v8242_v61  ;;  %v1932_v43 = vadd.f32 %v1931_v51, %v1819_v44  ;;  %v8249_v58 = vmax.f32 %v8248_v11, 0.0  ;;  %v8251_v61 = vmax.f32 %v8250_v48, 0.0  ;;  %v8255_v51 = vmax.f32 %v8254_v37, 0.0  ;;  %v8257_v11 = vld [vmem:[#allocation42_spill] sm:$0xff]  ;;  %v8259_v48 = vld [vmem:[#allocation51_spill] sm:$0xff]  ;;  %v8263_v37 = vld [vmem:[#allocation44_spill] sm:$0xff] }
 0x39a   : > { %8238 = vst [vmem:[#allocation105_spill] sm:$0xff] %v6250_v38  ;;  %2447 = vmatmul.f32.gmra.mxu2 %v8244_v4  ;;  %2560 = vmatmul.f32.gmra.mxu3 %v8246_v24  ;;  %v8253_v4 = vmax.f32 %v8252_v17, 0.0  ;;  %v8261_v17 = vld [vmem:[#allocation43_spill] sm:$0xff] }
 0x39d   : > { %v2044_v53 = vpop.f32.mrf.mxu2  ;;  %v2157_v32 = vpop.f32.mrf.mxu3 }
 0x39e   : > { %v2045_v18 = vadd.f32 %v2044_v53, %v1932_v43  ;;  %v1821_v47 = vpop.f32.mrf.mxu0  ;;  %v1934_v30 = vpop.f32.mrf.mxu1 }
 0x39f   : > { %v1822_v19 = vadd.f32 %v1821_v47, %v5780_v14 }
 0x3a0   : > { %v6261_v38 = vadd.f32 %v2157_v32, %v2045_v18 }
 0x3a1   : > { %2224 = vmatmul.f32.gmra.mxu0 %v8249_v58  ;;  %2337 = vmatmul.f32.gmra.mxu1 %v8251_v61  ;;  %v1935_v44 = vadd.f32 %v1934_v30, %v1822_v19  ;;  %v8258_v58 = vmax.f32 %v8257_v11, 0.0  ;;  %v8260_v61 = vmax.f32 %v8259_v48, 0.0  ;;  %v8264_v30 = vmax.f32 %v8263_v37, 0.0  ;;  %v8266_v11 = vld [vmem:[#allocation48_spill] sm:$0xff]  ;;  %v8272_v37 = vld [vmem:[#allocation45_spill] sm:$0xff] }
 0x3a2   : > { %8247 = vst [vmem:[#allocation106_spill] sm:$0xff] %v6261_v38  ;;  %2450 = vmatmul.f32.gmra.mxu2 %v8253_v4  ;;  %2563 = vmatmul.f32.gmra.mxu3 %v8255_v51  ;;  %v8262_v4 = vmax.f32 %v8261_v17, 0.0  ;;  %v8268_v48 = vld [vmem:[#allocation56_spill] sm:$0xff]  ;;  %v8270_v17 = vld [vmem:[#allocation134_spill] sm:$0xff] }
 0x3a5   : > { %v2047_v24 = vpop.f32.mrf.mxu2  ;;  %v2160_v43 = vpop.f32.mrf.mxu3 }
 0x3a6   : > { %v2048_v53 = vadd.f32 %v2047_v24, %v1935_v44  ;;  %v1824_v32 = vpop.f32.mrf.mxu0  ;;  %v1937_v18 = vpop.f32.mrf.mxu1 }
 0x3a7   : > { %v1825_v47 = vadd.f32 %v1824_v32, %v5780_v14 }
 0x3a8   : > { %v6272_v38 = vadd.f32 %v2160_v43, %v2048_v53 }
 0x3a9   : > { %2227 = vmatmul.f32.gmra.mxu0 %v8258_v58  ;;  %2340 = vmatmul.f32.gmra.mxu1 %v8260_v61  ;;  %v1938_v19 = vadd.f32 %v1937_v18, %v1825_v47  ;;  %v8267_v58 = vmax.f32 %v8266_v11, 0.0  ;;  %v8269_v61 = vmax.f32 %v8268_v48, 0.0  ;;  %v8273_v18 = vmax.f32 %v8272_v37, 0.0  ;;  %v8275_v11 = vld [vmem:[#allocation52_spill] sm:$0xff]  ;;  %v8277_v48 = vld [vmem:[#allocation61_spill] sm:$0xff] }
 0x3aa   : > { %8256 = vst [vmem:[#allocation110_spill] sm:$0xff] %v6272_v38  ;;  %2453 = vmatmul.f32.gmra.mxu2 %v8262_v4  ;;  %2566 = vmatmul.f32.gmra.mxu3 %v8264_v30  ;;  %v8271_v4 = vmax.f32 %v8270_v17, 0.0  ;;  %v8279_v17 = vld [vmem:[#allocation53_spill] sm:$0xff] }
 0x3ab   : > { %v8281_v37 = vld [vmem:[#allocation49_spill] sm:$0xff] }
 0x3ad   : > { %v2050_v51 = vpop.f32.mrf.mxu2  ;;  %v2163_v44 = vpop.f32.mrf.mxu3 }
 0x3ae   : > { %v2051_v24 = vadd.f32 %v2050_v51, %v1938_v19  ;;  %v1827_v43 = vpop.f32.mrf.mxu0  ;;  %v1940_v53 = vpop.f32.mrf.mxu1 }
 0x3af   : > { %v1828_v32 = vadd.f32 %v1827_v43, %v5780_v14 }
 0x3b0   : > { %v6283_v38 = vadd.f32 %v2163_v44, %v2051_v24 }
 0x3b1   : > { %2230 = vmatmul.f32.gmra.mxu0 %v8267_v58  ;;  %2343 = vmatmul.f32.gmra.mxu1 %v8269_v61  ;;  %v1941_v47 = vadd.f32 %v1940_v53, %v1828_v32  ;;  %v8276_v58 = vmax.f32 %v8275_v11, 0.0  ;;  %v8278_v61 = vmax.f32 %v8277_v48, 0.0  ;;  %v8282_v53 = vmax.f32 %v8281_v37, 0.0  ;;  %v8284_v11 = vld [vmem:[#allocation58_spill] sm:$0xff] }
 0x3b2   : > { %8265 = vst [vmem:[#allocation108_spill] sm:$0xff] %v6283_v38  ;;  %2456 = vmatmul.f32.gmra.mxu2 %v8271_v4  ;;  %2569 = vmatmul.f32.gmra.mxu3 %v8273_v18  ;;  %v8280_v4 = vmax.f32 %v8279_v17, 0.0  ;;  %v8286_v48 = vld [vmem:[#allocation66_spill] sm:$0xff]  ;;  %v8288_v17 = vld [vmem:[#allocation135_spill] sm:$0xff] }
 0x3b3   : > { %v8290_v37 = vld [vmem:[#allocation50_spill] sm:$0xff] }
 0x3b5   : > { %v2053_v30 = vpop.f32.mrf.mxu2  ;;  %v2166_v19 = vpop.f32.mrf.mxu3 }
 0x3b6   : > { %v2054_v51 = vadd.f32 %v2053_v30, %v1941_v47  ;;  %v1830_v44 = vpop.f32.mrf.mxu0  ;;  %v1943_v24 = vpop.f32.mrf.mxu1 }
 0x3b7   : > { %v1831_v43 = vadd.f32 %v1830_v44, %v5780_v14 }
 0x3b8   : > { %v6294_v38 = vadd.f32 %v2166_v19, %v2054_v51 }
 0x3b9   : > { %2233 = vmatmul.f32.gmra.mxu0 %v8276_v58  ;;  %2346 = vmatmul.f32.gmra.mxu1 %v8278_v61  ;;  %v1944_v32 = vadd.f32 %v1943_v24, %v1831_v43  ;;  %v8285_v58 = vmax.f32 %v8284_v11, 0.0  ;;  %v8287_v61 = vmax.f32 %v8286_v48, 0.0  ;;  %v8291_v24 = vmax.f32 %v8290_v37, 0.0  ;;  %v8293_v11 = vld [vmem:[#allocation63_spill] sm:$0xff]  ;;  %v8295_v48 = vld [vmem:[#allocation70_spill] sm:$0xff] }
 0x3ba   : > { %8274 = vst [vmem:[#allocation109_spill] sm:$0xff] %v6294_v38  ;;  %2459 = vmatmul.f32.gmra.mxu2 %v8280_v4  ;;  %2572 = vmatmul.f32.gmra.mxu3 %v8282_v53  ;;  %v8289_v4 = vmax.f32 %v8288_v17, 0.0  ;;  %v8297_v17 = vld [vmem:[#allocation137_spill] sm:$0xff]  ;;  %v8299_v37 = vld [vmem:[#allocation54_spill] sm:$0xff] }
 0x3bd   : > { %v2056_v18 = vpop.f32.mrf.mxu2  ;;  %v2169_v47 = vpop.f32.mrf.mxu3 }
 0x3be   : > { %v2057_v30 = vadd.f32 %v2056_v18, %v1944_v32  ;;  %v1833_v19 = vpop.f32.mrf.mxu0  ;;  %v1946_v51 = vpop.f32.mrf.mxu1 }
 0x3bf   : > { %v1834_v44 = vadd.f32 %v1833_v19, %v5780_v14 }
 0x3c0   : > { %v6305_v38 = vadd.f32 %v2169_v47, %v2057_v30 }
 0x3c1   : > { %2236 = vmatmul.f32.gmra.mxu0 %v8285_v58  ;;  %2349 = vmatmul.f32.gmra.mxu1 %v8287_v61  ;;  %v1947_v43 = vadd.f32 %v1946_v51, %v1834_v44  ;;  %v8294_v58 = vmax.f32 %v8293_v11, 0.0  ;;  %v8296_v61 = vmax.f32 %v8295_v48, 0.0  ;;  %v8300_v51 = vmax.f32 %v8299_v37, 0.0  ;;  %v8302_v11 = vld [vmem:[#allocation68_spill] sm:$0xff]  ;;  %v8304_v48 = vld [vmem:[#allocation74_spill] sm:$0xff]  ;;  %v8308_v37 = vld [vmem:[#allocation55_spill] sm:$0xff] }
 0x3c2   : > { %8283 = vst [vmem:[#allocation113_spill] sm:$0xff] %v6305_v38  ;;  %2462 = vmatmul.f32.gmra.mxu2 %v8289_v4  ;;  %2575 = vmatmul.f32.gmra.mxu3 %v8291_v24  ;;  %v8298_v4 = vmax.f32 %v8297_v17, 0.0  ;;  %v8306_v17 = vld [vmem:[#allocation138_spill] sm:$0xff] }
 0x3c5   : > { %v2059_v53 = vpop.f32.mrf.mxu2  ;;  %v2172_v32 = vpop.f32.mrf.mxu3 }
 0x3c6   : > { %v2060_v18 = vadd.f32 %v2059_v53, %v1947_v43  ;;  %v1836_v47 = vpop.f32.mrf.mxu0  ;;  %v1949_v30 = vpop.f32.mrf.mxu1 }
 0x3c7   : > { %v1837_v19 = vadd.f32 %v1836_v47, %v5780_v14 }
 0x3c8   : > { %v6316_v38 = vadd.f32 %v2172_v32, %v2060_v18 }
 0x3c9   : > { %2239 = vmatmul.f32.gmra.mxu0 %v8294_v58  ;;  %2352 = vmatmul.f32.gmra.mxu1 %v8296_v61  ;;  %v1950_v44 = vadd.f32 %v1949_v30, %v1837_v19  ;;  %v8303_v58 = vmax.f32 %v8302_v11, 0.0  ;;  %v8305_v61 = vmax.f32 %v8304_v48, 0.0  ;;  %v8309_v30 = vmax.f32 %v8308_v37, 0.0  ;;  %v8310_v11 = vld [vmem:[#allocation72_spill] sm:$0xff]  ;;  %v8312_v48 = vld [vmem:[#allocation77_spill] sm:$0xff] }
 0x3ca   : > { %8292 = vst [vmem:[#allocation111_spill] sm:$0xff] %v6316_v38  ;;  %2465 = vmatmul.f32.gmra.mxu2 %v8298_v4  ;;  %2578 = vmatmul.f32.gmra.mxu3 %v8300_v51  ;;  %v8307_v4 = vmax.f32 %v8306_v17, 0.0  ;;  %v8314_v17 = vld [vmem:[#allocation139_spill] sm:$0xff]  ;;  %v8316_v37 = vld [vmem:[#allocation69_spill] sm:$0xff] }
 0x3cd   : > { %v2062_v24 = vpop.f32.mrf.mxu2  ;;  %v2175_v43 = vpop.f32.mrf.mxu3 }
 0x3ce   : > { %v2063_v53 = vadd.f32 %v2062_v24, %v1950_v44  ;;  %v1839_v32 = vpop.f32.mrf.mxu0  ;;  %v1952_v18 = vpop.f32.mrf.mxu1 }
 0x3cf   : > { %v1840_v47 = vadd.f32 %v1839_v32, %v5780_v14 }
 0x3d0   : > { %v6327_v38 = vadd.f32 %v2175_v43, %v2063_v53 }
 0x3d1   : > { %2242 = vmatmul.f32.gmra.mxu0 %v8303_v58  ;;  %2355 = vmatmul.f32.gmra.mxu1 %v8305_v61  ;;  %v1953_v19 = vadd.f32 %v1952_v18, %v1840_v47  ;;  %v8311_v58 = vmax.f32 %v8310_v11, 0.0  ;;  %v8313_v61 = vmax.f32 %v8312_v48, 0.0  ;;  %v8317_v18 = vmax.f32 %v8316_v37, 0.0  ;;  %v8319_v48 = vld [vmem:[#allocation64_spill] sm:$0xff]  ;;  %v8325_v37 = vld [vmem:[#allocation17_spill] sm:$0xff] }
 0x3d2   : > { %8301 = vst [vmem:[#allocation112_spill] sm:$0xff] %v6327_v38  ;;  %2468 = vmatmul.f32.gmra.mxu2 %v8307_v4  ;;  %2581 = vmatmul.f32.gmra.mxu3 %v8309_v30  ;;  %v8315_v4 = vmax.f32 %v8314_v17, 0.0  ;;  %v4028_v30 = vld [vmem:[%s7560_s4] sm:$0x3]  ;;  %v8321_v17 = vld [vmem:[#allocation80_spill] sm:$0xff] }
 0x3d5   : > { %v2065_v51 = vpop.f32.mrf.mxu2  ;;  %v2178_v44 = vpop.f32.mrf.mxu3 }
 0x3d6   : > { %v2066_v24 = vadd.f32 %v2065_v51, %v1953_v19  ;;  %v1842_v43 = vpop.f32.mrf.mxu0  ;;  %v1955_v53 = vpop.f32.mrf.mxu1  ;;  %v6352_v19 = vperm.slane %v4028_v30, 1 }
 0x3d7   : > { %v1843_v32 = vadd.f32 %v1842_v43, %v5780_v14 }
 0x3d8   : > { %v6338_v38 = vadd.f32 %v2178_v44, %v2066_v24 }
 0x3d9   : > { %2245 = vmatmul.f32.gmra.mxu0 %v8311_v58  ;;  %2358 = vmatmul.f32.gmra.mxu1 %v8313_v61  ;;  %v1956_v47 = vadd.f32 %v1955_v53, %v1843_v32  ;;  %v8320_v61 = vmax.f32 %v8319_v48, 0.0  ;;  %v8322_v53 = vmax.f32 %v8321_v17, 0.0  ;;  %v8323_v32 = vld [vmem:[#allocation76_spill] sm:$0xff]  ;;  %v8328_v17 = vmax.f32 %v8109_v56, 0.0 }
 0x3da   : > { %2471 = vmatmul.f32.gmra.mxu2 %v8315_v4  ;;  %2584 = vmatmul.f32.gmra.mxu3 %v8317_v18  ;;  %v8324_v4 = vmax.f32 %v8323_v32, 0.0  ;;  %v8326_v18 = vmax.f32 %v8325_v37, 0.0  ;;  %v8330_v32 = vmax.f32 %v5384_v62, 0.0  ;;  %v4030_v37 = vld [vmem:[%s4496_s15 + $0x8] sm:$0xff] }
 0x3dd   : > { %v2068_v14 = vpop.f32.mrf.mxu2  ;;  %v2181_v51 = vpop.f32.mrf.mxu3 }
 0x3de   : > { %v2069_v44 = vadd.f32 %v2068_v14, %v1956_v47  ;;  %v2201_v24 = vpop.f32.mrf.mxu0  ;;  %v2314_v43 = vpop.f32.mrf.mxu1 }
 0x3df   : > { %v2202_v58 = vadd.f32 %v2201_v24, %v6352_v19 }
 0x3e0   : > { %v6354_v11 = vadd.f32 %v2181_v51, %v2069_v44 }
 0x3e1   : > { %2248 = vmatmul.f32.gmra.mxu0 %v8320_v61  ;;  %2361 = vmatmul.f32.gmra.mxu1 %v8322_v53  ;;  %v2315_v47 = vadd.f32 %v2314_v43, %v2202_v58  ;;  %v8327_v61 = vmax.f32 %v5803_v45, 0.0  ;;  %v8329_v53 = vmax.f32 %v5806_v9, 0.0  ;;  %v4029_v43 = vld [vmem:[%s4496_s15] sm:$0xff]  ;;  %v8331_v58 = vld [vmem:[#allocation78_spill] sm:$0xff] }
 0x3e2   : > { %8318 = vst [vmem:[#allocation136_spill] sm:$0xff] %v6354_v11  ;;  %2474 = vmatmul.f32.gmra.mxu2 %v8324_v4  ;;  %2587 = vmatmul.f32.gmra.mxu3 %v8326_v18  ;;  %v6376_v4 = vadd.f32 %v4029_v43, %v8331_v58  ;;  %v8338_v43 = vld [vmem:[#allocation83_spill] sm:$0xff] }
 0x3e5   : > { %v2427_v30 = vpop.f32.mrf.mxu2  ;;  %v2540_v14 = vpop.f32.mrf.mxu3 }
 0x3e6   : > { %v2428_v51 = vadd.f32 %v2427_v30, %v2315_v47  ;;  %v2204_v44 = vpop.f32.mrf.mxu0  ;;  %v2317_v24 = vpop.f32.mrf.mxu1 }
 0x3e7   : > { %v2205_v48 = vadd.f32 %v2204_v44, %v6352_v19 }
 0x3e8   : > { %v2541_v11 = vadd.f32 %v2540_v14, %v2428_v51 }
 0x3e9   : > { %2251 = vmatmul.f32.gmra.mxu0 %v8327_v61  ;;  %2364 = vmatmul.f32.gmra.mxu1 %v8328_v17  ;;  %v2318_v47 = vadd.f32 %v2317_v24, %v2205_v48  ;;  %v8332_v61 = vmax.f32 %v5828_v31, 0.0  ;;  %v8334_v24 = vld [vmem:[#allocation79_spill] sm:$0xff]  ;;  %v8336_v17 = vld [vmem:[#allocation24_spill] sm:$0xff] }
 0x3ea   : > { %2477 = vmatmul.f32.gmra.mxu2 %v8329_v53  ;;  %2590 = vmatmul.f32.gmra.mxu3 %v8330_v32  ;;  %v6379_v18 = vadd.f32 %v4030_v37, %v2541_v11  ;;  %v8333_v11 = vmax.f32 %v8114_v22, 0.0  ;;  %v8335_v48 = vmax.f32 %v8334_v24, 0.0  ;;  %v8337_v53 = vmax.f32 %v8336_v17, 0.0  ;;  %v4031_v32 = vld [vmem:[%s4496_s15 + $0x10] sm:$0xff]  ;;  %v4032_v37 = vld [vmem:[%s4496_s15 + $0x18] sm:$0xff] }
 0x3eb   : > { %v6394_v58 = vadd.f32 %v4031_v32, %v8338_v43  ;;  %v8339_v24 = vmax.f32 %v5853_v0, 0.0  ;;  %v8343_v17 = vld [vmem:[#allocation81_spill] sm:$0xff] }
 0x3ec   : > { %v2700_v56 = vadd.f32 %v6379_v18, %v6376_v4  ;;  %v4034_v32 = vld [vmem:[%s4496_s15 + $0x28] sm:$0xff] }
 0x3ed   : > { %v2430_v45 = vpop.f32.mrf.mxu2  ;;  %v2543_v30 = vpop.f32.mrf.mxu3 }
 0x3ee   : > { %v2431_v9 = vadd.f32 %v2430_v45, %v2318_v47  ;;  %2701 = vadd.xlane.f32.xlu0 %v2700_v56  ;;  %v2207_v14 = vpop.f32.mrf.mxu0  ;;  %v2320_v62 = vpop.f32.mrf.mxu1 }
 0x3ef   : > { %v2208_v44 = vadd.f32 %v2207_v14, %v6352_v19 }
 0x3f0   : > { %v2544_v51 = vadd.f32 %v2543_v30, %v2431_v9 }
 0x3f1   : > { %2254 = vmatmul.f32.gmra.mxu0 %v8332_v61  ;;  %2367 = vmatmul.f32.gmra.mxu1 %v8333_v11  ;;  %v2321_v56 = vadd.f32 %v2320_v62, %v2208_v44  ;;  %v8341_v62 = vmax.f32 %v5856_v29, 0.0  ;;  %v8342_v44 = vmax.f32 %v5442_v8, 0.0 }
 0x3f2   : > { %2480 = vmatmul.f32.gmra.mxu2 %v8335_v48  ;;  %2593 = vmatmul.f32.gmra.mxu3 %v8337_v53  ;;  %v6397_v47 = vadd.f32 %v4032_v37, %v2544_v51  ;;  %v8340_v51 = vmax.f32 %v8118_v35, 0.0  ;;  %v4033_v48 = vld [vmem:[%s4496_s15 + $0x20] sm:$0xff] }
 0x3f3   : > { %v6412_v53 = vadd.f32 %v4033_v48, %v8343_v17  ;;  %v4036_v48 = vld [vmem:[%s4496_s15 + $0x38] sm:$0xff] }
 0x3f4   : > { %v2703_v22 = vadd.f32 %v6397_v47, %v6394_v58 }
 0x3f5   : > { %v2433_v31 = vpop.f32.mrf.mxu2  ;;  %v2546_v45 = vpop.f32.mrf.mxu3 }
 0x3f6   : > { %v2434_v30 = vadd.f32 %v2433_v31, %v2321_v56  ;;  %2704 = vadd.xlane.f32.xlu0 %v2703_v22  ;;  %v2210_v9 = vpop.f32.mrf.mxu0  ;;  %v2323_v14 = vpop.f32.mrf.mxu1 }
 0x3f7   : > { %v2211_v11 = vadd.f32 %v2210_v9, %v6352_v19  ;;  %v8345_v9 = vmax.f32 %v8123_v10, 0.0 }
 0x3f8   : > { %v2547_v61 = vadd.f32 %v2546_v45, %v2434_v30  ;;  %v8344_v30 = vmax.f32 %v5878_v28, 0.0 }
 0x3f9   : > { %2257 = vmatmul.f32.gmra.mxu0 %v8339_v24  ;;  %2370 = vmatmul.f32.gmra.mxu1 %v8340_v51  ;;  %v2324_v37 = vadd.f32 %v2323_v14, %v2211_v11  ;;  %v8346_v14 = vld [vmem:[#allocation82_spill] sm:$0xff]  ;;  %v8348_v11 = vld [vmem:[#allocation31_spill] sm:$0xff] }
 0x3fa   : > { %2483 = vmatmul.f32.gmra.mxu2 %v8341_v62  ;;  %2596 = vmatmul.f32.gmra.mxu3 %v8342_v44  ;;  %v6415_v43 = vadd.f32 %v4034_v32, %v2547_v61  ;;  %v8347_v61 = vmax.f32 %v8346_v14, 0.0  ;;  %v8349_v24 = vmax.f32 %v8348_v11, 0.0  ;;  %v4035_v51 = vld [vmem:[%s4496_s15 + $0x30] sm:$0xff]  ;;  %v8355_v14 = vld [vmem:[#allocation84_spill] sm:$0xff] }
 0x3fb   : > { %v8350_v62 = vld [vmem:[#allocation86_spill] sm:$0xff]  ;;  %v4038_v11 = vld [vmem:[%s4496_s15 + $0x48] sm:$0xff] }
 0x3fc   : > { %v2706_v35 = vadd.f32 %v6415_v43, %v6412_v53  ;;  %v6430_v44 = vadd.f32 %v4035_v51, %v8350_v62 }
 0x3fd   : > { %v2436_v0 = vpop.f32.mrf.mxu2  ;;  %v2549_v56 = vpop.f32.mrf.mxu3 }
 0x3fe   : > { %v2437_v29 = vadd.f32 %v2436_v0, %v2324_v37  ;;  %2707 = vadd.xlane.f32.xlu1 %v2706_v35  ;;  %v2213_v22 = vpop.f32.mrf.mxu0  ;;  %v2326_v8 = vpop.f32.mrf.mxu1 }
 0x3ff   : > { %v2214_v45 = vadd.f32 %v2213_v22, %v6352_v19 }
 0x400   : > { %v2550_v31 = vadd.f32 %v2549_v56, %v2437_v29 }
 0x401   : > { %2260 = vmatmul.f32.gmra.mxu0 %v8344_v30  ;;  %2373 = vmatmul.f32.gmra.mxu1 %v8345_v9  ;;  %v2327_v32 = vadd.f32 %v2326_v8, %v2214_v45  ;;  %v8351_v30 = vmax.f32 %v5903_v33, 0.0  ;;  %v8353_v8 = vmax.f32 %v5906_v7, 0.0  ;;  %v8354_v45 = vmax.f32 %v5500_v36, 0.0  ;;  %v4037_v9 = vld [vmem:[%s4496_s15 + $0x40] sm:$0xff] }
 0x402   : > { %2486 = vmatmul.f32.gmra.mxu2 %v8347_v61  ;;  %2599 = vmatmul.f32.gmra.mxu3 %v8349_v24  ;;  %v6433_v17 = vadd.f32 %v4036_v48, %v2550_v31  ;;  %v8352_v31 = vmax.f32 %v8127_v1, 0.0  ;;  %v6448_v61 = vadd.f32 %v4037_v9, %v8355_v14 }
 0x404   : > { %v2709_v10 = vadd.f32 %v6433_v17, %v6430_v44 }
 0x405   : > { %v2439_v28 = vpop.f32.mrf.mxu2  ;;  %v2552_v37 = vpop.f32.mrf.mxu3 }
 0x406   : > { %v2440_v35 = vadd.f32 %v2439_v28, %v2327_v32  ;;  %2710 = vadd.xlane.f32.xlu1 %v2709_v10  ;;  %v2216_v0 = vpop.f32.mrf.mxu0  ;;  %v2329_v56 = vpop.f32.mrf.mxu1  ;;  %v8356_v28 = vmax.f32 %v5928_v12, 0.0 }
 0x407   : > { %v2217_v22 = vadd.f32 %v2216_v0, %v6352_v19 }
 0x408   : > { %v2553_v29 = vadd.f32 %v2552_v37, %v2440_v35  ;;  %v8357_v37 = vmax.f32 %v8132_v49, 0.0  ;;  %v8358_v35 = vld [vmem:[#allocation85_spill] sm:$0xff] }
 0x409   : > { %2263 = vmatmul.f32.gmra.mxu0 %v8351_v30  ;;  %2376 = vmatmul.f32.gmra.mxu1 %v8352_v31  ;;  %v2330_v51 = vadd.f32 %v2329_v56, %v2217_v22  ;;  %v8359_v0 = vmax.f32 %v8358_v35, 0.0  ;;  %v8360_v56 = vld [vmem:[#allocation39_spill] sm:$0xff]  ;;  %v4039_v22 = vld [vmem:[%s4496_s15 + $0x50] sm:$0xff]  ;;  %v4042_v35 = vld [vmem:[%s4496_s15 + $0x68] sm:$0xff] }
 0x40a   : > { %2489 = vmatmul.f32.gmra.mxu2 %v8353_v8  ;;  %2602 = vmatmul.f32.gmra.mxu3 %v8354_v45  ;;  %v6451_v24 = vadd.f32 %v4038_v11, %v2553_v29  ;;  %v8361_v29 = vmax.f32 %v8360_v56, 0.0  ;;  %v8362_v30 = vld [vmem:[#allocation89_spill] sm:$0xff]  ;;  %v4040_v8 = vld [vmem:[%s4496_s15 + $0x58] sm:$0xff] }
 0x40b   : > { %v6466_v31 = vadd.f32 %v4039_v22, %v8362_v30 }
 0x40c   : > { %v2712_v1 = vadd.f32 %v6451_v24, %v6448_v61 }
 0x40d   : > { %v2442_v33 = vpop.f32.mrf.mxu2  ;;  %v2555_v62 = vpop.f32.mrf.mxu3 }
 0x40e   : > { %v2443_v7 = vadd.f32 %v2442_v33, %v2330_v51  ;;  %2713 = vadd.xlane.f32.xlu2 %v2712_v1  ;;  %v2219_v48 = vpop.f32.mrf.mxu0  ;;  %v2332_v36 = vpop.f32.mrf.mxu1 }
 0x40f   : > { %v2220_v10 = vadd.f32 %v2219_v48, %v6352_v19  ;;  %v8364_v48 = vmax.f32 %v8136_v25, 0.0 }
 0x410   : > { %v2556_v32 = vadd.f32 %v2555_v62, %v2443_v7  ;;  %v8363_v7 = vmax.f32 %v5953_v41, 0.0 }
 0x411   : > { %2266 = vmatmul.f32.gmra.mxu0 %v8356_v28  ;;  %2379 = vmatmul.f32.gmra.mxu1 %v8357_v37  ;;  %v2333_v9 = vadd.f32 %v2332_v36, %v2220_v10  ;;  %v8365_v36 = vmax.f32 %v5956_v23, 0.0  ;;  %v4041_v10 = vld [vmem:[%s4496_s15 + $0x60] sm:$0xff] }
 0x412   : > { %2492 = vmatmul.f32.gmra.mxu2 %v8359_v0  ;;  %2605 = vmatmul.f32.gmra.mxu3 %v8361_v29  ;;  %v6469_v45 = vadd.f32 %v4040_v8, %v2556_v32  ;;  %v8366_v32 = vmax.f32 %v5558_v26, 0.0  ;;  %v8367_v28 = vld [vmem:[#allocation87_spill] sm:$0xff] }
 0x413   : > { %v6484_v37 = vadd.f32 %v4041_v10, %v8367_v28 }
 0x414   : > { %v2715_v49 = vadd.f32 %v6469_v45, %v6466_v31 }
 0x415   : > { %v2445_v12 = vpop.f32.mrf.mxu2  ;;  %v2558_v14 = vpop.f32.mrf.mxu3 }
 0x416   : > { %v2446_v11 = vadd.f32 %v2445_v12, %v2333_v9  ;;  %2716 = vadd.xlane.f32.xlu2 %v2715_v49  ;;  %v2222_v51 = vpop.f32.mrf.mxu0  ;;  %v2335_v1 = vpop.f32.mrf.mxu1  ;;  %v8368_v9 = vmax.f32 %v5978_v54, 0.0  ;;  %v8369_v49 = vmax.f32 %v8141_v6, 0.0  ;;  %v8370_v12 = vld [vmem:[#allocation88_spill] sm:$0xff] }
 0x417   : > { %v2223_v62 = vadd.f32 %v2222_v51, %v6352_v19 }
 0x418   : > { %v2559_v33 = vadd.f32 %v2558_v14, %v2446_v11  ;;  %v8371_v14 = vmax.f32 %v8370_v12, 0.0  ;;  %v8372_v11 = vld [vmem:[#allocation47_spill] sm:$0xff] }
 0x419   : > { %2269 = vmatmul.f32.gmra.mxu0 %v8363_v7  ;;  %2382 = vmatmul.f32.gmra.mxu1 %v8364_v48  ;;  %v2336_v56 = vadd.f32 %v2335_v1, %v2223_v62  ;;  %v8373_v51 = vmax.f32 %v8372_v11, 0.0  ;;  %v4043_v1 = vld [vmem:[%s4496_s15 + $0x70] sm:$0xff]  ;;  %v4044_v7 = vld [vmem:[%s4496_s15 + $0x78] sm:$0xff] }
 0x41a   : > { %2495 = vmatmul.f32.gmra.mxu2 %v8365_v36  ;;  %2608 = vmatmul.f32.gmra.mxu3 %v8366_v32  ;;  %v6487_v0 = vadd.f32 %v4042_v35, %v2559_v33  ;;  %v8374_v33 = vld [vmem:[#allocation92_spill] sm:$0xff] }
 0x41b   : > { %v6502_v62 = vadd.f32 %v4043_v1, %v8374_v33  ;;  %v8380_v33 = vmax.f32 %v6028_v40, 0.0 }
 0x41c   : > { %v2718_v25 = vadd.f32 %v6487_v0, %v6484_v37 }
 0x41d   : > { %v2448_v41 = vpop.f32.mrf.mxu2  ;;  %v2561_v29 = vpop.f32.mrf.mxu3 }
 0x41e   : > { %v2449_v23 = vadd.f32 %v2448_v41, %v2336_v56  ;;  %2719 = vadd.xlane.f32.xlu0 %v2718_v25  ;;  %v2225_v22 = vpop.f32.mrf.mxu0  ;;  %v2338_v26 = vpop.f32.mrf.mxu1  ;;  %v8375_v41 = vmax.f32 %v6003_v59, 0.0 }
 0x41f   : > { %v2226_v8 = vadd.f32 %v2225_v22, %v6352_v19 }
 0x420   : > { %v2562_v30 = vadd.f32 %v2561_v29, %v2449_v23  ;;  %v8376_v29 = vmax.f32 %v8145_v20, 0.0  ;;  %v4045_v23 = vld [vmem:[%s4496_s15 + $0x88] sm:$0xff] }
 0x421   : > { %2272 = vmatmul.f32.gmra.mxu0 %v8368_v9  ;;  %2385 = vmatmul.f32.gmra.mxu1 %v8369_v49  ;;  %v2339_v36 = vadd.f32 %v2338_v26, %v2226_v8  ;;  %v8377_v26 = vmax.f32 %v6006_v39, 0.0  ;;  %v4046_v8 = vld [vmem:[%s4496_s15 + $0x80] sm:$0xff]  ;;  %v8379_v9 = vld [vmem:[#allocation90_spill] sm:$0xff] }
 0x422   : > { %2498 = vmatmul.f32.gmra.mxu2 %v8371_v14  ;;  %2611 = vmatmul.f32.gmra.mxu3 %v8373_v51  ;;  %v6505_v48 = vadd.f32 %v4044_v7, %v2562_v30  ;;  %v8378_v30 = vmax.f32 %v5616_v21, 0.0  ;;  %v6523_v49 = vadd.f32 %v4046_v8, %v8379_v9  ;;  %v8381_v7 = vmax.f32 %v8150_v50, 0.0 }
 0x424   : > { %v2721_v6 = vadd.f32 %v6505_v48, %v6502_v62 }
 0x425   : > { %v2451_v54 = vpop.f32.mrf.mxu2  ;;  %v2564_v32 = vpop.f32.mrf.mxu3 }
 0x426   : > { %v2452_v10 = vadd.f32 %v2451_v54, %v2339_v36  ;;  %2722 = vadd.xlane.f32.xlu1 %v2721_v6  ;;  %v2228_v28 = vpop.f32.mrf.mxu0  ;;  %v2341_v35 = vpop.f32.mrf.mxu1  ;;  %v4047_v36 = vld [vmem:[%s4496_s15 + $0x98] sm:$0xff] }
 0x427   : > { %v2229_v25 = vadd.f32 %v2228_v28, %v6352_v19  ;;  %v8382_v54 = vld [vmem:[#allocation91_spill] sm:$0xff] }
 0x428   : > { %v2565_v56 = vadd.f32 %v2564_v32, %v2452_v10  ;;  %v8383_v32 = vmax.f32 %v8382_v54, 0.0  ;;  %v8384_v10 = vld [vmem:[#allocation57_spill] sm:$0xff] }
 0x429   : > { %2275 = vmatmul.f32.gmra.mxu0 %v8375_v41  ;;  %2388 = vmatmul.f32.gmra.mxu1 %v8376_v29  ;;  %v2342_v12 = vadd.f32 %v2341_v35, %v2229_v25  ;;  %v8385_v28 = vmax.f32 %v8384_v10, 0.0  ;;  %v4048_v35 = vld [vmem:[%s4496_s15 + $0x90] sm:$0xff] }
 0x42a   : > { %v6515_v22 = vadd.f32 %v4045_v23, %v2565_v56  ;;  %2501 = vmatmul.f32.gmra.mxu2 %v8377_v26  ;;  %2614 = vmatmul.f32.gmra.mxu3 %v8378_v30  ;;  %v8386_v56 = vld [vmem:[#allocation95_spill] sm:$0xff] }
 0x42b   : > { %v6541_v25 = vadd.f32 %v4048_v35, %v8386_v56  ;;  %v8393_v35 = vmax.f32 %v6078_v46, 0.0  ;;  %v8394_v56 = vmax.f32 %v8159_v63, 0.0 }
 0x42c   : > { %v2724_v20 = vadd.f32 %v6515_v22, %v6523_v49 }
 0x42d   : > { %v2454_v59 = vpop.f32.mrf.mxu2  ;;  %v2567_v14 = vpop.f32.mrf.mxu3 }
 0x42e   : > { %v2455_v11 = vadd.f32 %v2454_v59, %v2342_v12  ;;  %2725 = vadd.xlane.f32.xlu2 %v2724_v20  ;;  %v2231_v51 = vpop.f32.mrf.mxu0  ;;  %v2344_v39 = vpop.f32.mrf.mxu1  ;;  %v8387_v12 = vmax.f32 %v6053_v15, 0.0  ;;  %v8388_v20 = vmax.f32 %v8154_v42, 0.0  ;;  %v4049_v59 = vld [vmem:[%s4496_s15 + $0xa8] sm:$0xff] }
 0x42f   : > { %v2232_v21 = vadd.f32 %v2231_v51, %v6352_v19  ;;  %v8390_v51 = vld [vmem:[#allocation62_spill] sm:$0xff] }
 0x430   : > { %v2568_v1 = vadd.f32 %v2567_v14, %v2455_v11  ;;  %v8389_v11 = vmax.f32 %v6056_v16, 0.0 }
 0x431   : > { %2278 = vmatmul.f32.gmra.mxu0 %v8380_v33  ;;  %2391 = vmatmul.f32.gmra.mxu1 %v8381_v7  ;;  %v2345_v41 = vadd.f32 %v2344_v39, %v2232_v21  ;;  %v8391_v39 = vmax.f32 %v8390_v51, 0.0  ;;  %v8392_v21 = vld [vmem:[#allocation93_spill] sm:$0xff] }
 0x432   : > { %v6533_v6 = vadd.f32 %v4047_v36, %v2568_v1  ;;  %2504 = vmatmul.f32.gmra.mxu2 %v8383_v32  ;;  %2617 = vmatmul.f32.gmra.mxu3 %v8385_v28  ;;  %v4050_v1 = vld [vmem:[%s4496_s15 + $0xa0] sm:$0xff] }
 0x433   : > { %v6559_v33 = vadd.f32 %v4050_v1, %v8392_v21  ;;  %v8399_v1 = vmax.f32 %v6103_v2, 0.0  ;;  %v8400_v21 = vmax.f32 %v8163_v57, 0.0 }
 0x434   : > { %v2727_v50 = vadd.f32 %v6533_v6, %v6541_v25 }
 0x435   : > { %v2457_v40 = vpop.f32.mrf.mxu2  ;;  %v2570_v29 = vpop.f32.mrf.mxu3 }
 0x436   : > { %v2458_v23 = vadd.f32 %v2457_v40, %v2345_v41  ;;  %2728 = vadd.xlane.f32.xlu0 %v2727_v50  ;;  %v2234_v26 = vpop.f32.mrf.mxu0  ;;  %v2347_v30 = vpop.f32.mrf.mxu1  ;;  %v4051_v41 = vld [vmem:[%s4496_s15 + $0xb8] sm:$0xff]  ;;  %v8395_v40 = vmax.f32 %v6081_v34, 0.0 }
 0x437   : > { %v2235_v9 = vadd.f32 %v2234_v26, %v6352_v19  ;;  %v4052_v26 = vld [vmem:[%s4496_s15 + $0xb0] sm:$0xff] }
 0x438   : > { %v2571_v8 = vadd.f32 %v2570_v29, %v2458_v23  ;;  %v8396_v29 = vld [vmem:[#allocation67_spill] sm:$0xff] }
 0x439   : > { %2281 = vmatmul.f32.gmra.mxu0 %v8387_v12  ;;  %2394 = vmatmul.f32.gmra.mxu1 %v8388_v20  ;;  %v2348_v7 = vadd.f32 %v2347_v30, %v2235_v9  ;;  %v8397_v23 = vmax.f32 %v8396_v29, 0.0  ;;  %v8398_v30 = vld [vmem:[#allocation94_spill] sm:$0xff] }
 0x43a   : > { %v6551_v14 = vadd.f32 %v4049_v59, %v2571_v8  ;;  %2507 = vmatmul.f32.gmra.mxu2 %v8389_v11  ;;  %2620 = vmatmul.f32.gmra.mxu3 %v8391_v39  ;;  %v6577_v8 = vadd.f32 %v4052_v26, %v8398_v30  ;;  %v4327_v11 = vmov 256.0   ;;  %v8405_v30 = vmax.f32 %v6128_v27, 0.0 }
 0x43b   : > { %3961 = vrcp.f32 %v4327_v11  ;;  %v8410_v11 = vld [vmem:[#allocation96_spill] sm:$0xff] }
 0x43c   : > { %v2730_v42 = vadd.f32 %v6551_v14, %v6559_v33 }
 0x43d   : > { %v2460_v15 = vpop.f32.mrf.mxu2  ;;  %v2573_v36 = vpop.f32.mrf.mxu3 }
 0x43e   : > { %v2461_v54 = vadd.f32 %v2460_v15, %v2348_v7  ;;  %2731 = vadd.xlane.f32.xlu1 %v2730_v42  ;;  %v2237_v32 = vpop.f32.mrf.mxu0  ;;  %v2350_v16 = vpop.f32.mrf.mxu1  ;;  %v4053_v7 = vld [vmem:[%s4496_s15 + $0xc8] sm:$0xff]  ;;  %v8401_v15 = vmax.f32 %v6106_v60, 0.0 }
 0x43f   : > { %v2238_v28 = vadd.f32 %v2237_v32, %v6352_v19  ;;  %v4054_v32 = vld [vmem:[%s4496_s15 + $0xc0] sm:$0xff] }
 0x440   : > { %v2574_v10 = vadd.f32 %v2573_v36, %v2461_v54  ;;  %v8402_v36 = vld [vmem:[#allocation71_spill] sm:$0xff] }
 0x441   : > { %2284 = vmatmul.f32.gmra.mxu0 %v8393_v35  ;;  %2397 = vmatmul.f32.gmra.mxu1 %v8394_v56  ;;  %v2351_v9 = vadd.f32 %v2350_v16, %v2238_v28  ;;  %v8403_v54 = vmax.f32 %v8402_v36, 0.0  ;;  %v8404_v16 = vld [vmem:[#allocation98_spill] sm:$0xff]  ;;  %v3962_v28 = vpop.eup %3961 }
 0x442   : > { %v6569_v50 = vadd.f32 %v4051_v41, %v2574_v10  ;;  %2510 = vmatmul.f32.gmra.mxu2 %v8395_v40  ;;  %2623 = vmatmul.f32.gmra.mxu3 %v8397_v23  ;;  %v6595_v10 = vadd.f32 %v4054_v32, %v8404_v16  ;;  %v2797_v29 = vmul.f32 256.0, %v3962_v28  ;;  %v8411_v16 = vmax.f32 %v6153_v52, 0.0 }
 0x443   : > { %vm2801_vm0 = vweird.f32 %v3962_v28 }
 0x444   : > { %v2733_v46 = vadd.f32 %v6569_v50, %v6577_v8 }
 0x445   : > { %v2463_v63 = vpop.f32.mrf.mxu2  ;;  %v2576_v12 = vpop.f32.mrf.mxu3 }
 0x446   : > { %v2464_v20 = vadd.f32 %v2463_v63, %v2351_v9  ;;  %2734 = vadd.xlane.f32.xlu2 %v2733_v46  ;;  %v2240_v59 = vpop.f32.mrf.mxu0  ;;  %v2353_v34 = vpop.f32.mrf.mxu1  ;;  %v8406_v9 = vmax.f32 %v8167_v55, 0.0  ;;  %v4055_v46 = vld [vmem:[%s4496_s15 + $0xd8] sm:$0xff] }
 0x447   : > { %v2241_v39 = vadd.f32 %v2240_v59, %v6352_v19 }
 0x448   : > { %v2577_v51 = vadd.f32 %v2576_v12, %v2464_v20  ;;  %v8407_v12 = vmax.f32 %v6131_v13, 0.0  ;;  %v8408_v20 = vld [vmem:[#allocation75_spill] sm:$0xff] }
 0x449   : > { %2287 = vmatmul.f32.gmra.mxu0 %v8399_v1  ;;  %2400 = vmatmul.f32.gmra.mxu1 %v8400_v21  ;;  %v2354_v2 = vadd.f32 %v2353_v34, %v2241_v39  ;;  %v8409_v59 = vmax.f32 %v8408_v20, 0.0  ;;  %v4056_v34 = vld [vmem:[%s4496_s15 + $0xd0] sm:$0xff]  ;;  %v2798_v39 = vsub.f32 1.0, %v2797_v29 }
 0x44a   : > { %v6587_v42 = vadd.f32 %v4053_v7, %v2577_v51  ;;  %2513 = vmatmul.f32.gmra.mxu2 %v8401_v15  ;;  %2626 = vmatmul.f32.gmra.mxu3 %v8403_v54  ;;  %v6613_v51 = vadd.f32 %v4056_v34, %v8410_v11  ;;  %v8416_v29 = vld [vmem:[#allocation97_spill] sm:$0xff] }
 0x44b   : > { %v2799_v36 = vmul.f32 %v3962_v28, %v2798_v39  ;;  %v4059_v39 = vld [vmem:[%s4496_s15 + $0xf8] sm:$0xff] }
 0x44c   : > { %v2736_v57 = vadd.f32 %v6587_v42, %v6595_v10 }
 0x44d   : > { %v2466_v35 = vpop.f32.mrf.mxu2  ;;  %v2579_v56 = vpop.f32.mrf.mxu3 }
 0x44e   : > { %v2467_v41 = vadd.f32 %v2466_v35, %v2354_v2  ;;  %2737 = vadd.xlane.f32.xlu0 %v2736_v57  ;;  %v2243_v60 = vpop.f32.mrf.mxu0  ;;  %v2356_v40 = vpop.f32.mrf.mxu1  ;;  %v8412_v2 = vmax.f32 %v8172_v3, 0.0  ;;  %v4057_v57 = vld [vmem:[%s4496_s15 + $0xe8] sm:$0xff] }
 0x44f   : > { %v2244_v26 = vadd.f32 %v2243_v60, %v6352_v19 }
 0x450   : > { %v2580_v23 = vadd.f32 %v2579_v56, %v2467_v41  ;;  %v8413_v56 = vmax.f32 %v6156_v5, 0.0  ;;  %v8414_v41 = vld [vmem:[#allocation65_spill] sm:$0xff] }
 0x451   : > { %2290 = vmatmul.f32.gmra.mxu0 %v8405_v30  ;;  %2403 = vmatmul.f32.gmra.mxu1 %v8406_v9  ;;  %v2357_v27 = vadd.f32 %v2356_v40, %v2244_v26  ;;  %v8415_v60 = vmax.f32 %v8414_v41, 0.0  ;;  %v4058_v40 = vld [vmem:[%s4496_s15 + $0xe0] sm:$0xff]  ;;  %v2800_v26 = vadd.f32 %v3962_v28, %v2799_v36 }
 0x452   : > { %v6605_v63 = vadd.f32 %v4055_v46, %v2580_v23  ;;  %2516 = vmatmul.f32.gmra.mxu2 %v8407_v12  ;;  %2629 = vmatmul.f32.gmra.mxu3 %v8409_v59  ;;  %v6631_v23 = vadd.f32 %v4058_v40, %v8416_v29  ;;  %v4061_v29 = vld [vmem:[%s4496_s15 + $0x108] sm:$0xff] }
 0x453   : > { %v6635_v20 = vsel %vm2801_vm0, %v3962_v28, %v2800_v26 }
 0x454   : > { %v2739_v55 = vadd.f32 %v6605_v63, %v6613_v51 }
 0x455   : > { %v2469_v1 = vpop.f32.mrf.mxu2  ;;  %v2582_v21 = vpop.f32.mrf.mxu3 }
 0x456   : > { %v2470_v7 = vadd.f32 %v2469_v1, %v2357_v27  ;;  %2740 = vadd.xlane.f32.xlu1 %v2739_v55  ;;  %v2246_v13 = vpop.f32.mrf.mxu0  ;;  %v2359_v15 = vpop.f32.mrf.mxu1  ;;  %v4060_v1 = vld [vmem:[%s4496_s15 + $0xf0] sm:$0xff] }
 0x457   : > { %v2247_v32 = vadd.f32 %v2246_v13, %v6352_v19 }
 0x458   : > { %v2583_v54 = vadd.f32 %v2582_v21, %v2470_v7  ;;  %v8417_v21 = vld [vmem:[#allocation101_spill] sm:$0xff] }
 0x459   : > { %2293 = vmatmul.f32.gmra.mxu0 %v8411_v16  ;;  %2406 = vmatmul.f32.gmra.mxu1 %v8412_v2  ;;  %v2360_v52 = vadd.f32 %v2359_v15, %v2247_v32  ;;  %v6644_v7 = vadd.f32 %v4060_v1, %v8417_v21 }
 0x45a   : > { %v6623_v35 = vadd.f32 %v4057_v57, %v2583_v54  ;;  %2519 = vmatmul.f32.gmra.mxu2 %v8413_v56  ;;  %2632 = vmatmul.f32.gmra.mxu3 %v8415_v60 }
 0x45c   : > { %v2742_v3 = vadd.f32 %v6623_v35, %v6631_v23 }
 0x45d   : > { %v2472_v30 = vpop.f32.mrf.mxu2  ;;  %v2585_v9 = vpop.f32.mrf.mxu3 }
 0x45e   : > { %v2473_v46 = vadd.f32 %v2472_v30, %v2360_v52  ;;  %2743 = vadd.xlane.f32.xlu2 %v2742_v3  ;;  %v2249_v5 = vpop.f32.mrf.mxu0  ;;  %v2362_v12 = vpop.f32.mrf.mxu1  ;;  %v4062_v3 = vld [vmem:[%s4496_s15 + $0x100] sm:$0xff] }
 0x45f   : > { %v2250_v34 = vadd.f32 %v2249_v5, %v6352_v19  ;;  %v8418_v30 = vld [vmem:[#allocation99_spill] sm:$0xff] }
 0x460   : > { %v2586_v59 = vadd.f32 %v2585_v9, %v2473_v46  ;;  %v6665_v9 = vadd.f32 %v4062_v3, %v8418_v30 }
 0x461   : > { %v2702_v11 = vpop.xlane.xlu0 %2701  ;;  %v2363_v13 = vadd.f32 %v2362_v12, %v2250_v34 }
 0x462   : > { %v6639_v27 = vadd.f32 %v4059_v39, %v2586_v59  ;;  %v2803_v55 = vmul.f32 %v6635_v20, %v2702_v11 }
 0x464   : > { %v6647_v15 = vsub.f32 %v6376_v4, %v2803_v55  ;;  %v6650_v28 = vsub.f32 %v6379_v18, %v2803_v55  ;;  %v2745_v36 = vadd.f32 %v6639_v27, %v6644_v7 }
 0x465   : > { %v2475_v54 = vpop.f32.mrf.mxu2  ;;  %v2588_v32 = vpop.f32.mrf.mxu3 }
 0x466   : > { %v2476_v16 = vadd.f32 %v2475_v54, %v2363_v13  ;;  %2746 = vadd.xlane.f32.xlu0 %v2745_v36  ;;  %v2252_v2 = vpop.f32.mrf.mxu0  ;;  %v2365_v57 = vpop.f32.mrf.mxu1  ;;  %v2899_v56 = vmul.f32 %v6647_v15, %v6647_v15  ;;  %v2900_v4 = vmul.f32 %v6650_v28, %v6650_v28 }
 0x467   : > { %v2253_v18 = vadd.f32 %v2252_v2, %v6352_v19 }
 0x468   : > { %v2589_v41 = vadd.f32 %v2588_v32, %v2476_v16  ;;  %v2963_v60 = vadd.f32 %v2900_v4, %v2899_v56  ;;  %v4063_v32 = vld [vmem:[%s4496_s15 + $0x118] sm:$0xff]  ;;  %v8419_v56 = vld [vmem:[#allocation100_spill] sm:$0xff] }
 0x469   : > { %v2705_v40 = vpop.xlane.xlu0 %2704  ;;  %v2366_v46 = vadd.f32 %v2365_v57, %v2253_v18  ;;  %v4064_v57 = vld [vmem:[%s4496_s15 + $0x110] sm:$0xff] }
 0x46a   : > { %v6660_v26 = vadd.f32 %v4061_v29, %v2589_v41  ;;  %v2804_v52 = vmul.f32 %v6635_v20, %v2705_v40  ;;  %2964 = vadd.xlane.f32.xlu2 %v2963_v60  ;;  %v6686_v4 = vadd.f32 %v4064_v57, %v8419_v56 }
 0x46c   : > { %v6668_v5 = vsub.f32 %v6394_v58, %v2804_v52  ;;  %v6671_v12 = vsub.f32 %v6397_v47, %v2804_v52  ;;  %v2748_v59 = vadd.f32 %v6660_v26, %v6665_v9 }
 0x46d   : > { %v2478_v34 = vpop.f32.mrf.mxu2  ;;  %v2591_v11 = vpop.f32.mrf.mxu3 }
 0x46e   : > { %v2479_v39 = vadd.f32 %v2478_v34, %v2366_v46  ;;  %2749 = vadd.xlane.f32.xlu1 %v2748_v59  ;;  %v2255_v55 = vpop.f32.mrf.mxu0  ;;  %v2368_v1 = vpop.f32.mrf.mxu1  ;;  %v2901_v21 = vmul.f32 %v6668_v5, %v6668_v5  ;;  %v2902_v58 = vmul.f32 %v6671_v12, %v6671_v12 }
 0x46f   : > { %v2256_v47 = vadd.f32 %v2255_v55, %v6352_v19  ;;  %v4065_v55 = vld [vmem:[%s4496_s15 + $0x128] sm:$0xff] }
 0x470   : > { %v2592_v13 = vadd.f32 %v2591_v11, %v2479_v39  ;;  %v2966_v36 = vadd.f32 %v2902_v58, %v2901_v21  ;;  %v4066_v58 = vld [vmem:[%s4496_s15 + $0x120] sm:$0xff] }
 0x471   : > { %v2708_v54 = vpop.xlane.xlu1 %2707  ;;  %v2369_v41 = vadd.f32 %v2368_v1, %v2256_v47 }
 0x472   : > { %v6681_v16 = vadd.f32 %v4063_v32, %v2592_v13  ;;  %v2805_v2 = vmul.f32 %v6635_v20, %v2708_v54  ;;  %2967 = vadd.xlane.f32.xlu0 %v2966_v36  ;;  %v8420_v13 = vld [vmem:[#allocation104_spill] sm:$0xff] }
 0x473   : > { %v6707_v47 = vadd.f32 %v4066_v58, %v8420_v13 }
 0x474   : > { %v6689_v18 = vsub.f32 %v6412_v53, %v2805_v2  ;;  %v6692_v60 = vsub.f32 %v6415_v43, %v2805_v2  ;;  %v2751_v40 = vadd.f32 %v6681_v16, %v6686_v4 }
 0x475   : > { %v2481_v29 = vpop.f32.mrf.mxu2  ;;  %v2594_v52 = vpop.f32.mrf.mxu3 }
 0x476   : > { %v2482_v3 = vadd.f32 %v2481_v29, %v2369_v41  ;;  %2752 = vadd.xlane.f32.xlu2 %v2751_v40  ;;  %v2258_v30 = vpop.f32.mrf.mxu0  ;;  %v2371_v46 = vpop.f32.mrf.mxu1  ;;  %v2903_v59 = vmul.f32 %v6689_v18, %v6689_v18  ;;  %v2904_v53 = vmul.f32 %v6692_v60, %v6692_v60 }
 0x477   : > { %v2259_v43 = vadd.f32 %v2258_v30, %v6352_v19 }
 0x478   : > { %v2595_v34 = vadd.f32 %v2594_v52, %v2482_v3  ;;  %v2969_v11 = vadd.f32 %v2904_v53, %v2903_v59  ;;  %v4067_v59 = vld [vmem:[%s4496_s15 + $0x138] sm:$0xff] }
 0x479   : > { %v2711_v39 = vpop.xlane.xlu1 %2710  ;;  %v2372_v36 = vadd.f32 %v2371_v46, %v2259_v43  ;;  %v4068_v43 = vld [vmem:[%s4496_s15 + $0x130] sm:$0xff] }
 0x47a   : > { %v6702_v1 = vadd.f32 %v4065_v55, %v2595_v34  ;;  %v2806_v21 = vmul.f32 %v6635_v20, %v2711_v39  ;;  %2970 = vadd.xlane.f32.xlu1 %v2969_v11  ;;  %v8421_v11 = vld [vmem:[#allocation102_spill] sm:$0xff] }
 0x47b   : > { %v6728_v39 = vadd.f32 %v4068_v43, %v8421_v11 }
 0x47c   : > { %v6710_v54 = vsub.f32 %v6430_v44, %v2806_v21  ;;  %v6713_v32 = vsub.f32 %v6433_v17, %v2806_v21  ;;  %v2754_v2 = vadd.f32 %v6702_v1, %v6707_v47 }
 0x47d   : > { %v2484_v57 = vpop.f32.mrf.mxu2  ;;  %v2597_v56 = vpop.f32.mrf.mxu3 }
 0x47e   : > { %v2485_v41 = vadd.f32 %v2484_v57, %v2372_v36  ;;  %2755 = vadd.xlane.f32.xlu0 %v2754_v2  ;;  %v2261_v40 = vpop.f32.mrf.mxu0  ;;  %v2374_v29 = vpop.f32.mrf.mxu1  ;;  %v2905_v52 = vmul.f32 %v6710_v54, %v6710_v54  ;;  %v2906_v44 = vmul.f32 %v6713_v32, %v6713_v32 }
 0x47f   : > { %v2262_v17 = vadd.f32 %v2261_v40, %v6352_v19 }
 0x480   : > { %v2598_v3 = vadd.f32 %v2597_v56, %v2485_v41  ;;  %v2972_v30 = vadd.f32 %v2906_v44, %v2905_v52 }
 0x481   : > { %v2714_v46 = vpop.xlane.xlu2 %2713  ;;  %v2375_v55 = vadd.f32 %v2374_v29, %v2262_v17 }
 0x482   : > { %v6723_v53 = vadd.f32 %v4067_v59, %v2598_v3  ;;  %v2807_v34 = vmul.f32 %v6635_v20, %v2714_v46  ;;  %2973 = vadd.xlane.f32.xlu2 %v2972_v30  ;;  %v4069_v3 = vld [vmem:[%s4496_s15 + $0x148] sm:$0xff]  ;;  %v4070_v46 = vld [vmem:[%s4496_s15 + $0x140] sm:$0xff] }
 0x483   : > { %v8422_v59 = vld [vmem:[#allocation103_spill] sm:$0xff] }
 0x484   : > { %v6731_v21 = vsub.f32 %v6448_v61, %v2807_v34  ;;  %v6734_v58 = vsub.f32 %v6451_v24, %v2807_v34  ;;  %v2757_v13 = vadd.f32 %v6723_v53, %v6728_v39  ;;  %v6749_v34 = vadd.f32 %v4070_v46, %v8422_v59  ;;  %v8423_v46 = vld [vmem:[#allocation107_spill] sm:$0xff] }
 0x485   : > { %v2487_v36 = vpop.f32.mrf.mxu2  ;;  %v2600_v2 = vpop.f32.mrf.mxu3 }
 0x486   : > { %v2488_v57 = vadd.f32 %v2487_v36, %v2375_v55  ;;  %2758 = vadd.xlane.f32.xlu1 %v2757_v13  ;;  %v2264_v56 = vpop.f32.mrf.mxu0  ;;  %v2377_v41 = vpop.f32.mrf.mxu1  ;;  %v2907_v40 = vmul.f32 %v6731_v21, %v6731_v21  ;;  %v2908_v61 = vmul.f32 %v6734_v58, %v6734_v58 }
 0x487   : > { %v2265_v24 = vadd.f32 %v2264_v56, %v6352_v19 }
 0x488   : > { %v2601_v29 = vadd.f32 %v2600_v2, %v2488_v57  ;;  %v2975_v52 = vadd.f32 %v2908_v61, %v2907_v40 }
 0x489   : > { %v2717_v44 = vpop.xlane.xlu2 %2716  ;;  %v2378_v43 = vadd.f32 %v2377_v41, %v2265_v24 }
 0x48a   : > { %v6744_v17 = vadd.f32 %v4069_v3, %v2601_v29  ;;  %v2808_v30 = vmul.f32 %v6635_v20, %v2717_v44  ;;  %2976 = vadd.xlane.f32.xlu0 %v2975_v52  ;;  %v4071_v52 = vld [vmem:[%s4496_s15 + $0x158] sm:$0xff] }
 0x48c   : > { %v6752_v11 = vsub.f32 %v6466_v31, %v2808_v30  ;;  %v6755_v55 = vsub.f32 %v6469_v45, %v2808_v30  ;;  %v2760_v13 = vadd.f32 %v6744_v17, %v6749_v34  ;;  %v4072_v30 = vld [vmem:[%s4496_s15 + $0x150] sm:$0xff] }
 0x48d   : > { %v2490_v36 = vpop.f32.mrf.mxu2  ;;  %v2603_v2 = vpop.f32.mrf.mxu3  ;;  %v6770_v59 = vadd.f32 %v4072_v30, %v8423_v46  ;;  %v4074_v46 = vld [vmem:[%s4496_s15 + $0x160] sm:$0xff] }
 0x48e   : > { %v2491_v57 = vadd.f32 %v2490_v36, %v2378_v43  ;;  %2761 = vadd.xlane.f32.xlu2 %v2760_v13  ;;  %v2267_v56 = vpop.f32.mrf.mxu0  ;;  %v2380_v40 = vpop.f32.mrf.mxu1  ;;  %v2909_v41 = vmul.f32 %v6752_v11, %v6752_v11  ;;  %v2910_v31 = vmul.f32 %v6755_v55, %v6755_v55 }
 0x48f   : > { %v2268_v45 = vadd.f32 %v2267_v56, %v6352_v19 }
 0x490   : > { %v2604_v61 = vadd.f32 %v2603_v2, %v2491_v57  ;;  %v2978_v29 = vadd.f32 %v2910_v31, %v2909_v41 }
 0x491   : > { %v2720_v24 = vpop.xlane.xlu0 %2719  ;;  %v2381_v43 = vadd.f32 %v2380_v40, %v2268_v45 }
 0x492   : > { %v6765_v44 = vadd.f32 %v4071_v52, %v2604_v61  ;;  %v2809_v3 = vmul.f32 %v6635_v20, %v2720_v24  ;;  %2979 = vadd.xlane.f32.xlu1 %v2978_v29  ;;  %v4073_v52 = vld [vmem:[%s4496_s15 + $0x168] sm:$0xff] }
 0x494   : > { %v6773_v13 = vsub.f32 %v6484_v37, %v2809_v3  ;;  %v6776_v36 = vsub.f32 %v6487_v0, %v2809_v3  ;;  %v2763_v2 = vadd.f32 %v6765_v44, %v6770_v59 }
 0x495   : > { %v2493_v57 = vpop.f32.mrf.mxu2  ;;  %v2606_v56 = vpop.f32.mrf.mxu3 }
 0x496   : > { %8424 = vst [vmem:[#allocation116_spill] sm:$0xff] %v6773_v13  ;;  %v2494_v41 = vadd.f32 %v2493_v57, %v2381_v43  ;;  %2764 = vadd.xlane.f32.xlu0 %v2763_v2  ;;  %v2270_v31 = vpop.f32.mrf.mxu0  ;;  %v2383_v61 = vpop.f32.mrf.mxu1  ;;  %v2911_v40 = vmul.f32 %v6773_v13, %v6773_v13  ;;  %v2912_v37 = vmul.f32 %v6776_v36, %v6776_v36  ;;  %v8426_v43 = vld [vmem:[#allocation105_spill] sm:$0xff] }
 0x497   : > { %8425 = vst [vmem:[#allocation114_spill] sm:$0xff] %v6776_v36  ;;  %v2271_v0 = vadd.f32 %v2270_v31, %v6352_v19  ;;  %v6791_v2 = vadd.f32 %v4074_v46, %v8426_v43 }
 0x498   : > { %v2607_v45 = vadd.f32 %v2606_v56, %v2494_v41  ;;  %v2981_v29 = vadd.f32 %v2912_v37, %v2911_v40 }
 0x499   : > { %v2723_v24 = vpop.xlane.xlu1 %2722  ;;  %v2384_v57 = vadd.f32 %v2383_v61, %v2271_v0 }
 0x49a   : > { %v6786_v3 = vadd.f32 %v4073_v52, %v2607_v45  ;;  %v2810_v30 = vmul.f32 %v6635_v20, %v2723_v24  ;;  %2982 = vadd.xlane.f32.xlu2 %v2981_v29 }
 0x49c   : > { %v6794_v13 = vsub.f32 %v6502_v62, %v2810_v30  ;;  %v6797_v56 = vsub.f32 %v6505_v48, %v2810_v30  ;;  %v2766_v41 = vadd.f32 %v6786_v3, %v6791_v2  ;;  %v4075_v30 = vld [vmem:[%s4496_s15 + $0x178] sm:$0xff] }
 0x49d   : > { %v2496_v31 = vpop.f32.mrf.mxu2  ;;  %v2609_v40 = vpop.f32.mrf.mxu3 }
 0x49e   : > { %8427 = vst [vmem:[#allocation115_spill] sm:$0xff] %v6794_v13  ;;  %v2497_v37 = vadd.f32 %v2496_v31, %v2384_v57  ;;  %2767 = vadd.xlane.f32.xlu1 %v2766_v41  ;;  %v2273_v45 = vpop.f32.mrf.mxu0  ;;  %v2386_v29 = vpop.f32.mrf.mxu1  ;;  %v2913_v61 = vmul.f32 %v6794_v13, %v6794_v13  ;;  %v2914_v62 = vmul.f32 %v6797_v56, %v6797_v56  ;;  %v4076_v57 = vld [vmem:[%s4496_s15 + $0x170] sm:$0xff] }
 0x49f   : > { %8428 = vst [vmem:[#allocation119_spill] sm:$0xff] %v6797_v56  ;;  %v2274_v48 = vadd.f32 %v2273_v45, %v6352_v19  ;;  %v8429_v41 = vld [vmem:[#allocation106_spill] sm:$0xff] }
 0x4a0   : > { %v2610_v0 = vadd.f32 %v2609_v40, %v2497_v37  ;;  %v2984_v24 = vadd.f32 %v2914_v62, %v2913_v61  ;;  %v6812_v31 = vadd.f32 %v4076_v57, %v8429_v41 }
 0x4a1   : > { %v2726_v52 = vpop.xlane.xlu2 %2725  ;;  %v2387_v36 = vadd.f32 %v2386_v29, %v2274_v48 }
 0x4a2   : > { %v6807_v46 = vadd.f32 %v4075_v30, %v2610_v0  ;;  %v2811_v43 = vmul.f32 %v6635_v20, %v2726_v52  ;;  %2985 = vadd.xlane.f32.xlu0 %v2984_v24 }
 0x4a4   : > { %v6815_v13 = vsub.f32 %v6523_v49, %v2811_v43  ;;  %v6818_v40 = vsub.f32 %v6515_v22, %v2811_v43  ;;  %v2769_v37 = vadd.f32 %v6807_v46, %v6812_v31  ;;  %v4077_v43 = vld [vmem:[%s4496_s15 + $0x188] sm:$0xff] }
 0x4a5   : > { %v2499_v45 = vpop.f32.mrf.mxu2  ;;  %v2612_v61 = vpop.f32.mrf.mxu3 }
 0x4a6   : > { %8430 = vst [vmem:[#allocation117_spill] sm:$0xff] %v6815_v13  ;;  %v2500_v62 = vadd.f32 %v2499_v45, %v2387_v36  ;;  %2770 = vadd.xlane.f32.xlu2 %v2769_v37  ;;  %v2276_v0 = vpop.f32.mrf.mxu0  ;;  %v2389_v24 = vpop.f32.mrf.mxu1  ;;  %v2915_v29 = vmul.f32 %v6815_v13, %v6815_v13  ;;  %v2916_v49 = vmul.f32 %v6818_v40, %v6818_v40  ;;  %v4078_v36 = vld [vmem:[%s4496_s15 + $0x180] sm:$0xff]  ;;  %v8432_v37 = vld [vmem:[#allocation110_spill] sm:$0xff] }
 0x4a7   : > { %8431 = vst [vmem:[#allocation118_spill] sm:$0xff] %v6818_v40  ;;  %v2277_v22 = vadd.f32 %v2276_v0, %v6352_v19  ;;  %v6833_v45 = vadd.f32 %v4078_v36, %v8432_v37 }
 0x4a8   : > { %v2613_v48 = vadd.f32 %v2612_v61, %v2500_v62  ;;  %v2987_v52 = vadd.f32 %v2916_v49, %v2915_v29 }
 0x4a9   : > { %v2729_v30 = vpop.xlane.xlu0 %2728  ;;  %v2390_v56 = vadd.f32 %v2389_v24, %v2277_v22 }
 0x4aa   : > { %v6828_v57 = vadd.f32 %v4077_v43, %v2613_v48  ;;  %v2812_v41 = vmul.f32 %v6635_v20, %v2729_v30  ;;  %2988 = vadd.xlane.f32.xlu1 %v2987_v52 }
 0x4ac   : > { %v6836_v13 = vsub.f32 %v6541_v25, %v2812_v41  ;;  %v6839_v61 = vsub.f32 %v6533_v6, %v2812_v41  ;;  %v2772_v62 = vadd.f32 %v6828_v57, %v6833_v45  ;;  %v4079_v41 = vld [vmem:[%s4496_s15 + $0x198] sm:$0xff] }
 0x4ad   : > { %v2502_v0 = vpop.f32.mrf.mxu2  ;;  %v2615_v29 = vpop.f32.mrf.mxu3 }
 0x4ae   : > { %8433 = vst [vmem:[#allocation122_spill] sm:$0xff] %v6836_v13  ;;  %v2503_v49 = vadd.f32 %v2502_v0, %v2390_v56  ;;  %2773 = vadd.xlane.f32.xlu0 %v2772_v62  ;;  %v2279_v48 = vpop.f32.mrf.mxu0  ;;  %v2392_v52 = vpop.f32.mrf.mxu1  ;;  %v2917_v24 = vmul.f32 %v6836_v13, %v6836_v13  ;;  %v2918_v25 = vmul.f32 %v6839_v61, %v6839_v61  ;;  %v4080_v56 = vld [vmem:[%s4496_s15 + $0x190] sm:$0xff]  ;;  %v8435_v62 = vld [vmem:[#allocation108_spill] sm:$0xff] }
 0x4af   : > { %8434 = vst [vmem:[#allocation120_spill] sm:$0xff] %v6839_v61  ;;  %v2280_v6 = vadd.f32 %v2279_v48, %v6352_v19  ;;  %v6854_v0 = vadd.f32 %v4080_v56, %v8435_v62 }
 0x4b0   : > { %v2616_v22 = vadd.f32 %v2615_v29, %v2503_v49  ;;  %v2990_v30 = vadd.f32 %v2918_v25, %v2917_v24 }
 0x4b1   : > { %v2732_v43 = vpop.xlane.xlu1 %2731  ;;  %v2393_v40 = vadd.f32 %v2392_v52, %v2280_v6 }
 0x4b2   : > { %v6849_v36 = vadd.f32 %v4079_v41, %v2616_v22  ;;  %v2813_v37 = vmul.f32 %v6635_v20, %v2732_v43  ;;  %2991 = vadd.xlane.f32.xlu2 %v2990_v30 }
 0x4b4   : > { %v6857_v13 = vsub.f32 %v6559_v33, %v2813_v37  ;;  %v6860_v29 = vsub.f32 %v6551_v14, %v2813_v37  ;;  %v2775_v49 = vadd.f32 %v6849_v36, %v6854_v0  ;;  %v4081_v37 = vld [vmem:[%s4496_s15 + $0x1a8] sm:$0xff] }
 0x4b5   : > { %v2505_v48 = vpop.f32.mrf.mxu2  ;;  %v2618_v24 = vpop.f32.mrf.mxu3 }
 0x4b6   : > { %8436 = vst [vmem:[#allocation121_spill] sm:$0xff] %v6857_v13  ;;  %v2506_v25 = vadd.f32 %v2505_v48, %v2393_v40  ;;  %2776 = vadd.xlane.f32.xlu1 %v2775_v49  ;;  %v2282_v22 = vpop.f32.mrf.mxu0  ;;  %v2395_v30 = vpop.f32.mrf.mxu1  ;;  %v2919_v52 = vmul.f32 %v6857_v13, %v6857_v13  ;;  %v2920_v33 = vmul.f32 %v6860_v29, %v6860_v29  ;;  %v4082_v40 = vld [vmem:[%s4496_s15 + $0x1a0] sm:$0xff]  ;;  %v8438_v49 = vld [vmem:[#allocation109_spill] sm:$0xff] }
 0x4b7   : > { %8437 = vst [vmem:[#allocation140_spill] sm:$0xff] %v6860_v29  ;;  %v2283_v14 = vadd.f32 %v2282_v22, %v6352_v19  ;;  %v6875_v48 = vadd.f32 %v4082_v40, %v8438_v49 }
 0x4b8   : > { %v2619_v6 = vadd.f32 %v2618_v24, %v2506_v25  ;;  %v2993_v43 = vadd.f32 %v2920_v33, %v2919_v52 }
 0x4b9   : > { %v2735_v41 = vpop.xlane.xlu2 %2734  ;;  %v2396_v61 = vadd.f32 %v2395_v30, %v2283_v14 }
 0x4ba   : > { %v6870_v56 = vadd.f32 %v4081_v37, %v2619_v6  ;;  %v2814_v62 = vmul.f32 %v6635_v20, %v2735_v41  ;;  %2994 = vadd.xlane.f32.xlu0 %v2993_v43 }
 0x4bc   : > { %v6878_v13 = vsub.f32 %v6577_v8, %v2814_v62  ;;  %v6881_v24 = vsub.f32 %v6569_v50, %v2814_v62  ;;  %v2778_v25 = vadd.f32 %v6870_v56, %v6875_v48  ;;  %v4083_v62 = vld [vmem:[%s4496_s15 + $0x1b8] sm:$0xff] }
 0x4bd   : > { %v2508_v22 = vpop.f32.mrf.mxu2  ;;  %v2621_v52 = vpop.f32.mrf.mxu3 }
 0x4be   : > { %8439 = vst [vmem:[#allocation123_spill] sm:$0xff] %v6878_v13  ;;  %v2509_v33 = vadd.f32 %v2508_v22, %v2396_v61  ;;  %2779 = vadd.xlane.f32.xlu2 %v2778_v25  ;;  %v2285_v6 = vpop.f32.mrf.mxu0  ;;  %v2398_v43 = vpop.f32.mrf.mxu1  ;;  %v2921_v30 = vmul.f32 %v6878_v13, %v6878_v13  ;;  %v2922_v8 = vmul.f32 %v6881_v24, %v6881_v24  ;;  %v4084_v61 = vld [vmem:[%s4496_s15 + $0x1b0] sm:$0xff] }
 0x4bf   : > { %v2286_v50 = vadd.f32 %v2285_v6, %v6352_v19  ;;  %v8440_v25 = vld [vmem:[#allocation113_spill] sm:$0xff] }
 0x4c0   : > { %v2622_v14 = vadd.f32 %v2621_v52, %v2509_v33  ;;  %v2996_v41 = vadd.f32 %v2922_v8, %v2921_v30  ;;  %v6896_v22 = vadd.f32 %v4084_v61, %v8440_v25 }
 0x4c1   : > { %v2738_v37 = vpop.xlane.xlu0 %2737  ;;  %v2399_v29 = vadd.f32 %v2398_v43, %v2286_v50 }
 0x4c2   : > { %v6891_v40 = vadd.f32 %v4083_v62, %v2622_v14  ;;  %v2815_v49 = vmul.f32 %v6635_v20, %v2738_v37  ;;  %2997 = vadd.xlane.f32.xlu1 %v2996_v41 }
 0x4c4   : > { %v6899_v13 = vsub.f32 %v6595_v10, %v2815_v49  ;;  %v6902_v52 = vsub.f32 %v6587_v42, %v2815_v49  ;;  %v2781_v33 = vadd.f32 %v6891_v40, %v6896_v22  ;;  %v4085_v49 = vld [vmem:[%s4496_s15 + $0x1c8] sm:$0xff] }
 0x4c5   : > { %v2511_v6 = vpop.f32.mrf.mxu2  ;;  %v2624_v30 = vpop.f32.mrf.mxu3 }
 0x4c6   : > { %8441 = vst [vmem:[#allocation59_spill] sm:$0xff] %v6899_v13  ;;  %v2512_v8 = vadd.f32 %v2511_v6, %v2399_v29  ;;  %2782 = vadd.xlane.f32.xlu0 %v2781_v33  ;;  %v2288_v14 = vpop.f32.mrf.mxu0  ;;  %v2923_v41 = vmul.f32 %v6899_v13, %v6899_v13  ;;  %v2924_v43 = vmul.f32 %v6902_v52, %v6902_v52  ;;  %v2401_v10 = vpop.f32.mrf.mxu1  ;;  %v4086_v29 = vld [vmem:[%s4496_s15 + $0x1c0] sm:$0xff] }
 0x4c7   : > { %8442 = vst [vmem:[#allocation20_spill] sm:$0xff] %v6902_v52  ;;  %v2289_v42 = vadd.f32 %v2288_v14, %v6352_v19  ;;  %v8443_v33 = vld [vmem:[#allocation111_spill] sm:$0xff] }
 0x4c8   : > { %v2625_v50 = vadd.f32 %v2624_v30, %v2512_v8  ;;  %v2999_v37 = vadd.f32 %v2924_v43, %v2923_v41  ;;  %v6917_v6 = vadd.f32 %v4086_v29, %v8443_v33  ;;  %v4088_v29 = vld [vmem:[%s4496_s15 + $0x1d0] sm:$0xff] }
 0x4c9   : > { %v2741_v62 = vpop.xlane.xlu1 %2740  ;;  %v2402_v13 = vadd.f32 %v2401_v10, %v2289_v42 }
 0x4ca   : > { %v6912_v61 = vadd.f32 %v4085_v49, %v2625_v50  ;;  %v2816_v25 = vmul.f32 %v6635_v20, %v2741_v62  ;;  %3000 = vadd.xlane.f32.xlu2 %v2999_v37  ;;  %v4087_v49 = vld [vmem:[%s4496_s15 + $0x1d8] sm:$0xff] }
 0x4cc   : > { %v6920_v52 = vsub.f32 %v6613_v51, %v2816_v25  ;;  %v6923_v30 = vsub.f32 %v6605_v63, %v2816_v25  ;;  %v2784_v8 = vadd.f32 %v6912_v61, %v6917_v6 }
 0x4cd   : > { %v2514_v14 = vpop.f32.mrf.mxu2  ;;  %v2627_v41 = vpop.f32.mrf.mxu3 }
 0x4ce   : > { %8444 = vst [vmem:[#allocation60_spill] sm:$0xff] %v6920_v52  ;;  %v2515_v43 = vadd.f32 %v2514_v14, %v2402_v13  ;;  %2785 = vadd.xlane.f32.xlu1 %v2784_v8  ;;  %v2291_v50 = vpop.f32.mrf.mxu0  ;;  %v2925_v37 = vmul.f32 %v6920_v52, %v6920_v52  ;;  %v2926_v10 = vmul.f32 %v6923_v30, %v6923_v30  ;;  %v2404_v62 = vpop.f32.mrf.mxu1  ;;  %v8447_v13 = vld [vmem:[#allocation112_spill] sm:$0xff] }
 0x4cf   : > { %8445 = vst [vmem:[#allocation124_spill] sm:$0xff] %v6923_v30  ;;  %v2292_v42 = vadd.f32 %v2291_v50, %v6352_v19  ;;  %v6937_v33 = vadd.f32 %v4088_v29, %v8447_v13  ;;  %v4090_v13 = vld [vmem:[%s4496_s15 + $0x1e0] sm:$0xff] }
 0x4d0   : > { %v2628_v51 = vadd.f32 %v2627_v41, %v2515_v43  ;;  %v3002_v63 = vadd.f32 %v2926_v10, %v2925_v37 }
 0x4d1   : > { %8448 = vst [vmem:[#allocation23_spill] sm:$0xff] %v6937_v33  ;;  %v2405_v8 = vadd.f32 %v2404_v62, %v2292_v42  ;;  %v2744_v43 = vpop.xlane.xlu2 %2743  ;;  %v6948_v42 = vadd.f32 %v4090_v13, %v6338_v38 }
 0x4d2   : > { %v6933_v25 = vadd.f32 %v4087_v49, %v2628_v51  ;;  %3003 = vadd.xlane.f32.xlu0 %v3002_v63  ;;  %v4089_v63 = vld [vmem:[%s4496_s15 + $0x1e8] sm:$0xff] }
 0x4d4   : > { %8446 = vst [vmem:[#allocation16_spill] sm:$0xff] %v6933_v25  ;;  %v2787_v14 = vadd.f32 %v6933_v25, %v6937_v33 }
 0x4d5   : > { %v2517_v30 = vpop.f32.mrf.mxu2  ;;  %v2630_v41 = vpop.f32.mrf.mxu3 }
 0x4d6   : > { %v2518_v50 = vadd.f32 %v2517_v30, %v2405_v8  ;;  %2788 = vadd.xlane.f32.xlu2 %v2787_v14  ;;  %v2294_v37 = vpop.f32.mrf.mxu0  ;;  %v2407_v62 = vpop.f32.mrf.mxu1 }
 0x4d7   : > { %v2295_v51 = vadd.f32 %v2294_v37, %v6352_v19 }
 0x4d8   : > { %v2631_v10 = vadd.f32 %v2630_v41, %v2518_v50 }
 0x4d9   : > { %v2747_v49 = vpop.xlane.xlu0 %2746  ;;  %v2408_v25 = vadd.f32 %v2407_v62, %v2295_v51  ;;  %v4092_v62 = vld [vmem:[%s4496_s15 + $0x1f0] sm:$0xff] }
 0x4da   : > { %v6943_v52 = vadd.f32 %v4089_v63, %v2631_v10  ;;  %v2818_v29 = vmul.f32 %v6635_v20, %v2747_v49 }
 0x4dc   : > { %v6951_v33 = vsub.f32 %v6644_v7, %v2818_v29  ;;  %v6954_v30 = vsub.f32 %v6639_v27, %v2818_v29  ;;  %v2790_v19 = vadd.f32 %v6943_v52, %v6948_v42  ;;  %v2817_v7 = vmul.f32 %v6635_v20, %v2744_v43  ;;  %v4091_v29 = vld [vmem:[%s4496_s15 + $0x1f8] sm:$0xff]  ;;  %s4257_s15 = sshra.s32 %s3728_s1, 4  ;;  %s4258_s15 = int_to_ptr.hbm [resolvable:$true] %s4257_s15 }
 0x4dd   : > { %v2520_v8 = vpop.f32.mrf.mxu2  ;;  %v2965_v41 = vpop.xlane.xlu2 %2964  ;;  %s4259_s30 = scalar_lea.hbm %s4258_s15, 512  ;;  %p4264_p11 = scmp.lt.s32.totalorder %s4258_s15, %s7563_s7 }
 0x4de   : > { %8449 = vst [vmem:[#allocation73_spill] sm:$0xff] %v6951_v33  ;;  %v2521_v14 = vadd.f32 %v2520_v8, %v2408_v25  ;;  %2791 = vadd.xlane.f32.xlu0 %v2790_v19  ;;  %v2929_v38 = vmul.f32 %v6951_v33, %v6951_v33  ;;  %v2930_v50 = vmul.f32 %v6954_v30, %v6954_v30  ;;  %v2633_v37 = vpop.f32.mrf.mxu3  ;;  %v8451_v19 = vld [vmem:[#allocation136_spill] sm:$0xff]  ;;  %p4260_p1 = scmp.ne.s32.totalorder %s4258_s15, %s4259_s30  ;;  %p4265_p2 = scmp.lt.s32.totalorder %s4263_s20, %s4259_s30 }
 0x4df   : > { %8450 = vst [vmem:[#allocation125_spill] sm:$0xff] %v6954_v30  ;;  %v3059_v27 = vmul.f32 %v2965_v41, %v6635_v20  ;;  %v6970_v8 = vadd.f32 %v4092_v62, %v8451_v19  ;;  %v6973_v30 = vsub.f32 %v6631_v23, %v2817_v7  ;;  %v6976_v43 = vsub.f32 %v6623_v35, %v2817_v7 }
 0x4e0   : > { %v2634_v10 = vadd.f32 %v2633_v37, %v2521_v14  ;;  %v3008_v51 = vadd.f32 %v2930_v50, %v2929_v38  ;;  %p4261_p4 = pnand %p4260_p1, %p4457_p3  ;;  %p4266_p9 = por %p4265_p2, %p4264_p11 }
 0x4e1   : > { %v3091_v49 = vadd.f32 1e-06, %v3059_v27  ;;  %v2750_v63 = vpop.xlane.xlu1 %2749  ;;  %8452 = vst [vmem:[#allocation18_spill] sm:$0xff] %v6973_v30  ;;  %v2928_v27 = vmul.f32 %v6976_v43, %v6976_v43 }
 0x4e2   : > { %v6965_v25 = vadd.f32 %v4091_v29, %v2634_v10  ;;  %v2819_v13 = vmul.f32 %v6635_v20, %v2750_v63  ;;  %3009 = vadd.xlane.f32.xlu2 %v3008_v51  ;;  %8453 = vst [vmem:[#allocation26_spill] sm:$0xff] %v6976_v43  ;;  %p4262_p8 = pneg %p4261_p4 }
 0x4e3   : > { %3963 = vrsqrt.f32 %v3091_v49  ;;  %vm3129_vm2 = vweird.f32 %v3091_v49 }
 0x4e4   : > { %v6979_v14 = vsub.f32 %v6665_v9, %v2819_v13  ;;  %v6982_v41 = vsub.f32 %v6660_v26, %v2819_v13  ;;  %v2793_v38 = vadd.f32 %v6965_v25, %v6970_v8  ;;  %v2927_v26 = vmul.f32 %v6973_v30, %v6973_v30  ;;  %p4267_p10 = pnand %p4266_p9, %p4262_p8 }
 0x4e5   : > { %v2968_v50 = vpop.xlane.xlu0 %2967 }
 0x4e6   : > { %8454 = vst [vmem:[#allocation19_spill] sm:$0xff] %v6979_v14  ;;  %v3060_v37 = vmul.f32 %v2968_v50, %v6635_v20  ;;  %2794 = vadd.xlane.f32.xlu1 %v2793_v38  ;;  %v2931_v23 = vmul.f32 %v6979_v14, %v6979_v14  ;;  %v2932_v35 = vmul.f32 %v6982_v41, %v6982_v41 }
 0x4e7   : > { %8455 = vst [vmem:[#allocation126_spill] sm:$0xff] %v6982_v41  ;;  %v3005_v62 = vadd.f32 %v2928_v27, %v2927_v26 }
 0x4e8   : > { %v6991_v7 = vadd.f32 1e-06, %v3060_v37  ;;  %v3011_v9 = vadd.f32 %v2932_v35, %v2931_v23  ;;  %v3507_v35 = vld [vmem:[%s7561_s5] sm:$0x3] }
 0x4e9   : > { %v3964_v10 = vpop.eup %3963  ;;  %v2753_v51 = vpop.xlane.xlu2 %2752 }
 0x4ea   : > { %v3124_v63 = vmul.f32 %v3964_v10, %v3091_v49  ;;  %3965 = vrsqrt.f32 %v6991_v7  ;;  %3012 = vadd.xlane.f32.xlu0 %v3011_v9  ;;  %v2820_v29 = vmul.f32 %v6635_v20, %v2753_v51  ;;  %vm3130_vm1 = vweird.f32 %v3964_v10  ;;  %v3577_v51 = vld [vmem:[#allocation10] sm:$0x3] }
 0x4eb   : > { %vm3131_vm3 = vmor %vm3129_vm2, %vm3130_vm1  ;;  %v7031_v30 = vperm.slane %v3577_v51, 1  ;;  %vm3139_vm5 = vweird.f32 %v6991_v7 }
 0x4ec   : > { %v3125_v13 = vmul.f32 %v3964_v10, %v3124_v63  ;;  %v7000_v19 = vsub.f32 %v6686_v4, %v2820_v29  ;;  %v7003_v38 = vsub.f32 %v6681_v16, %v2820_v29 }
 0x4ed   : > { %v2971_v50 = vpop.xlane.xlu1 %2970 }
 0x4ee   : > { %8456 = vst [vmem:[#allocation21_spill] sm:$0xff] %v7000_v19  ;;  %v3126_v37 = vmul.f32 0.5, %v3125_v13  ;;  %v3061_v23 = vmul.f32 %v2971_v50, %v6635_v20  ;;  %3006 = vadd.xlane.f32.xlu1 %v3005_v62  ;;  %v2933_v4 = vmul.f32 %v7000_v19, %v7000_v19  ;;  %v2934_v16 = vmul.f32 %v7003_v38, %v7003_v38 }
 0x4ef   : > { %8457 = vst [vmem:[#allocation29_spill] sm:$0xff] %v7003_v38  ;;  %v7018_v50 = vperm.slane %v3507_v35, 0 }
 0x4f0   : > { %v3966_v9 = vpop.eup %3965  ;;  %v3127_v63 = vsub.f32 1.5, %v3126_v37  ;;  %v7009_v26 = vadd.f32 1e-06, %v3061_v23  ;;  %v7020_v37 = vperm.slane %v3507_v35, 1  ;;  %v7022_v23 = vperm.slane %v3577_v51, 0 }
 0x4f1   : > { %v3134_v27 = vmul.f32 %v3966_v9, %v6991_v7  ;;  %v2756_v29 = vpop.xlane.xlu0 %2755  ;;  %v3014_v49 = vadd.f32 %v2934_v16, %v2933_v4  ;;  %vm3140_vm4 = vweird.f32 %v3966_v9 }
 0x4f2   : > { %v3128_v13 = vmul.f32 %v3964_v10, %v3127_v63  ;;  %3967 = vrsqrt.f32 %v7009_v26  ;;  %v2821_v62 = vmul.f32 %v6635_v20, %v2756_v29  ;;  %vm3141_vm6 = vmor %vm3139_vm5, %vm3140_vm4  ;;  %vm3149_vm8 = vweird.f32 %v7009_v26 }
 0x4f3   : > { %v3135_v19 = vmul.f32 %v3966_v9, %v3134_v27 }
 0x4f4   : > { %v3132_v43 = vsel %vm3131_vm3, %v3964_v10, %v3128_v13  ;;  %v7026_v38 = vsub.f32 %v6707_v47, %v2821_v62  ;;  %v7029_v63 = vsub.f32 %v6702_v1, %v2821_v62 }
 0x4f5   : > { %v3443_v29 = vmul.f32 %v3132_v43, %v6647_v15  ;;  %v3444_v35 = vmul.f32 %v3132_v43, %v6650_v28  ;;  %v3136_v41 = vmul.f32 0.5, %v3135_v19  ;;  %v2974_v14 = vpop.xlane.xlu2 %2973 }
 0x4f6   : > { %v3062_v33 = vmul.f32 %v2974_v14, %v6635_v20  ;;  %3015 = vadd.xlane.f32.xlu1 %v3014_v49  ;;  %v2935_v10 = vmul.f32 %v7026_v38, %v7026_v38  ;;  %v2936_v47 = vmul.f32 %v7029_v63, %v7029_v63 }
 0x4f7   : > { %v3513_v1 = vmul.f32 %v7018_v50, %v3443_v29  ;;  %v3514_v51 = vmul.f32 %v7020_v37, %v3444_v35  ;;  %v3137_v4 = vsub.f32 1.5, %v3136_v41 }
 0x4f8   : > { %v3968_v15 = vpop.eup %3967  ;;  %v7043_v28 = vadd.f32 1e-06, %v3062_v33  ;;  %v3017_v43 = vadd.f32 %v2936_v47, %v2935_v10 }
 0x4f9   : > { %v3583_v14 = vadd.f32 %v7022_v23, %v3513_v1  ;;  %v3584_v19 = vadd.f32 %v7031_v30, %v3514_v51  ;;  %v3138_v16 = vmul.f32 %v3966_v9, %v3137_v4  ;;  %v3144_v27 = vmul.f32 %v3968_v15, %v7009_v26  ;;  %v2759_v13 = vpop.xlane.xlu1 %2758 }
 0x4fa   : > { %3969 = vrsqrt.f32 %v7043_v28  ;;  %v2822_v41 = vmul.f32 %v6635_v20, %v2759_v13  ;;  %3018 = vadd.xlane.f32.xlu2 %v3017_v43  ;;  %vm3150_vm7 = vweird.f32 %v3968_v15  ;;  %vm3159_vm11 = vweird.f32 %v7043_v28 }
 0x4fb   : > { %3647 = vst [vmem:[%s7052_s16] sm:$0xff] %v3583_v14  ;;  %v3142_v33 = vsel %vm3141_vm6, %v3966_v9, %v3138_v16  ;;  %v3145_v7 = vmul.f32 %v3968_v15, %v3144_v27  ;;  %vm3151_vm9 = vmor %vm3149_vm8, %vm3150_vm7 }
 0x4fc   : > { %3648 = vst [vmem:[%s7052_s16 + $0x8] sm:$0xff] %v3584_v19  ;;  %v3445_v62 = vmul.f32 %v3142_v33, %v6668_v5  ;;  %v3446_v49 = vmul.f32 %v3142_v33, %v6671_v12  ;;  %v7059_v29 = vsub.f32 %v6728_v39, %v2822_v41  ;;  %v7062_v35 = vsub.f32 %v6723_v53, %v2822_v41 }
 0x4fd   : > { %v3146_v10 = vmul.f32 0.5, %v3145_v7  ;;  %v2977_v47 = vpop.xlane.xlu0 %2976 }
 0x4fe   : > { %v3515_v1 = vmul.f32 %v7018_v50, %v3445_v62  ;;  %v3516_v51 = vmul.f32 %v7020_v37, %v3446_v49  ;;  %v3063_v9 = vmul.f32 %v2977_v47, %v6635_v20  ;;  %v2937_v5 = vmul.f32 %v7059_v29, %v7059_v29 }
 0x4ff   : > { %v3147_v4 = vsub.f32 1.5, %v3146_v10  ;;  %v2938_v12 = vmul.f32 %v7062_v35, %v7062_v35 }
 0x500   : > { %v3970_v53 = vpop.eup %3969  ;;  %v3585_v39 = vadd.f32 %v7022_v23, %v3515_v1  ;;  %v3586_v43 = vadd.f32 %v7031_v30, %v3516_v51  ;;  %v7073_v14 = vadd.f32 1e-06, %v3063_v9 }
 0x501   : > { %v3148_v19 = vmul.f32 %v3968_v15, %v3147_v4  ;;  %v3154_v16 = vmul.f32 %v3970_v53, %v7043_v28  ;;  %v2762_v27 = vpop.xlane.xlu2 %2761  ;;  %v3020_v13 = vadd.f32 %v2938_v12, %v2937_v5  ;;  %vm3160_vm10 = vweird.f32 %v3970_v53 }
 0x502   : > { %3649 = vst [vmem:[%s7052_s16 + $0x10] sm:$0xff] %v3585_v39  ;;  %3971 = vrsqrt.f32 %v7073_v14  ;;  %v2823_v41 = vmul.f32 %v6635_v20, %v2762_v27  ;;  %vm3161_vm12 = vmor %vm3159_vm11, %vm3160_vm10  ;;  %vm3169_vm14 = vweird.f32 %v7073_v14 }
 0x503   : > { %3650 = vst [vmem:[%s7052_s16 + $0x18] sm:$0xff] %v3586_v43  ;;  %v3152_v33 = vsel %vm3151_vm9, %v3968_v15, %v3148_v19  ;;  %v3155_v7 = vmul.f32 %v3970_v53, %v3154_v16  ;;  %3021 = vadd.xlane.f32.xlu0 %v3020_v13 }
 0x504   : > { %v3447_v62 = vmul.f32 %v3152_v33, %v6689_v18  ;;  %v3448_v49 = vmul.f32 %v3152_v33, %v6692_v60  ;;  %v7084_v26 = vsub.f32 %v6749_v34, %v2823_v41  ;;  %v7087_v10 = vsub.f32 %v6744_v17, %v2823_v41 }
 0x505   : > { %v3156_v47 = vmul.f32 0.5, %v3155_v7  ;;  %v2980_v1 = vpop.xlane.xlu1 %2979 }
 0x506   : > { %v3517_v51 = vmul.f32 %v7018_v50, %v3447_v62  ;;  %v3518_v9 = vmul.f32 %v7020_v37, %v3448_v49  ;;  %v3064_v15 = vmul.f32 %v2980_v1, %v6635_v20  ;;  %v2939_v18 = vmul.f32 %v7084_v26, %v7084_v26 }
 0x507   : > { %v3157_v5 = vsub.f32 1.5, %v3156_v47  ;;  %v2940_v60 = vmul.f32 %v7087_v10, %v7087_v10 }
 0x508   : > { %v3972_v17 = vpop.eup %3971  ;;  %v3587_v34 = vadd.f32 %v7022_v23, %v3517_v51  ;;  %v3588_v4 = vadd.f32 %v7031_v30, %v3518_v9  ;;  %v7098_v12 = vadd.f32 1e-06, %v3064_v15 }
 0x509   : > { %v3158_v39 = vmul.f32 %v3970_v53, %v3157_v5  ;;  %v3164_v43 = vmul.f32 %v3972_v17, %v7073_v14  ;;  %v2765_v19 = vpop.xlane.xlu0 %2764  ;;  %v3023_v16 = vadd.f32 %v2940_v60, %v2939_v18  ;;  %vm3170_vm13 = vweird.f32 %v3972_v17 }
 0x50a   : > { %3651 = vst [vmem:[%s7052_s16 + $0x20] sm:$0xff] %v3587_v34  ;;  %3973 = vrsqrt.f32 %v7098_v12  ;;  %v2824_v27 = vmul.f32 %v6635_v20, %v2765_v19  ;;  %vm3171_vm15 = vmor %vm3169_vm14, %vm3170_vm13  ;;  %vm3179_vm1 = vweird.f32 %v7098_v12 }
 0x50b   : > { %3652 = vst [vmem:[%s7052_s16 + $0x28] sm:$0xff] %v3588_v4  ;;  %v3162_v13 = vsel %vm3161_vm12, %v3970_v53, %v3158_v39  ;;  %v3165_v41 = vmul.f32 %v3972_v17, %v3164_v43  ;;  %3024 = vadd.xlane.f32.xlu1 %v3023_v16 }
 0x50c   : > { %v3449_v33 = vmul.f32 %v3162_v13, %v6710_v54  ;;  %v3450_v7 = vmul.f32 %v3162_v13, %v6713_v32  ;;  %v7109_v28 = vsub.f32 %v6770_v59, %v2824_v27  ;;  %v7112_v62 = vsub.f32 %v6765_v44, %v2824_v27 }
 0x50d   : > { %v3166_v49 = vmul.f32 0.5, %v3165_v41  ;;  %v2983_v47 = vpop.xlane.xlu2 %2982 }
 0x50e   : > { %v3519_v1 = vmul.f32 %v7018_v50, %v3449_v33  ;;  %v3520_v51 = vmul.f32 %v7020_v37, %v3450_v7  ;;  %v3065_v53 = vmul.f32 %v2983_v47, %v6635_v20  ;;  %v2941_v54 = vmul.f32 %v7109_v28, %v7109_v28 }
 0x50f   : > { %v3167_v9 = vsub.f32 1.5, %v3166_v49  ;;  %v2942_v32 = vmul.f32 %v7112_v62, %v7112_v62 }
 0x510   : > { %v3974_v44 = vpop.eup %3973  ;;  %v3589_v59 = vadd.f32 %v7022_v23, %v3519_v1  ;;  %v3590_v15 = vadd.f32 %v7031_v30, %v3520_v51  ;;  %v7123_v18 = vadd.f32 1e-06, %v3065_v53 }
 0x511   : > { %v3168_v5 = vmul.f32 %v3972_v17, %v3167_v9  ;;  %v3174_v60 = vmul.f32 %v3974_v44, %v7098_v12  ;;  %v2768_v34 = vpop.xlane.xlu1 %2767  ;;  %v3026_v4 = vadd.f32 %v2942_v32, %v2941_v54  ;;  %vm3180_vm0 = vweird.f32 %v3974_v44 }
 0x512   : > { %3653 = vst [vmem:[%s7052_s16 + $0x30] sm:$0xff] %v3589_v59  ;;  %3975 = vrsqrt.f32 %v7123_v18  ;;  %v2825_v39 = vmul.f32 %v6635_v20, %v2768_v34  ;;  %vm3181_vm2 = vmor %vm3179_vm1, %vm3180_vm0  ;;  %vm3189_vm4 = vweird.f32 %v7123_v18 }
 0x513   : > { %3654 = vst [vmem:[%s7052_s16 + $0x38] sm:$0xff] %v3590_v15  ;;  %v3172_v43 = vsel %vm3171_vm15, %v3972_v17, %v3168_v5  ;;  %v3175_v19 = vmul.f32 %v3974_v44, %v3174_v60  ;;  %3027 = vadd.xlane.f32.xlu2 %v3026_v4 }
 0x514   : > { %v3451_v16 = vmul.f32 %v3172_v43, %v6731_v21  ;;  %v3452_v27 = vmul.f32 %v3172_v43, %v6734_v58  ;;  %v7134_v14 = vsub.f32 %v6791_v2, %v2825_v39  ;;  %v7137_v13 = vsub.f32 %v6786_v3, %v2825_v39 }
 0x515   : > { %v3176_v41 = vmul.f32 0.5, %v3175_v19  ;;  %v2986_v33 = vpop.xlane.xlu0 %2985 }
 0x516   : > { %v3521_v7 = vmul.f32 %v7018_v50, %v3451_v16  ;;  %v3522_v49 = vmul.f32 %v7020_v37, %v3452_v27  ;;  %v3066_v17 = vmul.f32 %v2986_v33, %v6635_v20  ;;  %v2943_v21 = vmul.f32 %v7134_v14, %v7134_v14 }
 0x517   : > { %v3177_v47 = vsub.f32 1.5, %v3176_v41  ;;  %v2944_v58 = vmul.f32 %v7137_v13, %v7137_v13 }
 0x518   : > { %v3976_v3 = vpop.eup %3975  ;;  %v3591_v2 = vadd.f32 %v7022_v23, %v3521_v7  ;;  %v3592_v1 = vadd.f32 %v7031_v30, %v3522_v49  ;;  %v7148_v51 = vadd.f32 1e-06, %v3066_v17 }
 0x519   : > { %v3178_v53 = vmul.f32 %v3974_v44, %v3177_v47  ;;  %v3184_v54 = vmul.f32 %v3976_v3, %v7123_v18  ;;  %v2771_v9 = vpop.xlane.xlu2 %2770  ;;  %v3029_v32 = vadd.f32 %v2944_v58, %v2943_v21  ;;  %vm3190_vm3 = vweird.f32 %v3976_v3 }
 0x51a   : > { %3655 = vst [vmem:[%s7052_s16 + $0x40] sm:$0xff] %v3591_v2  ;;  %3977 = vrsqrt.f32 %v7148_v51  ;;  %v2826_v59 = vmul.f32 %v6635_v20, %v2771_v9  ;;  %vm3191_vm5 = vmor %vm3189_vm4, %vm3190_vm3  ;;  %vm3199_vm7 = vweird.f32 %v7148_v51 }
 0x51b   : > { %3656 = vst [vmem:[%s7052_s16 + $0x48] sm:$0xff] %v3592_v1  ;;  %v3182_v15 = vsel %vm3181_vm2, %v3974_v44, %v3178_v53  ;;  %v3185_v5 = vmul.f32 %v3976_v3, %v3184_v54  ;;  %3030 = vadd.xlane.f32.xlu0 %v3029_v32  ;;  %v8458_v1 = vld [vmem:[#allocation116_spill] sm:$0xff]  ;;  %v8459_v54 = vld [vmem:[#allocation114_spill] sm:$0xff] }
 0x51c   : > { %v3453_v60 = vmul.f32 %v3182_v15, %v6752_v11  ;;  %v3454_v34 = vmul.f32 %v3182_v15, %v6755_v55  ;;  %v7159_v12 = vsub.f32 %v6812_v31, %v2826_v59  ;;  %v7162_v4 = vsub.f32 %v6807_v46, %v2826_v59 }
 0x51d   : > { %v3186_v39 = vmul.f32 0.5, %v3185_v5  ;;  %v2989_v43 = vpop.xlane.xlu1 %2988 }
 0x51e   : > { %v3523_v19 = vmul.f32 %v7018_v50, %v3453_v60  ;;  %v3524_v16 = vmul.f32 %v7020_v37, %v3454_v34  ;;  %v3067_v44 = vmul.f32 %v2989_v43, %v6635_v20  ;;  %v2945_v11 = vmul.f32 %v7159_v12, %v7159_v12 }
 0x51f   : > { %v3187_v27 = vsub.f32 1.5, %v3186_v39  ;;  %v2946_v55 = vmul.f32 %v7162_v4, %v7162_v4 }
 0x520   : > { %v3978_v46 = vpop.eup %3977  ;;  %v3593_v31 = vadd.f32 %v7022_v23, %v3523_v19  ;;  %v3594_v41 = vadd.f32 %v7031_v30, %v3524_v16  ;;  %v7173_v33 = vadd.f32 1e-06, %v3067_v44 }
 0x521   : > { %v3188_v7 = vmul.f32 %v3976_v3, %v3187_v27  ;;  %v3194_v49 = vmul.f32 %v3978_v46, %v7148_v51  ;;  %v2774_v17 = vpop.xlane.xlu0 %2773  ;;  %v3032_v21 = vadd.f32 %v2946_v55, %v2945_v11  ;;  %vm3200_vm6 = vweird.f32 %v3978_v46 }
 0x522   : > { %3657 = vst [vmem:[%s7052_s16 + $0x50] sm:$0xff] %v3593_v31  ;;  %3979 = vrsqrt.f32 %v7173_v33  ;;  %v2827_v47 = vmul.f32 %v6635_v20, %v2774_v17  ;;  %vm3201_vm8 = vmor %vm3199_vm7, %vm3200_vm6  ;;  %vm3209_vm10 = vweird.f32 %v7173_v33 }
 0x523   : > { %3658 = vst [vmem:[%s7052_s16 + $0x58] sm:$0xff] %v3594_v41  ;;  %v3192_v58 = vsel %vm3191_vm5, %v3976_v3, %v3188_v7  ;;  %v3195_v2 = vmul.f32 %v3978_v46, %v3194_v49  ;;  %3033 = vadd.xlane.f32.xlu1 %v3032_v21  ;;  %v8460_v49 = vld [vmem:[#allocation115_spill] sm:$0xff] }
 0x524   : > { %v3455_v53 = vmul.f32 %v3192_v58, %v8458_v1  ;;  %v3456_v9 = vmul.f32 %v3192_v58, %v8459_v54  ;;  %v7184_v18 = vsub.f32 %v6833_v45, %v2827_v47  ;;  %v7187_v32 = vsub.f32 %v6828_v57, %v2827_v47  ;;  %v8461_v21 = vld [vmem:[#allocation119_spill] sm:$0xff] }
 0x525   : > { %v3196_v59 = vmul.f32 0.5, %v3195_v2  ;;  %v2992_v15 = vpop.xlane.xlu2 %2991 }
 0x526   : > { %v3525_v5 = vmul.f32 %v7018_v50, %v3455_v53  ;;  %v3526_v60 = vmul.f32 %v7020_v37, %v3456_v9  ;;  %v3068_v3 = vmul.f32 %v2992_v15, %v6635_v20  ;;  %v2947_v34 = vmul.f32 %v7184_v18, %v7184_v18 }
 0x527   : > { %v3197_v39 = vsub.f32 1.5, %v3196_v59  ;;  %v2948_v45 = vmul.f32 %v7187_v32, %v7187_v32 }
 0x528   : > { %v3980_v57 = vpop.eup %3979  ;;  %v3595_v43 = vadd.f32 %v7022_v23, %v3525_v5  ;;  %v3596_v19 = vadd.f32 %v7031_v30, %v3526_v60  ;;  %v7198_v16 = vadd.f32 1e-06, %v3068_v3 }
 0x529   : > { %v3198_v44 = vmul.f32 %v3978_v46, %v3197_v39  ;;  %v3204_v11 = vmul.f32 %v3980_v57, %v7173_v33  ;;  %v2777_v27 = vpop.xlane.xlu1 %2776  ;;  %v3035_v55 = vadd.f32 %v2948_v45, %v2947_v34  ;;  %vm3210_vm9 = vweird.f32 %v3980_v57 }
 0x52a   : > { %3659 = vst [vmem:[%s7052_s16 + $0x60] sm:$0xff] %v3595_v43  ;;  %3981 = vrsqrt.f32 %v7198_v16  ;;  %v2828_v31 = vmul.f32 %v6635_v20, %v2777_v27  ;;  %vm3211_vm11 = vmor %vm3209_vm10, %vm3210_vm9  ;;  %vm3219_vm13 = vweird.f32 %v7198_v16 }
 0x52b   : > { %3660 = vst [vmem:[%s7052_s16 + $0x68] sm:$0xff] %v3596_v19  ;;  %v3202_v41 = vsel %vm3201_vm8, %v3978_v46, %v3198_v44  ;;  %v3205_v7 = vmul.f32 %v3980_v57, %v3204_v11  ;;  %3036 = vadd.xlane.f32.xlu2 %v3035_v55  ;;  %v8462_v11 = vld [vmem:[#allocation117_spill] sm:$0xff]  ;;  %v8463_v55 = vld [vmem:[#allocation118_spill] sm:$0xff] }
 0x52c   : > { %v3457_v17 = vmul.f32 %v3202_v41, %v8460_v49  ;;  %v3458_v47 = vmul.f32 %v3202_v41, %v8461_v21  ;;  %v7209_v51 = vsub.f32 %v6854_v0, %v2828_v31  ;;  %v7212_v58 = vsub.f32 %v6849_v36, %v2828_v31 }
 0x52d   : > { %v3206_v2 = vmul.f32 0.5, %v3205_v7  ;;  %v2995_v1 = vpop.xlane.xlu0 %2994 }
 0x52e   : > { %v3527_v53 = vmul.f32 %v7018_v50, %v3457_v17  ;;  %v3528_v54 = vmul.f32 %v7020_v37, %v3458_v47  ;;  %v3069_v46 = vmul.f32 %v2995_v1, %v6635_v20  ;;  %v2949_v9 = vmul.f32 %v7209_v51, %v7209_v51 }
 0x52f   : > { %v3207_v59 = vsub.f32 1.5, %v3206_v2  ;;  %v2950_v0 = vmul.f32 %v7212_v58, %v7212_v58 }
 0x530   : > { %v3982_v36 = vpop.eup %3981  ;;  %v3597_v15 = vadd.f32 %v7022_v23, %v3527_v53  ;;  %v3598_v5 = vadd.f32 %v7031_v30, %v3528_v54  ;;  %v7223_v60 = vadd.f32 1e-06, %v3069_v46 }
 0x531   : > { %v3208_v3 = vmul.f32 %v3980_v57, %v3207_v59  ;;  %v3214_v34 = vmul.f32 %v3982_v36, %v7198_v16  ;;  %v2780_v39 = vpop.xlane.xlu2 %2779  ;;  %v3038_v45 = vadd.f32 %v2950_v0, %v2949_v9  ;;  %vm3220_vm12 = vweird.f32 %v3982_v36 }
 0x532   : > { %3661 = vst [vmem:[%s7052_s16 + $0x70] sm:$0xff] %v3597_v15  ;;  %3983 = vrsqrt.f32 %v7223_v60  ;;  %v2829_v43 = vmul.f32 %v6635_v20, %v2780_v39  ;;  %vm3221_vm14 = vmor %vm3219_vm13, %vm3220_vm12  ;;  %vm3229_vm0 = vweird.f32 %v7223_v60 }
 0x533   : > { %3662 = vst [vmem:[%s7052_s16 + $0x78] sm:$0xff] %v3598_v5  ;;  %v3212_v19 = vsel %vm3211_vm11, %v3980_v57, %v3208_v3  ;;  %v3215_v44 = vmul.f32 %v3982_v36, %v3214_v34  ;;  %3039 = vadd.xlane.f32.xlu0 %v3038_v45  ;;  %v8464_v34 = vld [vmem:[#allocation122_spill] sm:$0xff]  ;;  %v8465_v45 = vld [vmem:[#allocation120_spill] sm:$0xff] }
 0x534   : > { %v3459_v27 = vmul.f32 %v3212_v19, %v8462_v11  ;;  %v3460_v31 = vmul.f32 %v3212_v19, %v8463_v55  ;;  %v7234_v33 = vsub.f32 %v6875_v48, %v2829_v43  ;;  %v7237_v41 = vsub.f32 %v6870_v56, %v2829_v43 }
 0x535   : > { %v3216_v7 = vmul.f32 0.5, %v3215_v44  ;;  %v2998_v49 = vpop.xlane.xlu1 %2997 }
 0x536   : > { %v3529_v17 = vmul.f32 %v7018_v50, %v3459_v27  ;;  %v3530_v21 = vmul.f32 %v7020_v37, %v3460_v31  ;;  %v3070_v57 = vmul.f32 %v2998_v49, %v6635_v20  ;;  %v2951_v47 = vmul.f32 %v7234_v33, %v7234_v33 }
 0x537   : > { %v3217_v2 = vsub.f32 1.5, %v3216_v7  ;;  %v2952_v48 = vmul.f32 %v7237_v41, %v7237_v41 }
 0x538   : > { %v3984_v56 = vpop.eup %3983  ;;  %v3599_v1 = vadd.f32 %v7022_v23, %v3529_v17  ;;  %v3600_v53 = vadd.f32 %v7031_v30, %v3530_v21  ;;  %v7248_v54 = vadd.f32 1e-06, %v3070_v57 }
 0x539   : > { %v3218_v46 = vmul.f32 %v3982_v36, %v3217_v2  ;;  %v3224_v9 = vmul.f32 %v3984_v56, %v7223_v60  ;;  %v2783_v59 = vpop.xlane.xlu0 %2782  ;;  %v3041_v0 = vadd.f32 %v2952_v48, %v2951_v47  ;;  %vm3230_vm15 = vweird.f32 %v3984_v56 }
 0x53a   : > { %3663 = vst [vmem:[%s7052_s16 + $0x80] sm:$0xff] %v3599_v1  ;;  %3985 = vrsqrt.f32 %v7248_v54  ;;  %v2830_v15 = vmul.f32 %v6635_v20, %v2783_v59  ;;  %vm3231_vm1 = vmor %vm3229_vm0, %vm3230_vm15  ;;  %vm3239_vm3 = vweird.f32 %v7248_v54 }
 0x53b   : > { %3664 = vst [vmem:[%s7052_s16 + $0x88] sm:$0xff] %v3600_v53  ;;  %v3222_v5 = vsel %vm3221_vm14, %v3982_v36, %v3218_v46  ;;  %v3225_v3 = vmul.f32 %v3984_v56, %v3224_v9  ;;  %3042 = vadd.xlane.f32.xlu1 %v3041_v0  ;;  %v8466_v9 = vld [vmem:[#allocation121_spill] sm:$0xff]  ;;  %v8467_v0 = vld [vmem:[#allocation140_spill] sm:$0xff] }
 0x53c   : > { %v3461_v39 = vmul.f32 %v3222_v5, %v8464_v34  ;;  %v3462_v43 = vmul.f32 %v3222_v5, %v8465_v45  ;;  %v7259_v16 = vsub.f32 %v6896_v22, %v2830_v15  ;;  %v7262_v19 = vsub.f32 %v6891_v40, %v2830_v15 }
 0x53d   : > { %v3226_v44 = vmul.f32 0.5, %v3225_v3  ;;  %v3001_v11 = vpop.xlane.xlu2 %3000 }
 0x53e   : > { %v3531_v27 = vmul.f32 %v7018_v50, %v3461_v39  ;;  %v3532_v55 = vmul.f32 %v7020_v37, %v3462_v43  ;;  %v3071_v36 = vmul.f32 %v3001_v11, %v6635_v20  ;;  %v2953_v31 = vmul.f32 %v7259_v16, %v7259_v16 }
 0x53f   : > { %v3227_v7 = vsub.f32 1.5, %v3226_v44  ;;  %v2954_v22 = vmul.f32 %v7262_v19, %v7262_v19 }
 0x540   : > { %v3986_v40 = vpop.eup %3985  ;;  %v3601_v49 = vadd.f32 %v7022_v23, %v3531_v27  ;;  %v3602_v17 = vadd.f32 %v7031_v30, %v3532_v55  ;;  %v7273_v21 = vadd.f32 1e-06, %v3071_v36 }
 0x541   : > { %v3228_v57 = vmul.f32 %v3984_v56, %v3227_v7  ;;  %v3234_v47 = vmul.f32 %v3986_v40, %v7248_v54  ;;  %v2786_v2 = vpop.xlane.xlu1 %2785  ;;  %v3044_v48 = vadd.f32 %v2954_v22, %v2953_v31  ;;  %vm3240_vm2 = vweird.f32 %v3986_v40  ;;  %v8470_v54 = vld [vmem:[#allocation16_spill] sm:$0xff] }
 0x542   : > { %3665 = vst [vmem:[%s7052_s16 + $0x90] sm:$0xff] %v3601_v49  ;;  %3987 = vrsqrt.f32 %v7273_v21  ;;  %v2831_v1 = vmul.f32 %v6635_v20, %v2786_v2  ;;  %vm3241_vm4 = vmor %vm3239_vm3, %vm3240_vm2  ;;  %vm3249_vm6 = vweird.f32 %v7273_v21 }
 0x543   : > { %3666 = vst [vmem:[%s7052_s16 + $0x98] sm:$0xff] %v3602_v17  ;;  %v3232_v53 = vsel %vm3231_vm1, %v3984_v56, %v3228_v57  ;;  %v3235_v46 = vmul.f32 %v3986_v40, %v3234_v47  ;;  %3045 = vadd.xlane.f32.xlu2 %v3044_v48  ;;  %v8468_v47 = vld [vmem:[#allocation123_spill] sm:$0xff] }
 0x544   : > { %v3463_v59 = vmul.f32 %v3232_v53, %v8466_v9  ;;  %v3464_v15 = vmul.f32 %v3232_v53, %v8467_v0  ;;  %v7284_v60 = vsub.f32 %v6917_v6, %v2831_v1  ;;  %v7287_v5 = vsub.f32 %v6912_v61, %v2831_v1  ;;  %v8469_v1 = vld [vmem:[#allocation23_spill] sm:$0xff] }
 0x545   : > { %v3236_v3 = vmul.f32 0.5, %v3235_v46  ;;  %v3004_v34 = vpop.xlane.xlu0 %3003 }
 0x546   : > { %v3533_v39 = vmul.f32 %v7018_v50, %v3463_v59  ;;  %v3534_v45 = vmul.f32 %v7020_v37, %v3464_v15  ;;  %v3072_v56 = vmul.f32 %v3004_v34, %v6635_v20  ;;  %v2955_v43 = vmul.f32 %v7284_v60, %v7284_v60 }
 0x547   : > { %v3237_v44 = vsub.f32 1.5, %v3236_v3  ;;  %v2956_v6 = vmul.f32 %v7287_v5, %v7287_v5 }
 0x548   : > { %v3988_v61 = vpop.eup %3987  ;;  %v3603_v11 = vadd.f32 %v7022_v23, %v3533_v39  ;;  %v3604_v27 = vadd.f32 %v7031_v30, %v3534_v45  ;;  %v3104_v55 = vadd.f32 1e-06, %v3072_v56 }
 0x549   : > { %v3238_v36 = vmul.f32 %v3986_v40, %v3237_v44  ;;  %v3244_v31 = vmul.f32 %v3988_v61, %v7273_v21  ;;  %v2789_v7 = vpop.xlane.xlu2 %2788  ;;  %v3047_v22 = vadd.f32 %v2956_v6, %v2955_v43  ;;  %vm3250_vm5 = vweird.f32 %v3988_v61 }
 0x54a   : > { %3667 = vst [vmem:[%s7052_s16 + $0xa0] sm:$0xff] %v3603_v11  ;;  %3989 = vrsqrt.f32 %v3104_v55  ;;  %v2832_v49 = vmul.f32 %v6635_v20, %v2789_v7  ;;  %vm3251_vm7 = vmor %vm3249_vm6, %vm3250_vm5  ;;  %v8472_v7 = vld [vmem:[#allocation20_spill] sm:$0xff]  ;;  %vm3259_vm9 = vweird.f32 %v3104_v55 }
 0x54b   : > { %3668 = vst [vmem:[%s7052_s16 + $0xa8] sm:$0xff] %v3604_v27  ;;  %v3242_v17 = vsel %vm3241_vm4, %v3986_v40, %v3238_v36  ;;  %v3245_v57 = vmul.f32 %v3988_v61, %v3244_v31  ;;  %3048 = vadd.xlane.f32.xlu0 %v3047_v22  ;;  %v8471_v36 = vld [vmem:[#allocation59_spill] sm:$0xff] }
 0x54c   : > { %v3465_v2 = vmul.f32 %v3242_v17, %v8468_v47  ;;  %v3466_v48 = vmul.f32 %v3242_v17, %v6881_v24  ;;  %v7306_v53 = vsub.f32 %v8469_v1, %v2832_v49  ;;  %v7309_v46 = vsub.f32 %v8470_v54, %v2832_v49 }
 0x54d   : > { %v3246_v9 = vmul.f32 0.5, %v3245_v57 }
 0x54e   : > { %v3535_v59 = vmul.f32 %v7018_v50, %v3465_v2  ;;  %v3536_v0 = vmul.f32 %v7020_v37, %v3466_v48  ;;  %v2957_v40 = vmul.f32 %v7306_v53, %v7306_v53  ;;  %v2958_v15 = vmul.f32 %v7309_v46, %v7309_v46 }
 0x54f   : > { %v3247_v24 = vsub.f32 1.5, %v3246_v9 }
 0x550   : > { %v3990_v3 = vpop.eup %3989  ;;  %v3605_v34 = vadd.f32 %v7022_v23, %v3535_v59  ;;  %v3606_v39 = vadd.f32 %v7031_v30, %v3536_v0  ;;  %v3050_v45 = vadd.f32 %v2958_v15, %v2957_v40 }
 0x551   : > { %v3248_v56 = vmul.f32 %v3988_v61, %v3247_v24  ;;  %v3254_v43 = vmul.f32 %v3990_v3, %v3104_v55  ;;  %v2792_v44 = vpop.xlane.xlu0 %2791  ;;  %vm3260_vm8 = vweird.f32 %v3990_v3 }
 0x552   : > { %3669 = vst [vmem:[%s7052_s16 + $0xb0] sm:$0xff] %v3605_v34  ;;  %v2833_v6 = vmul.f32 %v6635_v20, %v2792_v44  ;;  %3051 = vadd.xlane.f32.xlu1 %v3050_v45  ;;  %vm3261_vm10 = vmor %vm3259_vm9, %vm3260_vm8  ;;  %v8473_v34 = vld [vmem:[#allocation60_spill] sm:$0xff] }
 0x553   : > { %3670 = vst [vmem:[%s7052_s16 + $0xb8] sm:$0xff] %v3606_v39  ;;  %v3252_v11 = vsel %vm3251_vm7, %v3988_v61, %v3248_v56  ;;  %v3255_v27 = vmul.f32 %v3990_v3, %v3254_v43  ;;  %v8474_v45 = vld [vmem:[#allocation124_spill] sm:$0xff] }
 0x554   : > { %v3467_v31 = vmul.f32 %v3252_v11, %v8471_v36  ;;  %v3468_v22 = vmul.f32 %v3252_v11, %v8472_v7  ;;  %v7326_v49 = vsub.f32 %v6948_v42, %v2833_v6  ;;  %v7329_v17 = vsub.f32 %v6943_v52, %v2833_v6 }
 0x555   : > { %v3256_v21 = vmul.f32 0.5, %v3255_v27  ;;  %v3010_v57 = vpop.xlane.xlu2 %3009 }
 0x556   : > { %v3537_v47 = vmul.f32 %v7018_v50, %v3467_v31  ;;  %v3538_v2 = vmul.f32 %v7020_v37, %v3468_v22  ;;  %v3074_v61 = vmul.f32 %v3010_v57, %v6635_v20  ;;  %v2959_v48 = vmul.f32 %v7326_v49, %v7326_v49 }
 0x557   : > { %v3257_v1 = vsub.f32 1.5, %v3256_v21  ;;  %v2960_v42 = vmul.f32 %v7329_v17, %v7329_v17 }
 0x558   : > { %v3607_v52 = vadd.f32 %v7022_v23, %v3537_v47  ;;  %v3608_v54 = vadd.f32 %v7031_v30, %v3538_v2  ;;  %v3106_v9 = vadd.f32 1e-06, %v3074_v61 }
 0x559   : > { %v3258_v59 = vmul.f32 %v3990_v3, %v3257_v1  ;;  %v2795_v0 = vpop.xlane.xlu1 %2794  ;;  %v3053_v40 = vadd.f32 %v2960_v42, %v2959_v48 }
 0x55a   : > { %3671 = vst [vmem:[%s7052_s16 + $0xc0] sm:$0xff] %v3607_v52  ;;  %3991 = vrsqrt.f32 %v3106_v9  ;;  %v2834_v15 = vmul.f32 %v6635_v20, %v2795_v0  ;;  %vm3279_vm12 = vweird.f32 %v3106_v9 }
 0x55b   : > { %3672 = vst [vmem:[%s7052_s16 + $0xc8] sm:$0xff] %v3608_v54  ;;  %v3262_v24 = vsel %vm3261_vm10, %v3990_v3, %v3258_v59  ;;  %3054 = vadd.xlane.f32.xlu2 %v3053_v40 }
 0x55c   : > { %v3469_v39 = vmul.f32 %v3262_v24, %v8473_v34  ;;  %v3470_v56 = vmul.f32 %v3262_v24, %v8474_v45  ;;  %v7346_v43 = vsub.f32 %v6970_v8, %v2834_v15  ;;  %v7349_v55 = vsub.f32 %v6965_v25, %v2834_v15  ;;  %v8475_v34 = vld [vmem:[#allocation73_spill] sm:$0xff] }
 0x55d   : > { %v3013_v44 = vpop.xlane.xlu0 %3012  ;;  %v8476_v45 = vld [vmem:[#allocation125_spill] sm:$0xff] }
 0x55e   : > { %v3539_v6 = vmul.f32 %v7018_v50, %v3469_v39  ;;  %v3540_v11 = vmul.f32 %v7020_v37, %v3470_v56  ;;  %v3075_v3 = vmul.f32 %v3013_v44, %v6635_v20  ;;  %v2961_v27 = vmul.f32 %v7346_v43, %v7346_v43 }
 0x55f   : > { %v2962_v36 = vmul.f32 %v7349_v55, %v7349_v55 }
 0x560   : > { %v3992_v31 = vpop.eup %3991  ;;  %v3609_v8 = vadd.f32 %v7022_v23, %v3539_v6  ;;  %v3610_v25 = vadd.f32 %v7031_v30, %v3540_v11  ;;  %v3107_v7 = vadd.f32 1e-06, %v3075_v3 }
 0x561   : > { %v3274_v22 = vmul.f32 %v3992_v31, %v3106_v9  ;;  %v3007_v21 = vpop.xlane.xlu1 %3006  ;;  %v3056_v57 = vadd.f32 %v2962_v36, %v2961_v27  ;;  %vm3280_vm11 = vweird.f32 %v3992_v31 }
 0x562   : > { %3673 = vst [vmem:[%s7052_s16 + $0xd0] sm:$0xff] %v3609_v8  ;;  %3993 = vrsqrt.f32 %v3107_v7  ;;  %v3073_v47 = vmul.f32 %v3007_v21, %v6635_v20  ;;  %vm3281_vm13 = vmor %vm3279_vm12, %vm3280_vm11  ;;  %vm3289_vm15 = vweird.f32 %v3107_v7 }
 0x563   : > { %3674 = vst [vmem:[%s7052_s16 + $0xd8] sm:$0xff] %v3610_v25  ;;  %v3275_v2 = vmul.f32 %v3992_v31, %v3274_v22  ;;  %3057 = vadd.xlane.f32.xlu0 %v3056_v57 }
 0x564   : > { %v3105_v61 = vadd.f32 1e-06, %v3073_v47 }
 0x565   : > { %v3276_v48 = vmul.f32 0.5, %v3275_v2 }
 0x566   : > { %3995 = vrsqrt.f32 %v3105_v61  ;;  %vm3269_vm2 = vweird.f32 %v3105_v61 }
 0x567   : > { %v3277_v1 = vsub.f32 1.5, %v3276_v48 }
 0x568   : > { %v3994_v42 = vpop.eup %3993 }
 0x569   : > { %v3278_v52 = vmul.f32 %v3992_v31, %v3277_v1  ;;  %v3284_v54 = vmul.f32 %v3994_v42, %v3107_v7  ;;  %v3016_v59 = vpop.xlane.xlu1 %3015  ;;  %vm3290_vm14 = vweird.f32 %v3994_v42 }
 0x56a   : > { %v3076_v0 = vmul.f32 %v3016_v59, %v6635_v20  ;;  %vm3291_vm0 = vmor %vm3289_vm15, %vm3290_vm14  ;;  %v8478_v59 = vld [vmem:[#allocation126_spill] sm:$0xff] }
 0x56b   : > { %v3282_v40 = vsel %vm3281_vm13, %v3992_v31, %v3278_v52  ;;  %v3285_v15 = vmul.f32 %v3994_v42, %v3284_v54  ;;  %v8477_v52 = vld [vmem:[#allocation19_spill] sm:$0xff] }
 0x56c   : > { %v3996_v24 = vpop.eup %3995  ;;  %v3473_v39 = vmul.f32 %v3282_v40, %v8475_v34  ;;  %v3474_v56 = vmul.f32 %v3282_v40, %v8476_v45  ;;  %v3108_v44 = vadd.f32 1e-06, %v3076_v0 }
 0x56d   : > { %v3286_v6 = vmul.f32 0.5, %v3285_v15  ;;  %v3264_v11 = vmul.f32 %v3996_v24, %v3105_v61  ;;  %v3019_v3 = vpop.xlane.xlu2 %3018  ;;  %vm3270_vm1 = vweird.f32 %v3996_v24  ;;  %v8480_v61 = vld [vmem:[#allocation26_spill] sm:$0xff] }
 0x56e   : > { %v3543_v9 = vmul.f32 %v7018_v50, %v3473_v39  ;;  %v3544_v27 = vmul.f32 %v7020_v37, %v3474_v56  ;;  %3997 = vrsqrt.f32 %v3108_v44  ;;  %v3077_v8 = vmul.f32 %v3019_v3, %v6635_v20  ;;  %vm3271_vm3 = vmor %vm3269_vm2, %vm3270_vm1  ;;  %v8479_v3 = vld [vmem:[#allocation18_spill] sm:$0xff] }
 0x56f   : > { %v3287_v36 = vsub.f32 1.5, %v3286_v6  ;;  %v3265_v31 = vmul.f32 %v3996_v24, %v3264_v11  ;;  %vm3299_vm5 = vweird.f32 %v3108_v44 }
 0x570   : > { %v3613_v25 = vadd.f32 %v7022_v23, %v3543_v9  ;;  %v3614_v22 = vadd.f32 %v7031_v30, %v3544_v27  ;;  %v3109_v47 = vadd.f32 1e-06, %v3077_v8 }
 0x571   : > { %v3288_v21 = vmul.f32 %v3994_v42, %v3287_v36  ;;  %v3266_v57 = vmul.f32 0.5, %v3265_v31 }
 0x572   : > { %3677 = vst [vmem:[%s7052_s16 + $0xf0] sm:$0xff] %v3613_v25  ;;  %3999 = vrsqrt.f32 %v3109_v47  ;;  %vm3309_vm8 = vweird.f32 %v3109_v47 }
 0x573   : > { %3678 = vst [vmem:[%s7052_s16 + $0xf8] sm:$0xff] %v3614_v22  ;;  %v3292_v2 = vsel %vm3291_vm0, %v3994_v42, %v3288_v21  ;;  %v3267_v48 = vsub.f32 1.5, %v3266_v57 }
 0x574   : > { %v3998_v1 = vpop.eup %3997  ;;  %v3475_v54 = vmul.f32 %v3292_v2, %v8477_v52  ;;  %v3476_v0 = vmul.f32 %v3292_v2, %v8478_v59 }
 0x575   : > { %v3268_v40 = vmul.f32 %v3996_v24, %v3267_v48  ;;  %v3294_v15 = vmul.f32 %v3998_v1, %v3108_v44  ;;  %vm3300_vm4 = vweird.f32 %v3998_v1 }
 0x576   : > { %v3545_v7 = vmul.f32 %v7018_v50, %v3475_v54  ;;  %v3546_v34 = vmul.f32 %v7020_v37, %v3476_v0  ;;  %v3022_v39 = vpop.xlane.xlu0 %3021  ;;  %vm3301_vm6 = vmor %vm3299_vm5, %vm3300_vm4 }
 0x577   : > { %v3272_v42 = vsel %vm3271_vm3, %v3996_v24, %v3268_v40  ;;  %v3295_v45 = vmul.f32 %v3998_v1, %v3294_v15  ;;  %v3078_v56 = vmul.f32 %v3022_v39, %v6635_v20  ;;  %v8481_v15 = vld [vmem:[#allocation21_spill] sm:$0xff] }
 0x578   : > { %v3615_v6 = vadd.f32 %v7022_v23, %v3545_v7  ;;  %v3616_v11 = vadd.f32 %v7031_v30, %v3546_v34  ;;  %v3471_v9 = vmul.f32 %v3272_v42, %v8479_v3  ;;  %v3472_v27 = vmul.f32 %v3272_v42, %v8480_v61  ;;  %v4000_v36 = vpop.eup %3999  ;;  %v8482_v34 = vld [vmem:[#allocation29_spill] sm:$0xff] }
 0x579   : > { %v3296_v31 = vmul.f32 0.5, %v3295_v45  ;;  %v3110_v8 = vadd.f32 1e-06, %v3078_v56  ;;  %v3304_v22 = vmul.f32 %v4000_v36, %v3109_v47  ;;  %vm3310_vm7 = vweird.f32 %v4000_v36 }
 0x57a   : > { %3679 = vst [vmem:[%s7052_s16 + $0x100] sm:$0xff] %v3615_v6  ;;  %v3541_v25 = vmul.f32 %v7018_v50, %v3471_v9  ;;  %v3542_v24 = vmul.f32 %v7020_v37, %v3472_v27  ;;  %vm3311_vm9 = vmor %vm3309_vm8, %vm3310_vm7 }
 0x57b   : > { %3680 = vst [vmem:[%s7052_s16 + $0x108] sm:$0xff] %v3616_v11  ;;  %v3297_v21 = vsub.f32 1.5, %v3296_v31  ;;  %4001 = vrsqrt.f32 %v3110_v8  ;;  %v3305_v48 = vmul.f32 %v4000_v36, %v3304_v22  ;;  %vm3319_vm11 = vweird.f32 %v3110_v8 }
 0x57c   : > { %v3611_v57 = vadd.f32 %v7022_v23, %v3541_v25  ;;  %v3612_v2 = vadd.f32 %v7031_v30, %v3542_v24 }
 0x57d   : > { %v3298_v52 = vmul.f32 %v3998_v1, %v3297_v21  ;;  %v3306_v54 = vmul.f32 0.5, %v3305_v48 }
 0x57e   : > { %3675 = vst [vmem:[%s7052_s16 + $0xe0] sm:$0xff] %v3611_v57  ;;  %v3025_v59 = vpop.xlane.xlu1 %3024 }
 0x57f   : > { %3676 = vst [vmem:[%s7052_s16 + $0xe8] sm:$0xff] %v3612_v2  ;;  %v3302_v0 = vsel %vm3301_vm6, %v3998_v1, %v3298_v52  ;;  %v3079_v40 = vmul.f32 %v3025_v59, %v6635_v20  ;;  %v3307_v42 = vsub.f32 1.5, %v3306_v54 }
 0x580   : > { %v3477_v7 = vmul.f32 %v3302_v0, %v8481_v15  ;;  %v3478_v39 = vmul.f32 %v3302_v0, %v8482_v34 }
 0x581   : > { %v4002_v45 = vpop.eup %4001  ;;  %v3111_v56 = vadd.f32 1e-06, %v3079_v40  ;;  %v3308_v11 = vmul.f32 %v4000_v36, %v3307_v42 }
 0x582   : > { %v3547_v44 = vmul.f32 %v7018_v50, %v3477_v7  ;;  %v3548_v6 = vmul.f32 %v7020_v37, %v3478_v39  ;;  %v3314_v3 = vmul.f32 %v4002_v45, %v3110_v8  ;;  %vm3320_vm10 = vweird.f32 %v4002_v45 }
 0x583   : > { %4003 = vrsqrt.f32 %v3111_v56  ;;  %v3312_v61 = vsel %vm3311_vm9, %v4000_v36, %v3308_v11  ;;  %vm3321_vm12 = vmor %vm3319_vm11, %vm3320_vm10  ;;  %vm3329_vm14 = vweird.f32 %v3111_v56 }
 0x584   : > { %v3617_v1 = vadd.f32 %v7022_v23, %v3547_v44  ;;  %v3618_v9 = vadd.f32 %v7031_v30, %v3548_v6  ;;  %v3315_v27 = vmul.f32 %v4002_v45, %v3314_v3  ;;  %v3479_v31 = vmul.f32 %v3312_v61, %v7026_v38 }
 0x585   : > { %v3480_v47 = vmul.f32 %v3312_v61, %v7029_v63 }
 0x586   : > { %3681 = vst [vmem:[%s7052_s16 + $0x110] sm:$0xff] %v3617_v1  ;;  %v3316_v25 = vmul.f32 0.5, %v3315_v27  ;;  %v3028_v24 = vpop.xlane.xlu2 %3027  ;;  %v3549_v22 = vmul.f32 %v7018_v50, %v3479_v31 }
 0x587   : > { %3682 = vst [vmem:[%s7052_s16 + $0x118] sm:$0xff] %v3618_v9  ;;  %v3550_v21 = vmul.f32 %v7020_v37, %v3480_v47  ;;  %v3080_v57 = vmul.f32 %v3028_v24, %v6635_v20 }
 0x588   : > { %v3317_v2 = vsub.f32 1.5, %v3316_v25  ;;  %v3619_v48 = vadd.f32 %v7022_v23, %v3549_v22 }
 0x589   : > { %v4004_v36 = vpop.eup %4003  ;;  %v3620_v38 = vadd.f32 %v7031_v30, %v3550_v21  ;;  %v3112_v63 = vadd.f32 1e-06, %v3080_v57 }
 0x58a   : > { %v3318_v52 = vmul.f32 %v4002_v45, %v3317_v2  ;;  %v3324_v54 = vmul.f32 %v4004_v36, %v3111_v56  ;;  %3683 = vst [vmem:[%s7052_s16 + $0x120] sm:$0xff] %v3619_v48  ;;  %vm3330_vm13 = vweird.f32 %v4004_v36 }
 0x58b   : > { %4005 = vrsqrt.f32 %v3112_v63  ;;  %3684 = vst [vmem:[%s7052_s16 + $0x128] sm:$0xff] %v3620_v38  ;;  %vm3331_vm15 = vmor %vm3329_vm14, %vm3330_vm13  ;;  %vm3339_vm1 = vweird.f32 %v3112_v63 }
 0x58c   : > { %v3322_v59 = vsel %vm3321_vm12, %v4002_v45, %v3318_v52  ;;  %v3325_v0 = vmul.f32 %v4004_v36, %v3324_v54 }
 0x58d   : > { %v3481_v40 = vmul.f32 %v3322_v59, %v7059_v29  ;;  %v3482_v15 = vmul.f32 %v3322_v59, %v7062_v35 }
 0x58e   : > { %v3326_v7 = vmul.f32 0.5, %v3325_v0  ;;  %v3031_v34 = vpop.xlane.xlu0 %3030 }
 0x58f   : > { %v3551_v39 = vmul.f32 %v7018_v50, %v3481_v40  ;;  %v3552_v42 = vmul.f32 %v7020_v37, %v3482_v15  ;;  %v3081_v8 = vmul.f32 %v3031_v34, %v6635_v20 }
 0x590   : > { %v3327_v44 = vsub.f32 1.5, %v3326_v7 }
 0x591   : > { %v4006_v6 = vpop.eup %4005  ;;  %v3621_v45 = vadd.f32 %v7022_v23, %v3551_v39  ;;  %v3622_v11 = vadd.f32 %v7031_v30, %v3552_v42  ;;  %v3113_v29 = vadd.f32 1e-06, %v3081_v8 }
 0x592   : > { %v3328_v3 = vmul.f32 %v4004_v36, %v3327_v44  ;;  %v3334_v35 = vmul.f32 %v4006_v6, %v3112_v63  ;;  %vm3340_vm0 = vweird.f32 %v4006_v6 }
 0x593   : > { %3685 = vst [vmem:[%s7052_s16 + $0x130] sm:$0xff] %v3621_v45  ;;  %4007 = vrsqrt.f32 %v3113_v29  ;;  %vm3341_vm2 = vmor %vm3339_vm1, %vm3340_vm0  ;;  %vm3349_vm4 = vweird.f32 %v3113_v29 }
 0x594   : > { %3686 = vst [vmem:[%s7052_s16 + $0x138] sm:$0xff] %v3622_v11  ;;  %v3332_v1 = vsel %vm3331_vm15, %v4004_v36, %v3328_v3  ;;  %v3335_v9 = vmul.f32 %v4006_v6, %v3334_v35 }
 0x595   : > { %v3483_v61 = vmul.f32 %v3332_v1, %v7084_v26  ;;  %v3484_v27 = vmul.f32 %v3332_v1, %v7087_v10 }
 0x596   : > { %v3336_v31 = vmul.f32 0.5, %v3335_v9  ;;  %v3034_v47 = vpop.xlane.xlu1 %3033 }
 0x597   : > { %v3553_v25 = vmul.f32 %v7018_v50, %v3483_v61  ;;  %v3554_v24 = vmul.f32 %v7020_v37, %v3484_v27  ;;  %v3082_v56 = vmul.f32 %v3034_v47, %v6635_v20 }
 0x598   : > { %v3337_v22 = vsub.f32 1.5, %v3336_v31 }
 0x599   : > { %v4008_v21 = vpop.eup %4007  ;;  %v3623_v57 = vadd.f32 %v7022_v23, %v3553_v25  ;;  %v3624_v2 = vadd.f32 %v7031_v30, %v3554_v24  ;;  %v3114_v26 = vadd.f32 1e-06, %v3082_v56 }
 0x59a   : > { %v3338_v36 = vmul.f32 %v4006_v6, %v3337_v22  ;;  %v3344_v10 = vmul.f32 %v4008_v21, %v3113_v29  ;;  %vm3350_vm3 = vweird.f32 %v4008_v21 }
 0x59b   : > { %3687 = vst [vmem:[%s7052_s16 + $0x140] sm:$0xff] %v3623_v57  ;;  %4009 = vrsqrt.f32 %v3114_v26  ;;  %vm3351_vm5 = vmor %vm3349_vm4, %vm3350_vm3  ;;  %vm3359_vm7 = vweird.f32 %v3114_v26 }
 0x59c   : > { %3688 = vst [vmem:[%s7052_s16 + $0x148] sm:$0xff] %v3624_v2  ;;  %v3342_v48 = vsel %vm3341_vm2, %v4006_v6, %v3338_v36  ;;  %v3345_v38 = vmul.f32 %v4008_v21, %v3344_v10 }
 0x59d   : > { %v3485_v52 = vmul.f32 %v3342_v48, %v7109_v28  ;;  %v3486_v54 = vmul.f32 %v3342_v48, %v7112_v62 }
 0x59e   : > { %v3346_v59 = vmul.f32 0.5, %v3345_v38  ;;  %v3037_v0 = vpop.xlane.xlu2 %3036 }
 0x59f   : > { %v3555_v40 = vmul.f32 %v7018_v50, %v3485_v52  ;;  %v3556_v15 = vmul.f32 %v7020_v37, %v3486_v54  ;;  %v3083_v63 = vmul.f32 %v3037_v0, %v6635_v20 }
 0x5a0   : > { %v3347_v7 = vsub.f32 1.5, %v3346_v59 }
 0x5a1   : > { %v4010_v34 = vpop.eup %4009  ;;  %v3625_v39 = vadd.f32 %v7022_v23, %v3555_v40  ;;  %v3626_v42 = vadd.f32 %v7031_v30, %v3556_v15  ;;  %v3115_v28 = vadd.f32 1e-06, %v3083_v63 }
 0x5a2   : > { %v3348_v8 = vmul.f32 %v4008_v21, %v3347_v7  ;;  %v3354_v62 = vmul.f32 %v4010_v34, %v3114_v26  ;;  %vm3360_vm6 = vweird.f32 %v4010_v34 }
 0x5a3   : > { %3689 = vst [vmem:[%s7052_s16 + $0x150] sm:$0xff] %v3625_v39  ;;  %4011 = vrsqrt.f32 %v3115_v28  ;;  %vm3361_vm8 = vmor %vm3359_vm7, %vm3360_vm6  ;;  %vm3369_vm10 = vweird.f32 %v3115_v28 }
 0x5a4   : > { %3690 = vst [vmem:[%s7052_s16 + $0x158] sm:$0xff] %v3626_v42  ;;  %v3352_v44 = vsel %vm3351_vm5, %v4008_v21, %v3348_v8  ;;  %v3355_v6 = vmul.f32 %v4010_v34, %v3354_v62 }
 0x5a5   : > { %v3487_v45 = vmul.f32 %v3352_v44, %v7134_v14  ;;  %v3488_v11 = vmul.f32 %v3352_v44, %v7137_v13 }
 0x5a6   : > { %v3356_v3 = vmul.f32 0.5, %v3355_v6  ;;  %v3040_v35 = vpop.xlane.xlu0 %3039 }
 0x5a7   : > { %v3557_v1 = vmul.f32 %v7018_v50, %v3487_v45  ;;  %v3558_v9 = vmul.f32 %v7020_v37, %v3488_v11  ;;  %v3084_v29 = vmul.f32 %v3040_v35, %v6635_v20 }
 0x5a8   : > { %v3357_v61 = vsub.f32 1.5, %v3356_v3 }
 0x5a9   : > { %v4012_v27 = vpop.eup %4011  ;;  %v3627_v31 = vadd.f32 %v7022_v23, %v3557_v1  ;;  %v3628_v47 = vadd.f32 %v7031_v30, %v3558_v9  ;;  %v3116_v14 = vadd.f32 1e-06, %v3084_v29 }
 0x5aa   : > { %v3358_v25 = vmul.f32 %v4010_v34, %v3357_v61  ;;  %v3364_v13 = vmul.f32 %v4012_v27, %v3115_v28  ;;  %vm3370_vm9 = vweird.f32 %v4012_v27 }
 0x5ab   : > { %3691 = vst [vmem:[%s7052_s16 + $0x160] sm:$0xff] %v3627_v31  ;;  %4013 = vrsqrt.f32 %v3116_v14  ;;  %vm3371_vm11 = vmor %vm3369_vm10, %vm3370_vm9  ;;  %vm3379_vm13 = vweird.f32 %v3116_v14 }
 0x5ac   : > { %3692 = vst [vmem:[%s7052_s16 + $0x168] sm:$0xff] %v3628_v47  ;;  %v3362_v24 = vsel %vm3361_vm8, %v4010_v34, %v3358_v25  ;;  %v3365_v56 = vmul.f32 %v4012_v27, %v3364_v13 }
 0x5ad   : > { %v3489_v22 = vmul.f32 %v3362_v24, %v7159_v12  ;;  %v3490_v21 = vmul.f32 %v3362_v24, %v7162_v4 }
 0x5ae   : > { %v3366_v57 = vmul.f32 0.5, %v3365_v56  ;;  %v3043_v2 = vpop.xlane.xlu1 %3042 }
 0x5af   : > { %v3559_v36 = vmul.f32 %v7018_v50, %v3489_v22  ;;  %v3560_v10 = vmul.f32 %v7020_v37, %v3490_v21  ;;  %v3085_v26 = vmul.f32 %v3043_v2, %v6635_v20 }
 0x5b0   : > { %v3367_v48 = vsub.f32 1.5, %v3366_v57 }
 0x5b1   : > { %v4014_v38 = vpop.eup %4013  ;;  %v3629_v52 = vadd.f32 %v7022_v23, %v3559_v36  ;;  %v3630_v54 = vadd.f32 %v7031_v30, %v3560_v10  ;;  %v3117_v12 = vadd.f32 1e-06, %v3085_v26 }
 0x5b2   : > { %v3368_v59 = vmul.f32 %v4012_v27, %v3367_v48  ;;  %v3374_v4 = vmul.f32 %v4014_v38, %v3116_v14  ;;  %vm3380_vm12 = vweird.f32 %v4014_v38 }
 0x5b3   : > { %3693 = vst [vmem:[%s7052_s16 + $0x170] sm:$0xff] %v3629_v52  ;;  %4015 = vrsqrt.f32 %v3117_v12  ;;  %vm3381_vm14 = vmor %vm3379_vm13, %vm3380_vm12  ;;  %vm3389_vm0 = vweird.f32 %v3117_v12 }
 0x5b4   : > { %3694 = vst [vmem:[%s7052_s16 + $0x178] sm:$0xff] %v3630_v54  ;;  %v3372_v0 = vsel %vm3371_vm11, %v4012_v27, %v3368_v59  ;;  %v3375_v40 = vmul.f32 %v4014_v38, %v3374_v4 }
 0x5b5   : > { %v3491_v15 = vmul.f32 %v3372_v0, %v7184_v18  ;;  %v3492_v63 = vmul.f32 %v3372_v0, %v7187_v32 }
 0x5b6   : > { %v3376_v7 = vmul.f32 0.5, %v3375_v40  ;;  %v3046_v34 = vpop.xlane.xlu2 %3045 }
 0x5b7   : > { %v3561_v39 = vmul.f32 %v7018_v50, %v3491_v15  ;;  %v3562_v42 = vmul.f32 %v7020_v37, %v3492_v63  ;;  %v3086_v28 = vmul.f32 %v3046_v34, %v6635_v20 }
 0x5b8   : > { %v3377_v8 = vsub.f32 1.5, %v3376_v7 }
 0x5b9   : > { %v4016_v62 = vpop.eup %4015  ;;  %v3631_v44 = vadd.f32 %v7022_v23, %v3561_v39  ;;  %v3632_v6 = vadd.f32 %v7031_v30, %v3562_v42  ;;  %v3118_v18 = vadd.f32 1e-06, %v3086_v28 }
 0x5ba   : > { %v3378_v45 = vmul.f32 %v4014_v38, %v3377_v8  ;;  %v3384_v32 = vmul.f32 %v4016_v62, %v3117_v12  ;;  %vm3390_vm15 = vweird.f32 %v4016_v62 }
 0x5bb   : > { %3695 = vst [vmem:[%s7052_s16 + $0x180] sm:$0xff] %v3631_v44  ;;  %4017 = vrsqrt.f32 %v3118_v18  ;;  %vm3391_vm1 = vmor %vm3389_vm0, %vm3390_vm15  ;;  %vm3399_vm3 = vweird.f32 %v3118_v18 }
 0x5bc   : > { %3696 = vst [vmem:[%s7052_s16 + $0x188] sm:$0xff] %v3632_v6  ;;  %v3382_v11 = vsel %vm3381_vm14, %v4014_v38, %v3378_v45  ;;  %v3385_v3 = vmul.f32 %v4016_v62, %v3384_v32 }
 0x5bd   : > { %v3493_v35 = vmul.f32 %v3382_v11, %v7209_v51  ;;  %v3494_v1 = vmul.f32 %v3382_v11, %v7212_v58 }
 0x5be   : > { %v3386_v9 = vmul.f32 0.5, %v3385_v3  ;;  %v3049_v29 = vpop.xlane.xlu0 %3048 }
 0x5bf   : > { %v3563_v61 = vmul.f32 %v7018_v50, %v3493_v35  ;;  %v3564_v27 = vmul.f32 %v7020_v37, %v3494_v1  ;;  %v3087_v31 = vmul.f32 %v3049_v29, %v6635_v20 }
 0x5c0   : > { %v3387_v47 = vsub.f32 1.5, %v3386_v9 }
 0x5c1   : > { %v4018_v14 = vpop.eup %4017  ;;  %v3633_v25 = vadd.f32 %v7022_v23, %v3563_v61  ;;  %v3634_v13 = vadd.f32 %v7031_v30, %v3564_v27  ;;  %v3119_v51 = vadd.f32 1e-06, %v3087_v31 }
 0x5c2   : > { %v3388_v24 = vmul.f32 %v4016_v62, %v3387_v47  ;;  %v3394_v58 = vmul.f32 %v4018_v14, %v3118_v18  ;;  %vm3400_vm2 = vweird.f32 %v4018_v14 }
 0x5c3   : > { %3697 = vst [vmem:[%s7052_s16 + $0x190] sm:$0xff] %v3633_v25  ;;  %4019 = vrsqrt.f32 %v3119_v51  ;;  %vm3401_vm4 = vmor %vm3399_vm3, %vm3400_vm2  ;;  %vm3409_vm6 = vweird.f32 %v3119_v51 }
 0x5c4   : > { %3698 = vst [vmem:[%s7052_s16 + $0x198] sm:$0xff] %v3634_v13  ;;  %v3392_v56 = vsel %vm3391_vm1, %v4016_v62, %v3388_v24  ;;  %v3395_v22 = vmul.f32 %v4018_v14, %v3394_v58 }
 0x5c5   : > { %v3495_v21 = vmul.f32 %v3392_v56, %v7234_v33  ;;  %v3496_v57 = vmul.f32 %v3392_v56, %v7237_v41  ;;  %v3052_v2 = vpop.xlane.xlu1 %3051 }
 0x5c6   : > { %v3396_v36 = vmul.f32 0.5, %v3395_v22  ;;  %v3088_v10 = vmul.f32 %v3052_v2, %v6635_v20 }
 0x5c7   : > { %v3565_v26 = vmul.f32 %v7018_v50, %v3495_v21  ;;  %v3566_v48 = vmul.f32 %v7020_v37, %v3496_v57 }
 0x5c8   : > { %v3397_v38 = vsub.f32 1.5, %v3396_v36  ;;  %v3120_v52 = vadd.f32 1e-06, %v3088_v10 }
 0x5c9   : > { %v4020_v54 = vpop.eup %4019  ;;  %v3635_v12 = vadd.f32 %v7022_v23, %v3565_v26  ;;  %v3636_v33 = vadd.f32 %v7031_v30, %v3566_v48 }
 0x5ca   : > { %v3398_v59 = vmul.f32 %v4018_v14, %v3397_v38  ;;  %v3404_v41 = vmul.f32 %v4020_v54, %v3119_v51  ;;  %4021 = vrsqrt.f32 %v3120_v52  ;;  %vm3410_vm5 = vweird.f32 %v4020_v54 }
 0x5cb   : > { %3699 = vst [vmem:[%s7052_s16 + $0x1a0] sm:$0xff] %v3635_v12  ;;  %vm3411_vm7 = vmor %vm3409_vm6, %vm3410_vm5  ;;  %vm3419_vm9 = vweird.f32 %v3120_v52 }
 0x5cc   : > { %3700 = vst [vmem:[%s7052_s16 + $0x1a8] sm:$0xff] %v3636_v33  ;;  %v3402_v4 = vsel %vm3401_vm4, %v4018_v14, %v3398_v59  ;;  %v3405_v0 = vmul.f32 %v4020_v54, %v3404_v41 }
 0x5cd   : > { %v3497_v40 = vmul.f32 %v3402_v4, %v7259_v16  ;;  %v3498_v15 = vmul.f32 %v3402_v4, %v7262_v19 }
 0x5ce   : > { %v3406_v63 = vmul.f32 0.5, %v3405_v0  ;;  %v3055_v7 = vpop.xlane.xlu2 %3054 }
 0x5cf   : > { %v3567_v34 = vmul.f32 %v7018_v50, %v3497_v40  ;;  %v3568_v39 = vmul.f32 %v7020_v37, %v3498_v15  ;;  %v3089_v42 = vmul.f32 %v3055_v7, %v6635_v20 }
 0x5d0   : > { %v4022_v28 = vpop.eup %4021  ;;  %v3407_v8 = vsub.f32 1.5, %v3406_v63 }
 0x5d1   : > { %v3637_v62 = vadd.f32 %v7022_v23, %v3567_v34  ;;  %v3638_v44 = vadd.f32 %v7031_v30, %v3568_v39  ;;  %v3414_v16 = vmul.f32 %v4022_v28, %v3120_v52  ;;  %v3121_v19 = vadd.f32 1e-06, %v3089_v42 }
 0x5d2   : > { %v3408_v6 = vmul.f32 %v4020_v54, %v3407_v8  ;;  %vm3420_vm8 = vweird.f32 %v4022_v28 }
 0x5d3   : > { %3701 = vst [vmem:[%s7052_s16 + $0x1b0] sm:$0xff] %v3637_v62  ;;  %v3415_v18 = vmul.f32 %v4022_v28, %v3414_v16  ;;  %4023 = vrsqrt.f32 %v3121_v19  ;;  %vm3421_vm10 = vmor %vm3419_vm9, %vm3420_vm8  ;;  %vm3429_vm12 = vweird.f32 %v3121_v19 }
 0x5d4   : > { %3702 = vst [vmem:[%s7052_s16 + $0x1b8] sm:$0xff] %v3638_v44  ;;  %v3412_v45 = vsel %vm3411_vm7, %v4020_v54, %v3408_v6 }
 0x5d5   : > { %v3499_v32 = vmul.f32 %v3412_v45, %v7284_v60  ;;  %v3500_v11 = vmul.f32 %v3412_v45, %v7287_v5  ;;  %v3416_v3 = vmul.f32 0.5, %v3415_v18 }
 0x5d6   : > { %v3058_v35 = vpop.xlane.xlu0 %3057 }
 0x5d7   : > { %v3569_v1 = vmul.f32 %v7018_v50, %v3499_v32  ;;  %v3570_v9 = vmul.f32 %v7020_v37, %v3500_v11  ;;  %v3417_v29 = vsub.f32 1.5, %v3416_v3  ;;  %v3090_v61 = vmul.f32 %v3058_v35, %v6635_v20 }
 0x5d9   : > { %v3639_v27 = vadd.f32 %v7022_v23, %v3569_v1  ;;  %v3640_v31 = vadd.f32 %v7031_v30, %v3570_v9  ;;  %v3418_v60 = vmul.f32 %v4022_v28, %v3417_v29  ;;  %v3122_v47 = vadd.f32 1e-06, %v3090_v61  ;;  %v4024_v14 = vpop.eup %4023 }
 0x5da   : > { %v3424_v25 = vmul.f32 %v4024_v14, %v3121_v19  ;;  %vm3430_vm11 = vweird.f32 %v4024_v14 }
 0x5db   : > { %3703 = vst [vmem:[%s7052_s16 + $0x1c0] sm:$0xff] %v3639_v27  ;;  %v3422_v5 = vsel %vm3421_vm10, %v4022_v28, %v3418_v60  ;;  %4025 = vrsqrt.f32 %v3122_v47  ;;  %vm3431_vm13 = vmor %vm3429_vm12, %vm3430_vm11  ;;  %vm3439_vm15 = vweird.f32 %v3122_v47 }
 0x5dc   : > { %3704 = vst [vmem:[%s7052_s16 + $0x1c8] sm:$0xff] %v3640_v31  ;;  %v3501_v13 = vmul.f32 %v3422_v5, %v7306_v53  ;;  %v3502_v20 = vmul.f32 %v3422_v5, %v7309_v46  ;;  %v3425_v51 = vmul.f32 %v4024_v14, %v3424_v25 }
 0x5de   : > { %v3571_v24 = vmul.f32 %v7018_v50, %v3501_v13  ;;  %v3572_v58 = vmul.f32 %v7020_v37, %v3502_v20  ;;  %v3426_v56 = vmul.f32 0.5, %v3425_v51 }
 0x5e0   : > { %v3641_v22 = vadd.f32 %v7022_v23, %v3571_v24  ;;  %v3642_v21 = vadd.f32 %v7031_v30, %v3572_v58  ;;  %v3427_v2 = vsub.f32 1.5, %v3426_v56 }
 0x5e1   : > { %v4026_v57 = vpop.eup %4025 }
 0x5e2   : > { %3705 = vst [vmem:[%s7052_s16 + $0x1d0] sm:$0xff] %v3641_v22  ;;  %v3434_v36 = vmul.f32 %v4026_v57, %v3122_v47  ;;  %v3428_v53 = vmul.f32 %v4024_v14, %v3427_v2  ;;  %vm3440_vm14 = vweird.f32 %v4026_v57 }
 0x5e3   : > { %3706 = vst [vmem:[%s7052_s16 + $0x1d8] sm:$0xff] %v3642_v21  ;;  %vm3441_vm0 = vmor %vm3439_vm15, %vm3440_vm14 }
 0x5e4   : > { %v3435_v46 = vmul.f32 %v4026_v57, %v3434_v36  ;;  %v3432_v10 = vsel %vm3431_vm13, %v4024_v14, %v3428_v53 }
 0x5e5   : > { %v3503_v26 = vmul.f32 %v3432_v10, %v7326_v49  ;;  %v3504_v48 = vmul.f32 %v3432_v10, %v7329_v17 }
 0x5e6   : > { %v3436_v38 = vmul.f32 0.5, %v3435_v46 }
 0x5e7   : > { %v3573_v52 = vmul.f32 %v7018_v50, %v3503_v26  ;;  %v3574_v54 = vmul.f32 %v7020_v37, %v3504_v48 }
 0x5e8   : > { %v3437_v12 = vsub.f32 1.5, %v3436_v38 }
 0x5e9   : > { %v3643_v33 = vadd.f32 %v7022_v23, %v3573_v52  ;;  %v3644_v59 = vadd.f32 %v7031_v30, %v3574_v54 }
 0x5ea   : > { %v3438_v41 = vmul.f32 %v4026_v57, %v3437_v12 }
 0x5eb   : > { %3707 = vst [vmem:[%s7052_s16 + $0x1e0] sm:$0xff] %v3643_v33 }
 0x5ec   : > { %v3442_v49 = vsel %vm3441_vm0, %v4026_v57, %v3438_v41  ;;  %3708 = vst [vmem:[%s7052_s16 + $0x1e8] sm:$0xff] %v3644_v59 }
 0x5ed   : > { %v3505_v17 = vmul.f32 %v3442_v49, %v7346_v43  ;;  %v3506_v4 = vmul.f32 %v3442_v49, %v7349_v55 }
 0x5ef   : > { %v3575_v0 = vmul.f32 %v7018_v50, %v3505_v17  ;;  %v3576_v40 = vmul.f32 %v7020_v37, %v3506_v4 }
 0x5f1   : > { %v3645_v15 = vadd.f32 %v7022_v23, %v3575_v0  ;;  %v3646_v63 = vadd.f32 %v7031_v30, %v3576_v40 }
 0x5f3   : > { %3709 = vst [vmem:[%s7052_s16 + $0x1f0] sm:$0xff] %v3645_v15 }
 0x5f4   : > { %3710 = vst [vmem:[%s7052_s16 + $0x1f8] sm:$0xff] %v3646_v63 }
 0x5f5   : > { %4270 = shalt.err (!%p4267_p10)
}
 0x5f6   : > { %s4328_s14 = smov 256   ;;  %s4329_s16 = smov 16  }
 0x5f7   : > { %3885 = dma.vmem_to_hbm [thread:$0]  (%p4457_p3), %s3726_s28, 8192, %s3728_s1, %s3712_s29, %s4328_s14, %s4328_s14, %s4329_s16  }
 0x5f8 PF: > { %s3742_s17 = sand.u32 1, %s4305_s24   ;;  %p8483_p12 = scmp.ge.s32.totalorder %s4317_s27, 2 }
 0x5f9   : > { %s3743_s19 = scalar_lea.sflag [#allocation4], %s3742_s17 }
 0x5fa   : > { %p3905_p13 = pnand %p8483_p12, %p4405_p6 }
 0x5fc   : > { %p3906_p0 = pneg %p3905_p13 }
 0x5fe   : > { %4300 = dma.done.wait (%p3906_p0), %s3743_s19, 8192  }
 0x5ff   : > { %4302 = vsyncadd (%p3906_p0), %s3743_s19, 4294959104  ;;  %p22_p5 = scmp.ge.s32.totalorder %s4447_s21, 4   ;;  %s8484_s24 = smov %s4309_s25 }
 0x600   : > { %s8485_s25 = smov %s4313_s26  ;;  %s8486_s26 = smov %s4463_s11 }
 0x601   : > { %s8487_s27 = smov %s4447_s21  ;;  %24 = sbr.rel (!%p22_p5) target bundleno = 9 (0x9), region = 109 }
 0x606   :  { %3749 = vsyncpa [#allocation3], 1 }
 0x607   :  { %3751 = vsyncpa [#allocation3 + $0x1], 1 }
 0x608   :  { %3752 = vsyncpa [#allocation6], 1 }
 0x609   :  { %3753 = vsyncpa [#allocation9], 1 }
 0x60a   :  { %3754 = vsyncpa [#allocation4], 1 }
 0x60b   :  { %3756 = vsyncpa [#allocation4 + $0x1], 1 }

</bundles_post_ra>
